<compile_context>
chip_gen: v6e
topology: v6e:2x2x1
jax: 0.10.0
libtpu: 0.0.40
codegen_flags: <defaults>
</compile_context>

<pallas_src>
import math
import functools

import jax
import jax.numpy as jnp
import numpy as np
from jax.experimental import pallas as pl
from jax.experimental.pallas import tpu as pltpu


def _pos_embed_sine_kernel(yx_ref, params_ref, out_ref, *, num_pos_feats):
    # yx_ref:     (1, 2, T)   f32  -- row 0: y_embed, row 1: x_embed (flattened spatial tile)
    # params_ref: (F, 2)      f32  -- column 0: 1/dim_t, column 1: parity phase (0 or pi/2)
    # out_ref:    (1, 2F, T)  out dtype -- channel-major output block
    F = num_pos_feats
    inv_dim_t = params_ref[:, 0:1]          # (F, 1)
    phase = params_ref[:, 1:2]              # (F, 1)

    y = yx_ref[0, 0:1, :]                   # (1, T)
    x = yx_ref[0, 1:2, :]                   # (1, T)

    # cos(t) == sin(t + pi/2): single EUP/VPU transcendental per output element.
    out_ref[0, 0:F, :] = jnp.sin(y * inv_dim_t + phase).astype(out_ref.dtype)       # pos_y
    out_ref[0, F:2 * F, :] = jnp.sin(x * inv_dim_t + phase).astype(out_ref.dtype)   # pos_x


def _round_up(x, m):
    return ((x + m - 1) // m) * m


def _choose_spatial_tile(hw, two_f, batch, out_dtype_bytes, max_block_bytes):
    """Spatial tile: multiple of 128 (lane-dense stores), output block <= max_block_bytes.

    The grid uses pl.cdiv, so thw does NOT need to divide hw — only the last tile is masked.
    """
    max_thw = max(128, (max_block_bytes // (two_f * out_dtype_bytes)) // 128 * 128)
    thw = min(max_thw, _round_up(hw, 128))
    # Guarantee >= 2 total grid steps when possible so v7x megacore can use both TensorCores.
    if batch * pl.cdiv(hw, thw) < 2 and thw >= 256:
        thw = max(128, _round_up(thw // 2, 128))
    return thw


def position_embedding_sine(mask, *, num_pos_feats=64, temperature=10000,
                            normalize=False, scale=None,
                            out_dtype=jnp.float32, max_block_bytes=4 << 20):
    """mask: (B, H, W) bool (True = padding).  Returns (B, 2*num_pos_feats, H, W)."""
    if scale is not None and normalize is False:
        raise ValueError("normalize should be True if scale is passed")
    if scale is None:
        scale = 2 * math.pi

    B, H, W = mask.shape
    F = num_pos_feats
    HW = H * W
    out_dtype = jnp.dtype(out_dtype)

    not_mask = (~mask).astype(jnp.float32)
    # Tiny (B,H,W) cumsums + normalization stay in XLA (hoisted out of the kernel).
    y_embed = jnp.cumsum(not_mask, axis=1)
    x_embed = jnp.cumsum(not_mask, axis=2)
    if normalize:
        eps = 1e-6
        y_embed = y_embed / (y_embed[:, -1:, :] + eps) * scale
        x_embed = x_embed / (x_embed[:, :, -1:] + eps) * scale

    # Single stacked input stream: (B, 2, HW), row 0 = y, row 1 = x.
    yx = jnp.stack([y_embed.reshape(B, HW), x_embed.reshape(B, HW)], axis=1)

    # dim_t = temperature ** (2 * (i // 2) / num_pos_feats); parity phase turns cos into sin(x+pi/2).
    dim_i = jnp.arange(F, dtype=jnp.float32)
    dim_t = jnp.power(jnp.float32(temperature), 2.0 * jnp.floor(dim_i / 2.0) / F)
    inv_dim_t = 1.0 / dim_t                                    # (F,)
    phase = (dim_i % 2.0) * jnp.float32(math.pi / 2.0)         # (F,)
    params = jnp.stack([inv_dim_t, phase], axis=1)             # (F, 2)

    thw = _choose_spatial_tile(HW, 2 * F, B, out_dtype.itemsize, max_block_bytes)
    grid = (B, pl.cdiv(HW, thw))

    kernel = functools.partial(_pos_embed_sine_kernel, num_pos_feats=F)

    cost = pl.CostEstimate(
        flops=2 * B * 2 * F * HW,
        transcendentals=B * 2 * F * HW,
        bytes_accessed=B * 2 * F * HW * out_dtype.itemsize + 2 * B * HW * 4 + 2 * F * 4,
    )

    out_flat = pl.pallas_call(
        kernel,
        out_shape=jax.ShapeDtypeStruct((B, 2 * F, HW), out_dtype),
        grid_spec=pltpu.PrefetchScalarGridSpec(
            num_scalar_prefetch=0,
            grid=grid,
            in_specs=[
                pl.BlockSpec((1, 2, thw), lambda b, t: (b, 0, t)),
                pl.BlockSpec((F, 2), lambda b, t: (0, 0)),
            ],
            out_specs=pl.BlockSpec((1, 2 * F, thw), lambda b, t: (b, 0, t)),
        ),
        compiler_params=pltpu.CompilerParams(
            dimension_semantics=("parallel", "parallel"),
            vmem_limit_bytes=32 << 20,     # 2x4 MiB out blocks + tiny inputs fit with headroom
        ),
        cost_estimate=cost,
    )(yx, params)

    # (B, 2F, H*W) -> (B, 2F, H, W): contiguous minor-dim split, no HBM round-trip.
    return out_flat.reshape(B, 2 * F, H, W)


def _reference(mask, *, num_pos_feats=64, temperature=10000, normalize=False, scale=None):
    """Plain-JAX re-implementation of the PyTorch forward (for verification)."""
    if scale is None:
        scale = 2 * math.pi
    not_mask = (~mask).astype(jnp.float32)
    y_embed = jnp.cumsum(not_mask, axis=1)
    x_embed = jnp.cumsum(not_mask, axis=2)
    if normalize:
        eps = 1e-6
        y_embed = y_embed / (y_embed[:, -1:, :] + eps) * scale
        x_embed = x_embed / (x_embed[:, :, -1:] + eps) * scale
    dim_i = jnp.arange(num_pos_feats, dtype=jnp.float32)
    dim_t = jnp.power(jnp.float32(temperature), 2.0 * jnp.floor(dim_i / 2.0) / num_pos_feats)
    pos_x = x_embed[:, :, :, None] / dim_t
    pos_y = y_embed[:, :, :, None] / dim_t
    B, H, W, _ = pos_x.shape
    pos_x = jnp.stack([jnp.sin(pos_x[..., 0::2]), jnp.cos(pos_x[..., 1::2])],
                      axis=4).reshape(B, H, W, -1)
    pos_y = jnp.stack([jnp.sin(pos_y[..., 0::2]), jnp.cos(pos_y[..., 1::2])],
                      axis=4).reshape(B, H, W, -1)
    pos = jnp.concatenate([pos_y, pos_x], axis=3)
    return jnp.transpose(pos, (0, 3, 1, 2))


if __name__ == "__main__":
    key = jax.random.PRNGKey(0)
    kx, km, km2 = jax.random.split(key, 3)

    B, C, H, W = 2, 4, 16, 16
    num_pos_feats = 64

    # NestedTensor.tensors (NCHW) — only used for device/shape in the original module.
    x = jax.random.normal(kx, (B, C, H, W), dtype=jnp.float32)
    # NestedTensor.mask: True = padded position.
    mask = jax.random.bernoulli(km, 0.25, (B, H, W))

    # 1) f32, normalize=False
    pos = jax.block_until_ready(position_embedding_sine(mask, num_pos_feats=num_pos_feats))
    assert pos.shape == (B, 2 * num_pos_feats, H, W)
    ref = _reference(mask, num_pos_feats=num_pos_feats)
    np.testing.assert_allclose(np.asarray(pos), np.asarray(ref), rtol=5e-3, atol=5e-3)

    # 2) f32, normalize=True
    pos_n = jax.block_until_ready(
        position_embedding_sine(mask, num_pos_feats=num_pos_feats, normalize=True))
    ref_n = _reference(mask, num_pos_feats=num_pos_feats, normalize=True)
    np.testing.assert_allclose(np.asarray(pos_n), np.asarray(ref_n), rtol=5e-3, atol=5e-3)

    # 3) Spatial size not a multiple of 128, B=1: exercises the cdiv-masked last tile and the
    #    >=2-grid-step split.
    mask_odd = jax.random.bernoulli(km2, 0.25, (1, 13, 17))
    pos_o = jax.block_until_ready(
        position_embedding_sine(mask_odd, num_pos_feats=num_pos_feats, normalize=True))
    ref_o = _reference(mask_odd, num_pos_feats=num_pos_feats, normalize=True)
    np.testing.assert_allclose(np.asarray(pos_o), np.asarray(ref_o), rtol=5e-3, atol=5e-3)

    # 4) bf16 output path (halves HBM write traffic; looser tolerance).
    pos_bf16 = jax.block_until_ready(
        position_embedding_sine(mask, num_pos_feats=num_pos_feats, out_dtype=jnp.bfloat16))
    np.testing.assert_allclose(np.asarray(pos_bf16).astype(np.float32), np.asarray(ref),
                               rtol=2e-2, atol=2e-2)

    print("KERNEL_OK")
</pallas_src>

<mosaic_0001>
module attributes {stable_mosaic.version = 11 : i64} {
  func.func @_pos_embed_sine_kernel(%arg0: i32, %arg1: i32, %arg2: memref<1x2x256xf32, #tpu.memory_space<vmem>>, %arg3: memref<64x2xf32, #tpu.memory_space<vmem>>, %arg4: memref<1x128x256xf32, #tpu.memory_space<vmem>>) attributes {dimension_semantics = [#tpu.dimension_semantics<parallel>, #tpu.dimension_semantics<parallel>], iteration_bounds = array<i64: 2, 1>, scalar_prefetch = 0 : i64, scratch_operands = 0 : i64, tpu.core_type = #tpu.core_type<tc>, window_params = [{transform_indices = @transform_0, window_bounds = array<i64: 1, 2, 256>}, {pipeline_mode = #tpu.pipeline_mode<synchronous>, transform_indices = @transform_1, window_bounds = array<i64: 64, 2>}, {transform_indices = @transform_2, window_bounds = array<i64: 1, 128, 256>}]} {
    %c0 = arith.constant 0 : index
    %c0_0 = arith.constant 0 : index
    %0 = vector.load %arg3[%c0, %c0_0] : memref<64x2xf32, #tpu.memory_space<vmem>>, vector<64x1xf32>
    %c0_1 = arith.constant 0 : index
    %c1 = arith.constant 1 : index
    %1 = vector.load %arg3[%c0_1, %c1] : memref<64x2xf32, #tpu.memory_space<vmem>>, vector<64x1xf32>
    %c0_2 = arith.constant 0 : index
    %c0_3 = arith.constant 0 : index
    %c0_4 = arith.constant 0 : index
    %2 = vector.load %arg2[%c0_2, %c0_3, %c0_4] : memref<1x2x256xf32, #tpu.memory_space<vmem>>, vector<1x1x256xf32>
    %3 = vector.shape_cast %2 : vector<1x1x256xf32> to vector<1x256xf32>
    %c0_5 = arith.constant 0 : index
    %c1_6 = arith.constant 1 : index
    %c0_7 = arith.constant 0 : index
    %4 = vector.load %arg2[%c0_5, %c1_6, %c0_7] : memref<1x2x256xf32, #tpu.memory_space<vmem>>, vector<1x1x256xf32>
    %5 = vector.shape_cast %4 : vector<1x1x256xf32> to vector<1x256xf32>
    %6 = vector.broadcast %3 : vector<1x256xf32> to vector<64x256xf32>
    %7 = vector.broadcast %0 : vector<64x1xf32> to vector<64x256xf32>
    %8 = arith.mulf %6, %7 : vector<64x256xf32>
    %9 = vector.broadcast %1 : vector<64x1xf32> to vector<64x256xf32>
    %10 = arith.addf %8, %9 : vector<64x256xf32>
    %11 = math.sin %10 : vector<64x256xf32>
    %c0_8 = arith.constant 0 : index
    %c0_9 = arith.constant 0 : index
    %c0_10 = arith.constant 0 : index
    %12 = vector.load %arg4[%c0_8, %c0_9, %c0_10] : memref<1x128x256xf32, #tpu.memory_space<vmem>>, vector<1x64x256xf32>
    %13 = vector.shape_cast %12 : vector<1x64x256xf32> to vector<64x256xf32>
    %14 = vector.shape_cast %11 : vector<64x256xf32> to vector<1x64x256xf32>
    tpu.vector_store %arg4[%c0_8, %c0_9, %c0_10], %14 {strides = array<i32>} : memref<1x128x256xf32, #tpu.memory_space<vmem>>, vector<1x64x256xf32>,
    %15 = vector.broadcast %5 : vector<1x256xf32> to vector<64x256xf32>
    %16 = vector.broadcast %0 : vector<64x1xf32> to vector<64x256xf32>
    %17 = arith.mulf %15, %16 : vector<64x256xf32>
    %18 = vector.broadcast %1 : vector<64x1xf32> to vector<64x256xf32>
    %19 = arith.addf %17, %18 : vector<64x256xf32>
    %20 = math.sin %19 : vector<64x256xf32>
    %c0_11 = arith.constant 0 : index
    %c64 = arith.constant 64 : index
    %c0_12 = arith.constant 0 : index
    %21 = vector.load %arg4[%c0_11, %c64, %c0_12] : memref<1x128x256xf32, #tpu.memory_space<vmem>>, vector<1x64x256xf32>
    %22 = vector.shape_cast %21 : vector<1x64x256xf32> to vector<64x256xf32>
    %23 = vector.shape_cast %20 : vector<64x256xf32> to vector<1x64x256xf32>
    tpu.vector_store %arg4[%c0_11, %c64, %c0_12], %23 {strides = array<i32>} : memref<1x128x256xf32, #tpu.memory_space<vmem>>, vector<1x64x256xf32>,
    return
  }
  func.func @transform_0(%arg0: i32, %arg1: i32) -> (i32, i32, i32) {
    %c0_i32 = arith.constant 0 : i32
    %c0_i32_0 = arith.constant 0 : i32
    return %arg0, %c0_i32, %arg1 : i32, i32, i32
  }
  func.func @transform_1(%arg0: i32, %arg1: i32) -> (i32, i32) {
    %c0_i32 = arith.constant 0 : i32
    %c0_i32_0 = arith.constant 0 : i32
    %c0_i32_1 = arith.constant 0 : i32
    return %c0_i32, %c0_i32_0 : i32, i32
  }
  func.func @transform_2(%arg0: i32, %arg1: i32) -> (i32, i32, i32) {
    %c0_i32 = arith.constant 0 : i32
    %c0_i32_0 = arith.constant 0 : i32
    return %arg0, %c0_i32, %arg1 : i32, i32, i32
  }
}

</mosaic_0001>

<bundles_post_ra>
// kernel: tpu_custom_call.1
= control target key start
LH: loop header
LB: loop body
LE: loop exit
PB: predicated region body
PF: predicated region fallthrough
CT: control target
= control target key end

     0   :  { %7 = vsyncpa [#allocation3], 0  ;;  %s7046_s0 = inlined_call_operand.vmem [shape: f32[2,2,256], index: 0, kind: input, shape index: {}]   ;;  %s7047_s1 = inlined_call_operand.vmem [shape: f32[64,2], index: 1, kind: input, shape index: {}]   ;;  %s7048_s2 = inlined_call_operand.hbm [shape: f32[2,128,256], index: 2, kind: output, shape index: {}]  }
   0x1   :  { %9 = vsyncpa [#allocation3 + $0x1], 0  ;;  %s4370_s9 = smov 0   ;;  %s4372_s10 = smov 0  }
   0x2   :  { %s4374_s11 = smov 0   ;;  %s4376_s12 = smov 0  }
   0x3   :  { %s4378_s13 = smov 0   ;;  %s4380_s14 = smov 0  }
   0x4 LB: > { %s3797_s15 = sadd.s32 4294967295, %s4342_s14   ;;  %s3798_s16 = sadd.s32 4294967294, %s4342_s14   ;;  %s4342_s14 = sphi %s4380_s14, %s15_s14   ;;  %s4338_s13 = sphi %s4378_s13, %s7153_s13   ;;  %s4334_s12 = sphi %s4376_s12, %s7152_s12   ;;  %s4330_s11 = sphi %s4374_s11, %s7151_s11   ;;  %s4326_s10 = sphi %s4372_s10, %s7150_s10   ;;  %s4322_s9 = sphi %s4370_s9, %s7149_s9  }
   0x5   : > { %s27_s17 = sadd.s32 1, %s4338_s13  ;;  %s85_s18 = sadd.s32 1, %s4330_s11 }
   0x6   : > { %p29_p0 = scmp.ge.s32.totalorder %s27_s17, 2  ;;  %p95_p1 = scmp.ne.s32.totalorder %s4330_s11, %s4326_s10 }
   0x7   : > { %p96_p2 = scmp.eq.s32.totalorder %s3797_s15, 1  ;;  %p101_p3 = scmp.ne.s32.totalorder %s4326_s10, %s4322_s9 }
   0x8   : > { %s7155_s17 = smov (%p29_p0, %s27_s17), 0  ;;  %p102_p5 = scmp.eq.s32.totalorder %s3798_s16, 1 }
   0x9   : > { %p4410_p4 = por %p96_p2, %p95_p1  ;;  %s80_s20 = ssub.s32 %s4338_s13, %s7155_s17 }
   0xa   : > { %p3801_p6 = scmp.ge.s32.totalorder %s4342_s14, 1  ;;  %p83_p7 = scmp.eq.s32.totalorder %s80_s20, 0 }
   0xb   : > { %p4417_p8 = por %p102_p5, %p101_p3  ;;  %p136_p9 = scmp.lt.s32.totalorder %s4342_s14, 3 }
   0xc   : > { %s4423_s22 = scalar_select %p83_p7, %s4330_s11, %s85_s18  }
   0xd   : > { %p137_p10 = pnand %p3801_p6, %p136_p9 }
   0xe   : > { %p163_p11 = scmp.lt.s32.totalorder (!%p137_p10), %s4334_s12, 1  ;;  %s159_s26 = sand.u32 (!%p137_p10), 1, %s4326_s10  }
   0xf   : > { %140 = sbr.rel (%p137_p10) target bundleno = 1021 (0x3fd), region = 28  ;;  %s3802_s27 = sshll.u32 (!%p137_p10), %s159_s26, 8 }
  0x10   : > { %s4804_s28 = scalar_lea.vmem (!%p137_p10), [#allocation2], %s3802_s27  ;;  %s3940_s29 = sshll.u32 (!%p137_p10), %s4334_s12, 12 }
  0x11   : > { %s3718_s30 = sshll.u32 (!%p137_p10), %s4804_s28, 4  ;;  %s6993_s5 = scalar_lea.hbm (!%p137_p10), %s7048_s2, %s3940_s29  ;;  %s6995_s30 = int_to_ptr.vmem [resolvable:$true] %s3718_s30 }
  0x12   : > { %s4266_s6 = scalar_lea.vmem (!%p137_p10), %s6995_s30, 4096  ;;  %s4352_s7 = smov (!%p137_p10), [#allocation2]  }
  0x13   : > { %p4267_p12 = scmp.ne.s32.totalorder (!%p137_p10), %s6995_s30, %s4266_s6  ;;  %s4270_s8 = sshll.u32 (!%p137_p10), %s4352_s7, 4  ;;  %s4271_s8 = int_to_ptr.vmem [resolvable:$false] %s4270_s8 }
  0x14   : > { %v175_v0 = vld [vmem:[%s7047_s1 + $0x10] sm:$0xff]  ;;  %v173_v1 = vld [vmem:[%s7047_s1] sm:$0xff]  ;;  %v4344_v2 = vmov 0   ;;  %v176_v3 = vld [vmem:[%s7047_s1 + $0x18] sm:$0xff]  ;;  %v4345_v9 = vmov 1   ;;  %s164_s18 = scalar_select %p163_p11, %s4334_s12, 1  ;;  %v185_v12 = vlaneseq }
  0x15   : > { %4135 = vset.pattern.permute.xlu1 %v4344_v2  ;;  %4134 = vset.pattern.permute.xlu0 %v4344_v2  ;;  %v174_v4 = vld [vmem:[%s7047_s1 + $0x8] sm:$0xff]  ;;  %v177_v6 = vld [vmem:[%s7047_s1 + $0x20] sm:$0xff]  ;;  %v180_v7 = vld [vmem:[%s7047_s1 + $0x38] sm:$0xff]  ;;  %v7062_v61 = vmov 683565275   ;;  %s7001_s12 = scalar_lea.sflag [#allocation3], %s159_s26  ;;  %p4268_p13 = pnand %p4267_p12, %p4410_p4 }
  0x16   : > { %207 = vperm.xlu1 %4135, %v175_v0   ;;  %197 = vperm.xlu0 %4134, %v173_v1   ;;  %v178_v5 = vld [vmem:[%s7047_s1 + $0x28] sm:$0xff]  ;;  %v179_v8 = vld [vmem:[%s7047_s1 + $0x30] sm:$0xff]  ;;  %s3939_s20 = sshll.u32 %s164_s18, 2  ;;  %v4459_v15 = vshrl.u32 %v185_v12, 7  ;;  %s4272_s15 = scalar_lea.vmem %s4271_s8, 8192 }
  0x17   : > { %s4464_s25 = scalar_lea.vmem %s7046_s0, %s3939_s20  ;;  %p4269_p0 = pneg %p4268_p13 }
  0x18   : > { %v7050_v17 = vsub.s32 0, %v4459_v15  ;;  %v7049_v18 = vsub.s32 1, %v4459_v15  ;;  %v181_v20 = vld [vmem:[%s4464_s25] ss:$2 sm:$0x3]  ;;  %p4273_p1 = scmp.lt.s32.totalorder %s6995_s30, %s4271_s8  ;;  %p4274_p2 = scmp.lt.s32.totalorder %s4272_s15, %s4266_s6 }
  0x1a   : > { %212 = vperm.xlu1 %4135, %v176_v3   ;;  %202 = vperm.xlu0 %4134, %v174_v4   ;;  %v4477_v22 = vrot.slane %v181_v20, %v7050_v17  ;;  %v4481_v23 = vrot.slane %v181_v20, %v7049_v18  ;;  %p4275_p3 = por %p4274_p2, %p4273_p1 }
  0x1c   : > { %p4276_p5 = pnand %p4275_p3, %p4269_p0 }
  0x1e   : > { %222 = vperm.xlu1 %4135, %v178_v5   ;;  %217 = vperm.xlu0 %4134, %v177_v6  }
  0x22   : > { %232 = vperm.xlu1 %4135, %v180_v7   ;;  %227 = vperm.xlu0 %4134, %v179_v8  }
  0x26   : > { %4137 = vset.pattern.permute.xlu1 %v4345_v9  ;;  %4136 = vset.pattern.permute.xlu0 %v4345_v9 }
  0x27   : > { %256 = vperm.xlu1 %4137, %v174_v4   ;;  %252 = vperm.xlu0 %4136, %v173_v1   ;;  %v7068_v1 = vmov 2475754826  }
  0x2b   : > { %260 = vperm.xlu1 %4137, %v175_v0   ;;  %264 = vperm.xlu0 %4136, %v176_v3   ;;  %v7065_v3 = vmov 2131351028  }
  0x2f   : > { %268 = vperm.xlu1 %4137, %v177_v6   ;;  %272 = vperm.xlu0 %4136, %v178_v5   ;;  %v7058_v5 = vmov 2102212464  }
  0x33   : > { %276 = vperm.xlu1 %4137, %v179_v8   ;;  %280 = vperm.xlu0 %4136, %v180_v7   ;;  %v7055_v7 = vmov 920167782  }
  0x91   : > { %v4451_v10 = vpop.permute.xlu1 %207  ;;  %v4453_v11 = vpop.permute.xlu0 %197 }
  0x92   : > { %v235_v25 = vmul.f32 %v4453_v11, %v4477_v22  ;;  %v236_v26 = vmul.f32 %v4453_v11, %v4481_v23 }
  0x95   : > { %v4455_v13 = vpop.permute.xlu1 %212  ;;  %v4457_v14 = vpop.permute.xlu0 %202 }
  0x96   : > { %v237_v35 = vmul.f32 %v4457_v14, %v4477_v22  ;;  %v238_v49 = vmul.f32 %v4457_v14, %v4481_v23 }
  0x99   : > { %v4466_v16 = vpop.permute.xlu0 %217  ;;  %v4470_v19 = vpop.permute.xlu1 %222 }
  0x9d   : > { %v4473_v21 = vpop.permute.xlu0 %227  ;;  %v4483_v24 = vpop.permute.xlu1 %232 }
  0xa2   : > { %v4489_v27 = vpop.permute.xlu0 %252  ;;  %v4498_v31 = vpop.permute.xlu1 %256 }
  0xa3   : > { %v4492_v28 = vadd.f32 %v4489_v27, %v235_v25  ;;  %v4495_v29 = vadd.f32 %v4489_v27, %v236_v26  ;;  %v4506_v38 = vadd.f32 %v4498_v31, %v237_v35  ;;  %v4517_v53 = vadd.f32 %v4498_v31, %v238_v49 }
  0xa5   : > { %v302_v30 = vand.u32 2139095040, %v4492_v28  ;;  %v299_v32 = vand.u32 2147483647, %v4492_v28  ;;  %v403_v33 = vand.u32 2147483647, %v4495_v29  ;;  %v406_v34 = vand.u32 2139095040, %v4495_v29 }
  0xa6   : > { %v7052_v45 = vand.u32 2147483647, %v4506_v38  ;;  %v510_v46 = vand.u32 2139095040, %v4506_v38  ;;  %vm301_vm13 = vcmp.lt.s32.totalorder %v4492_v28, 0 }
  0xa7   : > { %v303_v36 = vshrl.u32 %v302_v30, 23  ;;  %v407_v37 = vshrl.u32 %v406_v34, 23  ;;  %v306_v40 = vand.u32 8388607, %v299_v32  ;;  %v410_v42 = vand.u32 8388607, %v403_v33 }
  0xa8   : > { %v511_v52 = vshrl.u32 %v510_v46, 23  ;;  %v4527_v59 = vand.u32 8388607, %v7052_v45  ;;  %v7053_v30 = vmov 1326507024  }
  0xa9   : > { %v3806_v39 = vadd.s32 4294967169, %v303_v36  ;;  %v3810_v41 = vadd.s32 4294967169, %v407_v37  ;;  %v307_v47 = vor.u32 8388608, %v306_v40  ;;  %v411_v48 = vor.u32 8388608, %v410_v42 }
  0xaa   : > { %v4530_v0 = vadd.s32 4294967169, %v511_v52  ;;  %vm4621_vm14 = vcmp.le.f32.partialorder %v299_v32, 0.7853982 }
  0xab   : > { %v309_v43 = vadd.s32 1, %v3806_v39  ;;  %v413_v44 = vadd.s32 1, %v3810_v41  ;;  %v4519_v56 = vshll.u32 %v307_v47, 8  ;;  %v4523_v58 = vshll.u32 %v411_v48, 8 }
  0xad   : > { %vm310_vm0 = vcmp.gt.s32.totalorder %v309_v43, 0  ;;  %vm414_vm1 = vcmp.gt.s32.totalorder %v413_v44, 0 }
  0xae   : > { %v311_v50 = vsel %vm310_vm0, %v309_v43, 0  ;;  %v415_v51 = vsel %vm414_vm1, %v413_v44, 0  ;;  %vm405_vm1 = vcmp.lt.s32.totalorder %v4495_v29, 0 }
  0xaf   : > { %v312_v54 = vshrl.u32 %v311_v50, 5  ;;  %v313_v55 = vand.u32 31, %v311_v50  ;;  %v4521_v57 = vshrl.u32 %v415_v51, 5  ;;  %v417_v63 = vand.u32 31, %v415_v51 }
  0xb1   : > { %v314_v60 = vsub.s32 32, %v313_v55  ;;  %v316_v62 = vshll.u32 %v7062_v61, %v313_v55  ;;  %v319_v2 = vshll.u32 %v7068_v1, %v313_v55  ;;  %v322_v4 = vshll.u32 %v7065_v3, %v313_v55 }
  0xb2   : > { %v325_v6 = vshll.u32 %v7058_v5, %v313_v55  ;;  %v328_v8 = vshll.u32 %v7055_v7, %v313_v55  ;;  %vm331_vm2 = vcmp.lt.s32.totalorder %v312_v54, 1  ;;  %vm332_vm3 = vcmp.lt.s32.totalorder %v312_v54, 2 }
  0xb3   : > { %v317_v9 = vshrl.u32 %v7068_v1, %v314_v60  ;;  %v320_v12 = vshrl.u32 %v7065_v3, %v314_v60  ;;  %v323_v20 = vshrl.u32 %v7058_v5, %v314_v60  ;;  %v315_v25 = vshrl.u32 %v7062_v61, %v314_v60 }
  0xb4   : > { %v326_v26 = vshrl.u32 %v7055_v7, %v314_v60  ;;  %v329_v34 = vshrl.u32 %v7053_v30, %v314_v60  ;;  %v418_v39 = vsub.s32 32, %v417_v63  ;;  %vm333_vm4 = vcmp.lt.s32.totalorder %v312_v54, 3 }
  0xb5   : > { %v318_v35 = vor.u32 %v317_v9, %v316_v62  ;;  %v321_v36 = vor.u32 %v320_v12, %v319_v2  ;;  %v324_v37 = vor.u32 %v323_v20, %v322_v4  ;;  %vm334_vm5 = vcmp.lt.s32.totalorder %v312_v54, 4 }
  0xb6   : > { %v327_v40 = vor.u32 %v326_v26, %v325_v6  ;;  %v330_v41 = vor.u32 %v329_v34, %v328_v8  ;;  %v420_v50 = vshll.u32 %v7062_v61, %v417_v63  ;;  %v421_v55 = vshrl.u32 %v7068_v1, %v418_v39 }
  0xb7   : > { %v335_v42 = vsel %vm331_vm2, %v315_v25, %v318_v35  ;;  %v336_v43 = vsel %vm334_vm5, %v324_v37, 2102212464  ;;  %v339_v44 = vsel %vm331_vm2, %v318_v35, %v321_v36  ;;  %v343_v46 = vsel %vm331_vm2, %v321_v36, %v324_v37 }
  0xb8   : > { %v337_v47 = vsel %vm333_vm4, %v321_v36, %v336_v43  ;;  %v340_v48 = vsel %vm334_vm5, %v327_v40, 920167782  ;;  %v344_v49 = vsel %vm334_vm5, %v330_v41, 1326507024  ;;  %v423_v60 = vshll.u32 %v7068_v1, %v417_v63 }
  0xb9   : > { %v341_v51 = vsel %vm333_vm4, %v324_v37, %v340_v48  ;;  %v345_v52 = vsel %vm333_vm4, %v327_v40, %v344_v49  ;;  %v338_v62 = vsel %vm332_vm3, %v335_v42, %v337_v47  ;;  %v424_v6 = vshrl.u32 %v7065_v3, %v418_v39 }
  0xba   : > { %v342_v2 = vsel %vm332_vm3, %v339_v44, %v341_v51  ;;  %v346_v4 = vsel %vm332_vm3, %v343_v46, %v345_v52  ;;  %v422_v25 = vor.u32 %v421_v55, %v420_v50  ;;  %v426_v34 = vshll.u32 %v7065_v3, %v417_v63 }
  0xbb   : > { %v4553_v8 = vmul.u32.u64.low %v4519_v56, %v346_v4  ;;  %v4554_v9 = vmul.u32.u64.high %v4519_v56, %v346_v4, %v4553_v8  ;;  %v4557_v12 = vmul.u32.u64.low %v4519_v56, %v342_v2  ;;  %v4558_v20 = vmul.u32.u64.high %v4519_v56, %v342_v2, %v4557_v12 }
  0xbc   : > { %v425_v26 = vor.u32 %v424_v6, %v423_v60  ;;  %v427_v35 = vshrl.u32 %v7058_v5, %v418_v39  ;;  %v419_v54 = vshrl.u32 %v7062_v61, %v418_v39  ;;  %v429_v36 = vshll.u32 %v7058_v5, %v417_v63 }
  0xbd   : > { %v430_v37 = vshrl.u32 %v7055_v7, %v418_v39  ;;  %v433_v40 = vshrl.u32 %v7053_v30, %v418_v39  ;;  %v354_v41 = vmul.u32 %v4519_v56, %v338_v62  ;;  %v432_v43 = vshll.u32 %v7055_v7, %v417_v63 }
  0xbe   : > { %v428_v42 = vor.u32 %v427_v35, %v426_v34  ;;  %vm435_vm6 = vcmp.lt.s32.totalorder %v4521_v57, 1  ;;  %vm356_vm7 = vc.u32 %v4554_v9, %v4557_v12  ;;  %v357_v44 = vadd.s32 1, %v4558_v20 }
  0xbf   : > { %v431_v46 = vor.u32 %v430_v37, %v429_v36  ;;  %vm436_vm8 = vcmp.lt.s32.totalorder %v4521_v57, 2  ;;  %v434_v47 = vor.u32 %v433_v40, %v432_v43  ;;  %vm437_vm9 = vcmp.lt.s32.totalorder %v4521_v57, 3  ;;  %v4595_v40 = vpop.permute.xlu1 %260 }
  0xc0   : > { %vm438_vm10 = vcmp.lt.s32.totalorder %v4521_v57, 4  ;;  %v443_v39 = vsel %vm435_vm6, %v422_v25, %v425_v26  ;;  %v358_v56 = vsel %vm356_vm7, %v357_v44, %v4558_v20  ;;  %v447_v49 = vsel %vm435_vm6, %v425_v26, %v428_v42 }
  0xc1   : > { %v440_v48 = vsel %vm438_vm10, %v428_v42, 2102212464  ;;  %v444_v63 = vsel %vm438_vm10, %v431_v46, 920167782  ;;  %v359_v50 = vadd.s32 %v358_v56, %v354_v41  ;;  %v439_v51 = vsel %vm435_vm6, %v419_v54, %v422_v25 }
  0xc2   : > { %v445_v52 = vsel %vm437_vm9, %v428_v42, %v444_v63  ;;  %v448_v55 = vsel %vm438_vm10, %v434_v47, 1326507024  ;;  %v441_v60 = vsel %vm437_vm9, %v425_v26, %v440_v48  ;;  %v517_v4 = vadd.s32 1, %v4530_v0 }
  0xc3   : > { %v446_v62 = vsel %vm436_vm8, %v443_v39, %v445_v52  ;;  %v449_v2 = vsel %vm437_vm9, %v431_v46, %v448_v55  ;;  %v360_v6 = vadd.s32 536870912, %v359_v50  ;;  %v442_v54 = vsel %vm436_vm8, %v439_v51, %v441_v60 }
  0xc4   : > { %v450_v8 = vsel %vm436_vm8, %v447_v49, %v449_v2  ;;  %v4583_v20 = vmul.u32.u64.low %v4523_v58, %v446_v62  ;;  %v4584_v34 = vmul.u32.u64.high %v4523_v58, %v446_v62, %v4583_v20  ;;  %vm518_vm11 = vcmp.gt.s32.totalorder %v517_v4, 0 }
  0xc5   : > { %v4588_v25 = vmul.u32.u64.low %v4523_v58, %v450_v8  ;;  %v4589_v35 = vmul.u32.u64.high %v4523_v58, %v450_v8, %v4588_v25  ;;  %v361_v26 = vshrl.u32 %v360_v6, 30  ;;  %v519_v36 = vsel %vm518_vm11, %v517_v4, 0 }
  0xc6   : > { %v239_v0 = vmul.f32 %v4451_v10, %v4477_v22  ;;  %v521_v37 = vand.u32 31, %v519_v36  ;;  %v461_v42 = vadd.s32 1, %v4584_v34  ;;  %v515_v43 = vor.u32 8388608, %v4527_v59 }
  0xc7   : > { %v362_v41 = vshll.u32 %v361_v26, 30  ;;  %v7051_v44 = vand.u32 2147483647, %v4517_v53  ;;  %v458_v46 = vmul.u32 %v4523_v58, %v442_v54  ;;  %vm460_vm12 = vc.u32 %v4589_v35, %v4583_v20 }
  0xc8   : > { %v522_v57 = vsub.s32 32, %v521_v37  ;;  %v614_v47 = vand.u32 2139095040, %v4517_v53  ;;  %v4606_v39 = vmul.f32 %v4451_v10, %v4481_v23  ;;  %v4610_v56 = vmul.f32 %v4455_v13, %v4477_v22 }
  0xc9   : > { %v4612_v48 = vsub.s32 %v359_v50, %v362_v41  ;;  %v462_v59 = vsel %vm460_vm12, %v461_v42, %v4584_v34  ;;  %v4616_v58 = vadd.f32 %v4595_v40, %v239_v0  ;;  %v385_v63 = vsub.s32 4, %v361_v26 }
  0xca   : > { %v463_v49 = vadd.s32 %v462_v59, %v458_v46  ;;  %v355_v52 = vadd.s32 %v4557_v12, %v4554_v9  ;;  %v4628_v55 = vshll.u32 %v515_v43, 8  ;;  %v525_v62 = vshrl.u32 %v7068_v1, %v522_v57 }
  0xcb   : > { %v365_v50 = vsub.s32 0, %v4612_v48  ;;  %v615_v2 = vshrl.u32 %v614_v47, 23  ;;  %v4633_v4 = vand.u32 8388607, %v7051_v44  ;;  %v520_v6 = vshrl.u32 %v519_v36, 5 }
  0xcc   : > { %v464_v60 = vadd.s32 536870912, %v463_v49  ;;  %v528_v8 = vshrl.u32 %v7065_v3, %v522_v57  ;;  %v531_v34 = vshrl.u32 %v7058_v5, %v522_v57  ;;  %v386_v9 = vsel %vm301_vm13, %v385_v63, %v361_v26 }
  0xcd   : > { %v3807_v32 = vmin.u32 %v365_v50, %v4612_v48  ;;  %v524_v25 = vshll.u32 %v7062_v61, %v521_v37  ;;  %v534_v54 = vshrl.u32 %v7055_v7, %v522_v57  ;;  %v527_v41 = vshll.u32 %v7068_v1, %v521_v37 }
  0xce   : > { %v4640_v12 = vshrl.u32 %v464_v60, 30  ;;  %v530_v42 = vshll.u32 %v7065_v3, %v521_v37  ;;  %v537_v36 = vshrl.u32 %v7053_v30, %v522_v57  ;;  %v533_v47 = vshll.u32 %v7058_v5, %v521_v37 }
  0xcf   : > { %v367_v0 = vclz %v3807_v32  ;;  %v526_v46 = vor.u32 %v525_v62, %v524_v25  ;;  %v3818_v59 = vadd.s32 4294967169, %v615_v2  ;;  %v529_v63 = vor.u32 %v528_v8, %v527_v41 }
  0xd0   : > { %v466_v43 = vshll.u32 %v4640_v12, 30  ;;  %v532_v50 = vor.u32 %v531_v34, %v530_v42  ;;  %v536_v60 = vshll.u32 %v7055_v7, %v521_v37  ;;  %v388_v32 = vsel %vm4621_vm14, 0, %v386_v9 }
  0xd1   : > { %v3808_v26 = vadd.s32 4294967294, %v367_v0  ;;  %v523_v17 = vshrl.u32 %v7062_v61, %v522_v57  ;;  %v535_v44 = vor.u32 %v534_v54, %v533_v47  ;;  %v489_v45 = vsub.s32 4, %v4640_v12 }
  0xd2   : > { %v4652_v18 = vsub.s32 %v463_v49, %v466_v43  ;;  %v538_v62 = vor.u32 %v537_v36, %v536_v60  ;;  %vm539_vm0 = vcmp.lt.s32.totalorder %v520_v6, 1  ;;  %vm541_vm2 = vcmp.lt.s32.totalorder %v520_v6, 3 }
  0xd3   : > { %vm3809_vm15 = vcmp.lt.s32.totalorder %v3808_v26, 0  ;;  %vm542_vm3 = vcmp.lt.s32.totalorder %v520_v6, 4  ;;  %v547_v49 = vsel %vm539_vm0, %v526_v46, %v529_v63  ;;  %v551_v0 = vsel %vm539_vm0, %v529_v63, %v532_v50 }
  0xd4   : > { %v370_v25 = vsel %vm3809_vm15, 0, %v3808_v26  ;;  %v469_v2 = vsub.s32 0, %v4652_v18  ;;  %v544_v34 = vsel %vm542_vm3, %v532_v50, 2102212464  ;;  %v548_v54 = vsel %vm542_vm3, %v535_v44, 920167782 }
  0xd5   : > { %v371_v37 = vsub.s32 32, %v370_v25  ;;  %v375_v8 = vsub.s32 4294967266, %v370_v25  ;;  %v372_v57 = vshll.u32 %v4612_v48, %v370_v25  ;;  %v549_v36 = vsel %vm541_vm2, %v532_v50, %v548_v54 }
  0xd6   : > { %v3811_v9 = vmin.u32 %v469_v2, %v4652_v18  ;;  %v552_v43 = vsel %vm542_vm3, %v538_v62, 1326507024  ;;  %vm4665_vm4 = vcmp.le.f32.partialorder %v403_v33, 0.7853982  ;;  %vm540_vm5 = vcmp.lt.s32.totalorder %v520_v6, 2 }
  0xd7   : > { %v373_v41 = vshrl.u32 %v355_v52, %v371_v37  ;;  %v376_v42 = vadd.s32 127, %v375_v8  ;;  %v543_v48 = vsel %vm539_vm0, %v523_v17, %v526_v46  ;;  %v545_v60 = vsel %vm541_vm2, %v529_v63, %v544_v34 }
  0xd8   : > { %v471_v26 = vclz %v3811_v9  ;;  %v550_v30 = vsel %vm540_vm5, %v547_v49, %v549_v36  ;;  %v553_v52 = vsel %vm541_vm2, %v535_v44, %v552_v43  ;;  %v546_v54 = vsel %vm540_vm5, %v543_v48, %v545_v60 }
  0xd9   : > { %v374_v25 = vor.u32 %v373_v41, %v372_v57  ;;  %v377_v2 = vshll.u32 %v376_v42, 23  ;;  %v554_v50 = vsel %vm540_vm5, %v551_v0, %v553_v52  ;;  %v392_v17 = vadd.s32 3, %v388_v32 }
  0xda   : > { %v3812_v37 = vadd.s32 4294967294, %v471_v26  ;;  %v4673_v62 = vmul.u32.u64.low %v4628_v55, %v550_v30  ;;  %v4674_v8 = vmul.u32.u64.high %v4628_v55, %v550_v30, %v4673_v62  ;;  %v459_v46 = vadd.s32 %v4583_v20, %v4589_v35 }
  0xdb   : > { %v378_v33 = vor.u32 4788187, %v377_v2  ;;  %v4677_v9 = vmul.u32.u64.low %v4628_v55, %v554_v50  ;;  %v4678_v7 = vmul.u32.u64.high %v4628_v55, %v554_v50, %v4677_v9  ;;  %v621_v63 = vadd.s32 1, %v3818_v59 }
  0xdc   : > { %vm3813_vm6 = vcmp.lt.s32.totalorder %v3812_v37, 0  ;;  %v381_v44 = vcvt.s32.f32 %v374_v25  ;;  %v490_v30 = vsel %vm405_vm1, %v489_v45, %v4640_v12  ;;  %v562_v0 = vmul.u32 %v4628_v55, %v546_v54 }
  0xdd   : > { %v379_v6 = vand.u32 2147483647, %v378_v33  ;;  %v474_v34 = vsel %vm3813_vm6, 0, %v3812_v37  ;;  %v565_v41 = vadd.s32 1, %v4674_v8  ;;  %vm564_vm7 = vc.u32 %v4678_v7, %v4673_v62 }
  0xde   : > { %v475_v49 = vsub.s32 32, %v474_v34  ;;  %v479_v57 = vsub.s32 4294967266, %v474_v34  ;;  %v476_v32 = vshll.u32 %v4652_v18, %v474_v34  ;;  %vm622_vm8 = vcmp.gt.s32.totalorder %v621_v63, 0 }
  0xdf   : > { %v382_v42 = vmul.f32 %v381_v44, %v379_v6  ;;  %v566_v59 = vsel %vm564_vm7, %v565_v41, %v4674_v8  ;;  %v623_v36 = vsel %vm622_vm8, %v621_v63, 0  ;;  %v492_v45 = vsel %vm4665_vm4, 0, %v490_v30 }
  0xe0   : > { %v477_v20 = vshrl.u32 %v459_v46, %v475_v49  ;;  %v480_v35 = vadd.s32 127, %v479_v57  ;;  %v567_v12 = vadd.s32 %v566_v59, %v562_v0  ;;  %v625_v26 = vand.u32 31, %v623_v36 }
  0xe1   : > { %v383_v43 = vxor.u32 2147483648, %v382_v42  ;;  %v4694_v55 = vmul.f32 %v4455_v13, %v4481_v23  ;;  %v4698_v18 = vmul.f32 %v4466_v16, %v4477_v22  ;;  %v715_v37 = vand.u32 2147483647, %v4616_v58 }
  0xe2   : > { %v478_v48 = vor.u32 %v477_v20, %v476_v32  ;;  %v481_v60 = vshll.u32 %v480_v35, 23  ;;  %v568_v2 = vadd.s32 536870912, %v567_v12  ;;  %v626_v52 = vsub.s32 32, %v625_v26 }
  0xe3   : > { %v384_v25 = vsel %vm301_vm13, %v383_v43, %v382_v42  ;;  %v4706_v8 = vand.u32 3, %v392_v17  ;;  %v4708_v54 = vadd.s32 3, %v492_v45  ;;  %v619_v46 = vor.u32 8388608, %v4633_v4 }
  0xe4   : > { %v387_v50 = vsel %vm4621_vm14, %v4492_v28, %v384_v25  ;;  %v482_v33 = vor.u32 4788187, %v481_v60  ;;  %v569_v9 = vshrl.u32 %v568_v2, 30  ;;  %v629_v63 = vshrl.u32 %v7068_v1, %v626_v52 }
  0xe5   : > { %4138 = vcosq.f32 %v387_v50  ;;  %v485_v44 = vcvt.s32.f32 %v478_v48  ;;  %v632_v34 = vshrl.u32 %v7065_v3, %v626_v52  ;;  %vm509_vm9 = vcmp.lt.s32.totalorder %v4506_v38, 0 }
  0xe6   : > { %4140 = vsinq.f32 %v387_v50  ;;  %v483_v6 = vand.u32 2147483647, %v482_v33  ;;  %v570_v51 = vshll.u32 %v569_v9, 30  ;;  %v4714_v30 = vshrl.u32 %v623_v36, 5 }
  0xe7   : > { %v628_v17 = vshll.u32 %v7062_v61, %v625_v26  ;;  %v635_v49 = vshrl.u32 %v7058_v5, %v626_v52  ;;  %v631_v0 = vshll.u32 %v7068_v1, %v625_v26  ;;  %v637_v4 = vshll.u32 %v7058_v5, %v625_v26 }
  0xe8   : > { %v486_v57 = vmul.f32 %v485_v44, %v483_v6  ;;  %v7076_v41 = vmov 920167782   ;;  %v4722_v32 = vadd.s32 %v4673_v62, %v4678_v7  ;;  %v4724_v20 = vsub.s32 %v567_v12, %v570_v51 }
  0xe9   : > { %v638_v42 = vshrl.u32 %v7076_v41, %v626_v52  ;;  %v630_v35 = vor.u32 %v629_v63, %v628_v17  ;;  %v634_v59 = vshll.u32 %v7065_v3, %v625_v26  ;;  %v633_v43 = vor.u32 %v632_v34, %v631_v0 }
  0xea   : > { %v487_v36 = vxor.u32 2147483648, %v486_v57  ;;  %v7077_v48 = vmov 1326507024   ;;  %v573_v25 = vsub.s32 0, %v4724_v20  ;;  %v640_v50 = vshll.u32 %v7076_v41, %v625_v26 }
  0xeb   : > { %v639_v45 = vor.u32 %v638_v42, %v637_v4  ;;  %v641_v60 = vshrl.u32 %v7077_v48, %v626_v52  ;;  %v636_v2 = vor.u32 %v635_v49, %v634_v59  ;;  %v4730_v33 = vshll.u32 %v619_v46, 8 }
  0xec   : > { %vm398_vm10 = vcmp.eq.s32.totalorder %v4706_v8, 2  ;;  %v488_v7 = vsel %vm405_vm1, %v487_v36, %v486_v57  ;;  %v593_v62 = vsub.s32 4, %v569_v9  ;;  %vm643_vm11 = vcmp.lt.s32.totalorder %v4714_v30, 1 }
  0xed   : > { %v718_v12 = vand.u32 2139095040, %v4616_v58  ;;  %vm395_vm12 = vcmp.eq.s32.totalorder %v4706_v8, 0  ;;  %v491_v63 = vsel %vm4665_vm4, %v4495_v29, %v488_v7  ;;  %v3815_v26 = vmin.u32 %v573_v25, %v4724_v20 }
  0xee   : > { %v642_v46 = vor.u32 %v641_v60, %v640_v50  ;;  %vm646_vm13 = vcmp.lt.s32.totalorder %v4714_v30, 4  ;;  %vm394_vm14 = vcmp.lt.s32.totalorder %v4706_v8, 2  ;;  %4142 = vcosq.f32 %v491_v63 }
  0xef   : > { %v627_v6 = vshrl.u32 %v7062_v61, %v626_v52  ;;  %v651_v44 = vsel %vm643_vm11, %v630_v35, %v633_v43  ;;  %v652_v34 = vsel %vm646_vm13, %v639_v45, 920167782  ;;  %vm391_vm15 = vweird.f32 %v4492_v28 }
  0xf0   : > { %4144 = vsinq.f32 %v491_v63  ;;  %v7078_v47 = vand.u32 2147483647, %v4506_v38  ;;  %v575_v17 = vclz %v3815_v26  ;;  %vm645_vm1 = vcmp.lt.s32.totalorder %v4714_v30, 3 }
  0xf1   : > { %v648_v52 = vsel %vm646_vm13, %v636_v2, 2102212464  ;;  %v594_v49 = vsel %vm509_vm9, %v593_v62, %v569_v9  ;;  %vm644_vm2 = vcmp.lt.s32.totalorder %v4714_v30, 2  ;;  %v653_v57 = vsel %vm645_vm1, %v636_v2, %v652_v34 }
  0xf2   : > { %vm4752_vm0 = vcmp.le.f32.partialorder %v7078_v47, 0.7853982  ;;  %v655_v0 = vsel %vm643_vm11, %v633_v43, %v636_v2  ;;  %v3816_v4 = vadd.s32 4294967294, %v575_v17  ;;  %v647_v42 = vsel %vm643_vm11, %v627_v6, %v630_v35  ;;  %v4139_v60 = vpop.eup %4138 }
  0xf3   : > { %v654_v59 = vsel %vm644_vm2, %v651_v44, %v653_v57  ;;  %v656_v36 = vsel %vm646_vm13, %v642_v46, 1326507024  ;;  %v649_v25 = vsel %vm645_vm1, %v633_v43, %v648_v52  ;;  %v4141_v62 = vpop.eup %4140  ;;  %v399_v2 = vxor.u32 2147483648, %v4139_v60 }
  0xf4   : > { %v657_v50 = vsel %vm645_vm1, %v639_v45, %v656_v36  ;;  %v4772_v9 = vmul.u32.u64.low %v4730_v33, %v654_v59  ;;  %v4773_v7 = vmul.u32.u64.high %v4730_v33, %v654_v59, %v4772_v9  ;;  %vm3817_vm3 = vcmp.lt.s32.totalorder %v3816_v4, 0 }
  0xf5   : > { %v658_v35 = vsel %vm644_vm2, %v655_v0, %v657_v50  ;;  %v719_v63 = vshrl.u32 %v718_v12, 23  ;;  %v396_v26 = vxor.u32 2147483648, %v4141_v62  ;;  %v578_v6 = vsel %vm3817_vm3, 0, %v3816_v4 }
  0xf6   : > { %v4781_v46 = vmul.u32.u64.low %v4730_v33, %v658_v35  ;;  %v4782_v43 = vmul.u32.u64.high %v4730_v33, %v658_v35, %v4781_v46  ;;  %v400_v45 = vsel %vm398_vm10, %v399_v2, %v4141_v62  ;;  %v579_v44 = vsub.s32 32, %v578_v6 }
  0xf7   : > { %v583_v34 = vsub.s32 4294967266, %v578_v6  ;;  %v650_v47 = vsel %vm644_vm2, %v647_v42, %v649_v25  ;;  %v397_v17 = vsel %vm395_vm12, %v4139_v60, %v396_v26  ;;  %v497_v52 = vand.u32 3, %v4708_v54  ;;  %v4821_v46 = vpop.permute.xlu0 %264 }
  0xf8   : > { %v669_v12 = vadd.s32 1, %v4773_v7  ;;  %v3822_v57 = vadd.s32 4294967169, %v719_v63  ;;  %v401_v0 = vsel %vm394_vm14, %v397_v17, %v400_v45  ;;  %v580_v4 = vshll.u32 %v4724_v20, %v578_v6 }
  0xf9   : > { %v581_v59 = vshrl.u32 %v4722_v32, %v579_v44  ;;  %v584_v36 = vadd.s32 127, %v583_v34  ;;  %v402_v30 = vsel %vm391_vm15, nan, %v401_v0  ;;  %v596_v42 = vsel %vm4752_vm0, 0, %v594_v49 }
  0xfa   : > { %v666_v60 = vmul.u32 %v4730_v33, %v650_v47  ;;  %vm668_vm4 = vc.u32 %v4782_v43, %v4772_v9  ;;  %v725_v50 = vadd.s32 1, %v3822_v57  ;;  %1963 = vst [vmem:[%s4804_s28] sm:$0xff] %v402_v30  ;;  %v4809_v28 = vmul.f32 %v4466_v16, %v4481_v23 }
  0xfb   : > { %v582_v54 = vor.u32 %v581_v59, %v580_v4  ;;  %v585_v25 = vshll.u32 %v584_v36, 23  ;;  %v670_v8 = vsel %vm668_vm4, %v669_v12, %v4773_v7  ;;  %v4813_v32 = vmul.f32 %v4470_v19, %v4477_v22  ;;  %v4143_v49 = vpop.eup %4142 }
  0xfc   : > { %v671_v20 = vadd.s32 %v670_v8, %v666_v60  ;;  %v722_v33 = vand.u32 8388607, %v715_v37  ;;  %v4819_v7 = vadd.f32 %v4595_v40, %v4606_v39  ;;  %vm502_vm5 = vcmp.eq.s32.totalorder %v497_v52, 2 }
  0xfd   : > { %v586_v62 = vor.u32 4788187, %v585_v25  ;;  %vm726_vm6 = vcmp.gt.s32.totalorder %v725_v50, 0  ;;  %v4145_v2 = vpop.eup %4144  ;;  %v503_v35 = vxor.u32 2147483648, %v4143_v49  ;;  %v600_v63 = vadd.s32 3, %v596_v42 }
  0xfe   : > { %v672_v26 = vadd.s32 536870912, %v671_v20  ;;  %v727_v6 = vsel %vm726_vm6, %v725_v50, 0  ;;  %v500_v45 = vxor.u32 2147483648, %v4145_v2  ;;  %v589_v34 = vcvt.s32.f32 %v582_v54 }
  0xff   : > { %v587_v44 = vand.u32 2147483647, %v586_v62  ;;  %v729_v47 = vand.u32 31, %v727_v6  ;;  %vm499_vm7 = vcmp.eq.s32.totalorder %v497_v52, 0  ;;  %v504_v17 = vsel %vm502_vm5, %v503_v35, %v4145_v2 }
 0x100   : > { %v4823_v12 = vshrl.u32 %v672_v26, 30  ;;  %v723_v39 = vor.u32 8388608, %v722_v33  ;;  %vm498_vm8 = vcmp.lt.s32.totalorder %v497_v52, 2  ;;  %v501_v57 = vsel %vm499_vm7, %v4143_v49, %v500_v45 }
 0x101   : > { %v590_v0 = vmul.f32 %v589_v34, %v587_v44  ;;  %v730_v4 = vsub.s32 32, %v729_v47  ;;  %v4827_v59 = vadd.f32 %v4821_v46, %v4610_v56  ;;  %vm495_vm10 = vweird.f32 %v4495_v29 }
 0x102   : > { %v505_v36 = vsel %vm498_vm8, %v501_v57, %v504_v17  ;;  %v674_v30 = vshll.u32 %v4823_v12, 30  ;;  %v4831_v54 = vand.u32 3, %v600_v63  ;;  %v4837_v50 = vshll.u32 %v723_v39, 8 }
 0x103   : > { %v506_v42 = vsel %vm495_vm10, nan, %v505_v36  ;;  %v591_v60 = vxor.u32 2147483648, %v590_v0  ;;  %v733_v25 = vshrl.u32 %v7068_v1, %v730_v4  ;;  %v736_v8 = vshrl.u32 %v7065_v3, %v730_v4 }
 0x104   : > { %v4834_v52 = vsub.s32 %v671_v20, %v674_v30  ;;  %v822_v56 = vand.u32 2139095040, %v4819_v7  ;;  %1964 = vst [vmem:[%s4804_s28 + $0x8] sm:$0xff] %v506_v42  ;;  %v728_v33 = vshrl.u32 %v727_v6, 5  ;;  %v732_v49 = vshll.u32 %v7062_v61, %v729_v47 }
 0x105   : > { %v592_v29 = vsel %vm509_vm9, %v591_v60, %v590_v0  ;;  %v739_v62 = vshrl.u32 %v7058_v5, %v730_v4  ;;  %v735_v35 = vshll.u32 %v7068_v1, %v729_v47  ;;  %v738_v63 = vshll.u32 %v7065_v3, %v729_v47 }
 0x106   : > { %v595_v20 = vsel %vm4752_vm0, %v4506_v38, %v592_v29  ;;  %v677_v2 = vsub.s32 0, %v4834_v52  ;;  %v734_v26 = vor.u32 %v733_v25, %v732_v49  ;;  %v741_v45 = vshll.u32 %v7058_v5, %v729_v47 }
 0x107   : > { %4146 = vcosq.f32 %v595_v20  ;;  %v742_v6 = vshrl.u32 %v7076_v41, %v730_v4  ;;  %v737_v34 = vor.u32 %v736_v8, %v735_v35  ;;  %v740_v17 = vor.u32 %v739_v62, %v738_v63 }
 0x108   : > { %4148 = vsinq.f32 %v595_v20  ;;  %v3819_v44 = vmin.u32 %v677_v2, %v4834_v52  ;;  %v744_v51 = vshll.u32 %v7076_v41, %v729_v47  ;;  %v745_v57 = vshrl.u32 %v7077_v48, %v730_v4 }
 0x109   : > { %v743_v39 = vor.u32 %v742_v6, %v741_v45  ;;  %v823_v0 = vshrl.u32 %v822_v56, 23  ;;  %vm613_vm9 = vcmp.lt.s32.totalorder %v4517_v53, 0  ;;  %v697_v30 = vsub.s32 4, %v4823_v12 }
 0x10a   : > { %v679_v36 = vclz %v3819_v44  ;;  %v731_v42 = vshrl.u32 %v7062_v61, %v730_v4  ;;  %vm747_vm11 = vcmp.lt.s32.totalorder %v728_v33, 1  ;;  %v746_v60 = vor.u32 %v745_v57, %v744_v51 }
 0x10b   : > { %vm748_vm12 = vcmp.lt.s32.totalorder %v728_v33, 2  ;;  %vm749_vm13 = vcmp.lt.s32.totalorder %v728_v33, 3  ;;  %vm750_vm14 = vcmp.lt.s32.totalorder %v728_v33, 4  ;;  %v755_v29 = vsel %vm747_vm11, %v734_v26, %v737_v34 }
 0x10c   : > { %v3820_v25 = vadd.s32 4294967294, %v679_v36  ;;  %v752_v8 = vsel %vm750_vm14, %v740_v17, 2102212464  ;;  %v756_v49 = vsel %vm750_vm14, %v743_v39, 920167782  ;;  %v751_v62 = vsel %vm747_vm11, %v731_v42, %v734_v26 }
 0x10d   : > { %v7081_v47 = vand.u32 2147483647, %v4517_v53  ;;  %v757_v20 = vsel %vm749_vm13, %v740_v17, %v756_v49  ;;  %v759_v2 = vsel %vm747_vm11, %v737_v34, %v740_v17  ;;  %v760_v35 = vsel %vm750_vm14, %v746_v60, 1326507024 }
 0x10e   : > { %vm3821_vm0 = vcmp.lt.s32.totalorder %v3820_v25, 0  ;;  %v753_v4 = vsel %vm749_vm13, %v737_v34, %v752_v8  ;;  %v758_v63 = vsel %vm748_vm12, %v755_v29, %v757_v20  ;;  %v761_v45 = vsel %vm749_vm13, %v743_v39, %v760_v35 }
 0x10f   : > { %vm4861_vm15 = vcmp.le.f32.partialorder %v7081_v47, 0.7853982  ;;  %v682_v6 = vsel %vm3821_vm0, 0, %v3820_v25  ;;  %v762_v44 = vsel %vm748_vm12, %v759_v2, %v761_v45  ;;  %v667_v36 = vadd.s32 %v4772_v9, %v4782_v43 }
 0x110   : > { %v4868_v51 = vmul.u32.u64.low %v4837_v50, %v758_v63  ;;  %v4869_v57 = vmul.u32.u64.high %v4837_v50, %v758_v63, %v4868_v51  ;;  %v683_v26 = vsub.s32 32, %v682_v6  ;;  %v687_v42 = vsub.s32 4294967266, %v682_v6 }
 0x111   : > { %v819_v17 = vand.u32 2147483647, %v4819_v7  ;;  %vm602_vm1 = vcmp.lt.s32.totalorder %v4831_v54, 2  ;;  %v4877_v34 = vmul.u32.u64.low %v4837_v50, %v762_v44  ;;  %v4878_v39 = vmul.u32.u64.high %v4837_v50, %v762_v44, %v4877_v34 }
 0x112   : > { %v3826_v60 = vadd.s32 4294967169, %v823_v0  ;;  %v684_v25 = vshll.u32 %v4834_v52, %v682_v6  ;;  %v685_v8 = vshrl.u32 %v667_v36, %v683_v26  ;;  %v688_v29 = vadd.s32 127, %v687_v42 }
 0x113   : > { %v754_v49 = vsel %vm748_vm12, %v751_v62, %v753_v4  ;;  %vm603_vm2 = vcmp.eq.s32.totalorder %v4831_v54, 0  ;;  %v698_v9 = vsel %vm613_vm9, %v697_v30, %v4823_v12  ;;  %v773_v43 = vadd.s32 1, %v4869_v57 }
 0x114   : > { %v829_v47 = vadd.s32 1, %v3826_v60  ;;  %v4147_v20 = vpop.eup %4146  ;;  %vm606_vm3 = vcmp.eq.s32.totalorder %v4831_v54, 2  ;;  %v686_v2 = vor.u32 %v685_v8, %v684_v25  ;;  %v689_v0 = vshll.u32 %v688_v29, 23 }
 0x115   : > { %v826_v52 = vand.u32 8388607, %v819_v17  ;;  %v4149_v35 = vpop.eup %4148  ;;  %v607_v33 = vxor.u32 2147483648, %v4147_v20  ;;  %v770_v62 = vmul.u32 %v4837_v50, %v754_v49  ;;  %vm772_vm4 = vc.u32 %v4878_v39, %v4868_v51 }
 0x116   : > { %vm830_vm5 = vcmp.gt.s32.totalorder %v829_v47, 0  ;;  %v604_v12 = vxor.u32 2147483648, %v4149_v35  ;;  %v690_v30 = vor.u32 4788187, %v689_v0  ;;  %v700_v4 = vsel %vm4861_vm15, 0, %v698_v9 }
 0x117   : > { %v774_v63 = vsel %vm772_vm4, %v773_v43, %v4869_v57  ;;  %v608_v45 = vsel %vm606_vm3, %v607_v33, %v4149_v35  ;;  %v831_v44 = vsel %vm830_vm5, %v829_v47, 0  ;;  %v926_v36 = vand.u32 2139095040, %v4827_v59 }
 0x118   : > { %v775_v6 = vadd.s32 %v774_v63, %v770_v62  ;;  %v605_v26 = vsel %vm603_vm2, %v4147_v20, %v604_v12  ;;  %v691_v50 = vand.u32 2147483647, %v690_v30  ;;  %v693_v42 = vcvt.s32.f32 %v686_v2 }
 0x119   : > { %v833_v34 = vand.u32 31, %v831_v44  ;;  %v4901_v60 = vmul.f32 %v4470_v19, %v4481_v23  ;;  %vm599_vm6 = vweird.f32 %v4506_v38  ;;  %v609_v57 = vsel %vm602_vm1, %v605_v26, %v608_v45 }
 0x11a   : > { %v776_v25 = vadd.s32 536870912, %v775_v6  ;;  %v610_v8 = vsel %vm599_vm6, nan, %v609_v57  ;;  %v694_v29 = vmul.f32 %v693_v42, %v691_v50  ;;  %v704_v49 = vadd.s32 3, %v700_v4 }
 0x11b   : > { %v834_v9 = vsub.s32 32, %v833_v34  ;;  %v827_v47 = vor.u32 8388608, %v826_v52  ;;  %v836_v20 = vshll.u32 %v7062_v61, %v833_v34  ;;  %v927_v2 = vshrl.u32 %v926_v36, 23  ;;  %1965 = vst [vmem:[%s4804_s28 + $0x10] sm:$0xff] %v610_v8 }
 0x11c   : > { %v4906_v43 = vshrl.u32 %v776_v25, 30  ;;  %v695_v0 = vxor.u32 2147483648, %v694_v29  ;;  %v839_v38 = vshll.u32 %v7068_v1, %v833_v34  ;;  %v842_v62 = vshll.u32 %v7065_v3, %v833_v34 }
 0x11d   : > { %v837_v35 = vshrl.u32 %v7068_v1, %v834_v9  ;;  %v840_v54 = vshrl.u32 %v7065_v3, %v834_v9  ;;  %v843_v12 = vshrl.u32 %v7058_v5, %v834_v9  ;;  %v846_v30 = vshrl.u32 %v7076_v41, %v834_v9 }
 0x11e   : > { %v778_v33 = vshll.u32 %v4906_v43, 30  ;;  %v696_v52 = vsel %vm613_vm9, %v695_v0, %v694_v29  ;;  %v832_v4 = vshrl.u32 %v831_v44, 5  ;;  %v845_v45 = vshll.u32 %v7058_v5, %v833_v34 }
 0x11f   : > { %v838_v63 = vor.u32 %v837_v35, %v836_v20  ;;  %v699_v36 = vsel %vm4861_vm15, %v4517_v53, %v696_v52  ;;  %v841_v50 = vor.u32 %v840_v54, %v839_v38  ;;  %v844_v42 = vor.u32 %v843_v12, %v842_v62 }
 0x120   : > { %v4923_v26 = vsub.s32 %v775_v6, %v778_v33  ;;  %4150 = vcosq.f32 %v699_v36  ;;  %v847_v57 = vor.u32 %v846_v30, %v845_v45  ;;  %v848_v25 = vshll.u32 %v7076_v41, %v833_v34 }
 0x121   : > { %v849_v8 = vshrl.u32 %v7077_v48, %v834_v9  ;;  %v4929_v44 = vmul.f32 %v4473_v21, %v4477_v22  ;;  %v4933_v29 = vmul.f32 %v4473_v21, %v4481_v23  ;;  %4152 = vsinq.f32 %v699_v36 }
 0x122   : > { %v781_v56 = vsub.s32 0, %v4923_v26  ;;  %v4938_v6 = vadd.f32 %v4821_v46, %v4694_v55  ;;  %v4940_v20 = vand.u32 3, %v704_v49  ;;  %vm854_vm7 = vcmp.lt.s32.totalorder %v832_v4, 4 }
 0x123   : > { %v850_v34 = vor.u32 %v849_v8, %v848_v25  ;;  %vm851_vm8 = vcmp.lt.s32.totalorder %v832_v4, 1  ;;  %v856_v35 = vsel %vm854_vm7, %v844_v42, 2102212464  ;;  %v867_v38 = vshll.u32 %v827_v47, 8 }
 0x124   : > { %v3823_v0 = vmin.u32 %v781_v56, %v4923_v26  ;;  %v835_v54 = vshrl.u32 %v7062_v61, %v834_v9  ;;  %v859_v33 = vsel %vm851_vm8, %v838_v63, %v841_v50  ;;  %v860_v62 = vsel %vm854_vm7, %v847_v57, 920167782 }
 0x125   : > { %v3830_v12 = vadd.s32 4294967169, %v927_v2  ;;  %vm852_vm10 = vcmp.lt.s32.totalorder %v832_v4, 2  ;;  %vm853_vm9 = vcmp.lt.s32.totalorder %v832_v4, 3  ;;  %v863_v55 = vsel %vm851_vm8, %v841_v50, %v844_v42 }
 0x126   : > { %v783_v30 = vclz %v3823_v0  ;;  %v855_v49 = vsel %vm851_vm8, %v835_v54, %v838_v63  ;;  %v857_v52 = vsel %vm853_vm9, %v841_v50, %v856_v35  ;;  %v861_v45 = vsel %vm853_vm9, %v844_v42, %v860_v62 }
 0x127   : > { %v864_v36 = vsel %vm854_vm7, %v850_v34, 1326507024  ;;  %vm717_vm11 = vcmp.lt.s32.totalorder %v4616_v58, 0  ;;  %v862_v47 = vsel %vm852_vm10, %v859_v33, %v861_v45  ;;  %vm4951_vm12 = vcmp.le.f32.partialorder %v715_v37, 0.7853982 }
 0x128   : > { %v3824_v25 = vadd.s32 4294967294, %v783_v30  ;;  %v865_v8 = vsel %vm853_vm9, %v847_v57, %v864_v36  ;;  %v4956_v56 = vmul.u32.u64.low %v867_v38, %v862_v47  ;;  %v4957_v63 = vmul.u32.u64.high %v867_v38, %v862_v47, %v4956_v56 }
 0x129   : > { %v866_v2 = vsel %vm852_vm10, %v863_v55, %v865_v8  ;;  %v933_v50 = vadd.s32 1, %v3830_v12  ;;  %v858_v42 = vsel %vm852_vm10, %v855_v49, %v857_v52  ;;  %vm703_vm14 = vweird.f32 %v4517_v53 }
 0x12a   : > { %vm3825_vm13 = vcmp.lt.s32.totalorder %v3824_v25, 0  ;;  %v4961_v34 = vmul.u32.u64.low %v867_v38, %v866_v2  ;;  %v4962_v0 = vmul.u32.u64.high %v867_v38, %v866_v2, %v4961_v34  ;;  %vm710_vm15 = vcmp.eq.s32.totalorder %v4940_v20, 2 }
 0x12b   : > { %v786_v37 = vsel %vm3825_vm13, 0, %v3824_v25  ;;  %v801_v57 = vsub.s32 4, %v4906_v43  ;;  %vm934_vm0 = vcmp.gt.s32.totalorder %v933_v50, 0  ;;  %v771_v35 = vadd.s32 %v4868_v51, %v4878_v39 }
 0x12c   : > { %v787_v54 = vsub.s32 32, %v786_v37  ;;  %v791_v33 = vsub.s32 4294967266, %v786_v37  ;;  %v935_v62 = vsel %vm934_vm0, %v933_v50, 0  ;;  %v874_v12 = vmul.u32 %v867_v38, %v858_v42 }
 0x12d   : > { %v877_v4 = vadd.s32 1, %v4957_v63  ;;  %v7057_v30 = vand.u32 2147483647, %v4827_v59  ;;  %v937_v55 = vand.u32 31, %v935_v62  ;;  %v4151_v49 = vpop.eup %4150  ;;  %v788_v52 = vshll.u32 %v4923_v26, %v786_v37 }
 0x12e   : > { %v789_v45 = vshrl.u32 %v771_v35, %v787_v54  ;;  %v792_v36 = vadd.s32 127, %v791_v33  ;;  %vm876_vm1 = vc.u32 %v4962_v0, %v4956_v56  ;;  %v4153_v25 = vpop.eup %4152  ;;  %v711_v47 = vxor.u32 2147483648, %v4151_v49 }
 0x12f   : > { %v802_v51 = vsel %vm717_vm11, %v801_v57, %v4906_v43  ;;  %v878_v39 = vsel %vm876_vm1, %v877_v4, %v4957_v63  ;;  %v938_v38 = vsub.s32 32, %v937_v55  ;;  %v708_v8 = vxor.u32 2147483648, %v4153_v25 }
 0x130   : > { %v790_v2 = vor.u32 %v789_v45, %v788_v52  ;;  %v793_v50 = vshll.u32 %v792_v36, 23  ;;  %v879_v42 = vadd.s32 %v878_v39, %v874_v12  ;;  %vm706_vm2 = vcmp.lt.s32.totalorder %v4940_v20, 2 }
 0x131   : > { %vm707_vm3 = vcmp.eq.s32.totalorder %v4940_v20, 0  ;;  %v712_v26 = vsel %vm710_vm15, %v711_v47, %v4153_v25  ;;  %v930_v34 = vand.u32 8388607, %v7057_v30  ;;  %v804_v63 = vsel %vm4951_vm12, 0, %v802_v51  ;;  %v4995_v51 = vpop.permute.xlu1 %268 }
 0x132   : > { %v709_v37 = vsel %vm707_vm3, %v4151_v49, %v708_v8  ;;  %v794_v43 = vor.u32 4788187, %v793_v50  ;;  %v880_v57 = vadd.s32 536870912, %v879_v42  ;;  %v797_v54 = vcvt.s32.f32 %v790_v2 }
 0x133   : > { %v713_v35 = vsel %vm706_vm2, %v709_v37, %v712_v26  ;;  %v941_v33 = vshrl.u32 %v7068_v1, %v938_v38  ;;  %v944_v12 = vshrl.u32 %v7065_v3, %v938_v38  ;;  %v947_v45 = vshrl.u32 %v7058_v5, %v938_v38 }
 0x134   : > { %v714_v20 = vsel %vm703_vm14, nan, %v713_v35  ;;  %v795_v4 = vand.u32 2147483647, %v794_v43  ;;  %v881_v52 = vshrl.u32 %v880_v57, 30  ;;  %v936_v49 = vshrl.u32 %v935_v62, 5 }
 0x135   : > { %v940_v36 = vshll.u32 %v7062_v61, %v937_v55  ;;  %v949_v25 = vshll.u32 %v7058_v5, %v937_v55  ;;  %v950_v47 = vshrl.u32 %v7076_v41, %v938_v38  ;;  %1966 = vst [vmem:[%s4804_s28 + $0x18] sm:$0xff] %v714_v20  ;;  %v943_v2 = vshll.u32 %v7068_v1, %v937_v55 }
 0x136   : > { %v798_v39 = vmul.f32 %v797_v54, %v795_v4  ;;  %v882_v8 = vshll.u32 %v881_v52, 30  ;;  %v946_v53 = vshll.u32 %v7065_v3, %v937_v55  ;;  %v952_v37 = vshll.u32 %v7076_v41, %v937_v55 }
 0x137   : > { %v942_v50 = vor.u32 %v941_v33, %v940_v36  ;;  %v951_v26 = vor.u32 %v950_v47, %v949_v25  ;;  %v953_v62 = vshrl.u32 %v7077_v48, %v938_v38  ;;  %v945_v35 = vor.u32 %v944_v12, %v943_v2 }
 0x138   : > { %v799_v43 = vxor.u32 2147483648, %v798_v39  ;;  %v5001_v57 = vsub.s32 %v879_v42, %v882_v8  ;;  %v948_v30 = vor.u32 %v947_v45, %v946_v53  ;;  %v5005_v20 = vadd.f32 %v4995_v51, %v4698_v18 }
 0x139   : > { %v808_v54 = vadd.s32 3, %v804_v63  ;;  %v931_v4 = vor.u32 8388608, %v930_v34  ;;  %v954_v5 = vor.u32 %v953_v62, %v952_v37  ;;  %v939_v55 = vshrl.u32 %v7062_v61, %v938_v38 }
 0x13a   : > { %v800_v33 = vsel %vm717_vm11, %v799_v43, %v798_v39  ;;  %v885_v36 = vsub.s32 0, %v5001_v57  ;;  %vm958_vm4 = vcmp.lt.s32.totalorder %v936_v49, 4  ;;  %vm955_vm5 = vcmp.lt.s32.totalorder %v936_v49, 1 }
 0x13b   : > { %v803_v42 = vsel %vm4951_vm12, %v4616_v58, %v800_v33  ;;  %vm957_vm6 = vcmp.lt.s32.totalorder %v936_v49, 3  ;;  %v964_v12 = vsel %vm958_vm4, %v951_v26, 920167782  ;;  %v960_v34 = vsel %vm958_vm4, %v948_v30, 2102212464 }
 0x13c   : > { %4154 = vcosq.f32 %v803_v42  ;;  %v3827_v18 = vmin.u32 %v885_v36, %v5001_v57  ;;  %v963_v63 = vsel %vm955_vm5, %v942_v50, %v945_v35  ;;  %v965_v45 = vsel %vm957_vm6, %v948_v30, %v964_v12 }
 0x13d   : > { %4156 = vsinq.f32 %v803_v42  ;;  %v967_v25 = vsel %vm955_vm5, %v945_v35, %v948_v30  ;;  %v968_v47 = vsel %vm958_vm4, %v954_v5, 1326507024  ;;  %v905_v38 = vsub.s32 4, %v881_v52 }
 0x13e   : > { %v887_v39 = vclz %v3827_v18  ;;  %vm956_vm7 = vcmp.lt.s32.totalorder %v936_v49, 2  ;;  %v971_v8 = vshll.u32 %v931_v4, 8  ;;  %v959_v2 = vsel %vm955_vm5, %v939_v55, %v942_v50 }
 0x13f   : > { %v961_v9 = vsel %vm957_vm6, %v945_v35, %v960_v34  ;;  %v966_v53 = vsel %vm956_vm7, %v963_v63, %v965_v45  ;;  %v969_v37 = vsel %vm957_vm6, %v951_v26, %v968_v47  ;;  %vm821_vm8 = vcmp.lt.s32.totalorder %v4819_v7, 0 }
 0x140   : > { %v3828_v62 = vadd.s32 4294967294, %v887_v39  ;;  %v970_v43 = vsel %vm956_vm7, %v967_v25, %v969_v37  ;;  %v5018_v33 = vmul.u32.u64.low %v971_v8, %v966_v53  ;;  %v5019_v36 = vmul.u32.u64.high %v971_v8, %v966_v53, %v5018_v33 }
 0x141   : > { %v5022_v42 = vmul.u32.u64.low %v971_v8, %v970_v43  ;;  %v5023_v30 = vmul.u32.u64.high %v971_v8, %v970_v43, %v5022_v42  ;;  %v1030_v5 = vand.u32 2139095040, %v4938_v6  ;;  %vm5028_vm10 = vcmp.le.f32.partialorder %v819_v17, 0.7853982 }
 0x142   : > { %vm3829_vm9 = vcmp.lt.s32.totalorder %v3828_v62, 0  ;;  %v906_v49 = vsel %vm821_vm8, %v905_v38, %v881_v52  ;;  %v962_v26 = vsel %vm956_vm7, %v959_v2, %v961_v9  ;;  %v809_v35 = vand.u32 3, %v808_v54 }
 0x143   : > { %v890_v4 = vsel %vm3829_vm9, 0, %v3828_v62  ;;  %v7061_v55 = vand.u32 2147483647, %v4938_v6  ;;  %v1031_v12 = vshrl.u32 %v1030_v5, 23  ;;  %v875_v18 = vadd.s32 %v4956_v56, %v4962_v0 }
 0x144   : > { %v891_v34 = vsub.s32 32, %v890_v4  ;;  %v895_v63 = vsub.s32 4294967266, %v890_v4  ;;  %v981_v17 = vadd.s32 1, %v5019_v36  ;;  %v908_v45 = vsel %vm5028_vm10, 0, %v906_v49 }
 0x145   : > { %v978_v25 = vmul.u32 %v971_v8, %v962_v26  ;;  %vm980_vm11 = vc.u32 %v5023_v30, %v5018_v33  ;;  %v3834_v52 = vadd.s32 4294967169, %v1031_v12  ;;  %v892_v54 = vshll.u32 %v5001_v57, %v890_v4 }
 0x146   : > { %v893_v47 = vshrl.u32 %v875_v18, %v891_v34  ;;  %v896_v39 = vadd.s32 127, %v895_v63  ;;  %v982_v38 = vsel %vm980_vm11, %v981_v17, %v5019_v36  ;;  %v5045_v56 = vadd.f32 %v4995_v51, %v4809_v28 }
 0x147   : > { %vm807_vm12 = vweird.f32 %v4616_v58  ;;  %v983_v0 = vadd.s32 %v982_v38, %v978_v25  ;;  %v1037_v2 = vadd.s32 1, %v3834_v52  ;;  %vm810_vm13 = vcmp.lt.s32.totalorder %v809_v35, 2 }
 0x148   : > { %v894_v9 = vor.u32 %v893_v47, %v892_v54  ;;  %v897_v8 = vshll.u32 %v896_v39, 23  ;;  %v912_v53 = vadd.s32 3, %v908_v45  ;;  %vm811_vm14 = vcmp.eq.s32.totalorder %v809_v35, 0 }
 0x149   : > { %v4155_v37 = vpop.eup %4154  ;;  %v984_v62 = vadd.s32 536870912, %v983_v0  ;;  %vm1038_vm15 = vcmp.gt.s32.totalorder %v1037_v2, 0  ;;  %v1134_v57 = vand.u32 2139095040, %v5005_v20  ;;  %v1034_v28 = vand.u32 8388607, %v7061_v55 }
 0x14a   : > { %v4157_v43 = vpop.eup %4156  ;;  %v815_v36 = vxor.u32 2147483648, %v4155_v37  ;;  %v898_v42 = vor.u32 4788187, %v897_v8  ;;  %v1039_v5 = vsel %vm1038_vm15, %v1037_v2, 0  ;;  %vm814_vm0 = vcmp.eq.s32.totalorder %v809_v35, 2 }
 0x14b   : > { %v812_v49 = vxor.u32 2147483648, %v4157_v43  ;;  %v5051_v26 = vshrl.u32 %v984_v62, 30  ;;  %v1041_v4 = vand.u32 31, %v1039_v5  ;;  %v901_v34 = vcvt.s32.f32 %v894_v9 }
 0x14c   : > { %v816_v12 = vsel %vm814_vm0, %v815_v36, %v4157_v43  ;;  %v899_v18 = vand.u32 2147483647, %v898_v42  ;;  %v5053_v63 = vand.u32 3, %v912_v53  ;;  %v1135_v52 = vshrl.u32 %v1134_v57, 23 }
 0x14d   : > { %v813_v17 = vsel %vm811_vm14, %v4155_v37, %v812_v49  ;;  %v986_v45 = vshll.u32 %v5051_v26, 30  ;;  %v1042_v25 = vsub.s32 32, %v1041_v4  ;;  %v1035_v39 = vor.u32 8388608, %v1034_v28 }
 0x14e   : > { %v817_v54 = vsel %vm810_vm13, %v813_v17, %v816_v12  ;;  %v902_v47 = vmul.f32 %v901_v34, %v899_v18  ;;  %v7060_v38 = vand.u32 2147483647, %v5005_v20  ;;  %v979_v9 = vadd.s32 %v5018_v33, %v5023_v30 }
 0x14f   : > { %v818_v2 = vsel %vm807_vm12, nan, %v817_v54  ;;  %v5062_v8 = vsub.s32 %v983_v0, %v986_v45  ;;  %v1044_v53 = vshll.u32 %v7062_v61, %v1041_v4  ;;  %v1045_v62 = vshrl.u32 %v7068_v1, %v1042_v25 }
 0x150   : > { %v903_v37 = vxor.u32 2147483648, %v902_v47  ;;  %v1047_v57 = vshll.u32 %v7068_v1, %v1041_v4  ;;  %v1048_v35 = vshrl.u32 %v7065_v3, %v1042_v25  ;;  %1967 = vst [vmem:[%s4804_s28 + $0x20] sm:$0xff] %v818_v2  ;;  %v1050_v36 = vshll.u32 %v7065_v3, %v1041_v4 }
 0x151   : > { %v989_v43 = vsub.s32 0, %v5062_v8  ;;  %v7088_v58 = vmov 2102212464   ;;  %v3838_v28 = vadd.s32 4294967169, %v1135_v52  ;;  %v1040_v30 = vshrl.u32 %v1039_v5, 5 }
 0x152   : > { %v1051_v42 = vshrl.u32 %v7088_v58, %v1042_v25  ;;  %v904_v33 = vsel %vm821_vm8, %v903_v37, %v902_v47  ;;  %v1046_v0 = vor.u32 %v1045_v62, %v1044_v53  ;;  %v1049_v49 = vor.u32 %v1048_v35, %v1047_v57 }
 0x153   : > { %v907_v12 = vsel %vm5028_vm10, %v4819_v7, %v904_v33  ;;  %v3831_v18 = vmin.u32 %v989_v43, %v5062_v8  ;;  %v1053_v17 = vshll.u32 %v7088_v58, %v1041_v4  ;;  %v1054_v45 = vshrl.u32 %v7076_v41, %v1042_v25 }
 0x154   : > { %v1052_v34 = vor.u32 %v1051_v42, %v1050_v36  ;;  %4158 = vcosq.f32 %v907_v12  ;;  %v1056_v52 = vshll.u32 %v7076_v41, %v1041_v4  ;;  %v1057_v54 = vshrl.u32 %v7077_v48, %v1042_v25 }
 0x155   : > { %4160 = vsinq.f32 %v907_v12  ;;  %v991_v5 = vclz %v3831_v18  ;;  %v1075_v47 = vshll.u32 %v1035_v39, 8  ;;  %v5084_v2 = vand.u32 8388607, %v7060_v38 }
 0x156   : > { %vm925_vm1 = vcmp.lt.s32.totalorder %v4827_v59, 0  ;;  %v1009_v50 = vsub.s32 4, %v5051_v26  ;;  %v1055_v53 = vor.u32 %v1054_v45, %v1053_v17  ;;  %v1058_v37 = vor.u32 %v1057_v54, %v1056_v52 }
 0x157   : > { %v1141_v62 = vadd.s32 1, %v3838_v28  ;;  %v3832_v57 = vadd.s32 4294967294, %v991_v5  ;;  %v1043_v35 = vshrl.u32 %v7062_v61, %v1042_v25  ;;  %vm1059_vm2 = vcmp.lt.s32.totalorder %v1040_v30, 1 }
 0x158   : > { %vm1062_vm3 = vcmp.lt.s32.totalorder %v1040_v30, 4  ;;  %vm1061_vm4 = vcmp.lt.s32.totalorder %v1040_v30, 3  ;;  %v1067_v43 = vsel %vm1059_vm2, %v1046_v0, %v1049_v49  ;;  %vm1060_vm6 = vcmp.lt.s32.totalorder %v1040_v30, 2 }
 0x159   : > { %v1064_v4 = vsel %vm1062_vm3, %v1052_v34, 2102212464  ;;  %v1068_v39 = vsel %vm1062_vm3, %v1055_v53, 920167782  ;;  %vm3833_vm5 = vcmp.lt.s32.totalorder %v3832_v57, 0  ;;  %v1071_v42 = vsel %vm1059_vm2, %v1049_v49, %v1052_v34 }
 0x15a   : > { %v1069_v36 = vsel %vm1061_vm4, %v1052_v34, %v1068_v39  ;;  %v994_v33 = vsel %vm3833_vm5, 0, %v3832_v57  ;;  %v1063_v12 = vsel %vm1059_vm2, %v1043_v35, %v1046_v0  ;;  %v1072_v17 = vsel %vm1062_vm3, %v1058_v37, 1326507024 }
 0x15b   : > { %v1070_v18 = vsel %vm1060_vm6, %v1067_v43, %v1069_v36  ;;  %v995_v45 = vsub.s32 32, %v994_v33  ;;  %v999_v28 = vsub.s32 4294967266, %v994_v33  ;;  %v1065_v52 = vsel %vm1061_vm4, %v1049_v49, %v1064_v4 }
 0x15c   : > { %v1073_v54 = vsel %vm1061_vm4, %v1055_v53, %v1072_v17  ;;  %v996_v25 = vshll.u32 %v5062_v8, %v994_v33  ;;  %v5092_v38 = vmul.u32.u64.low %v1075_v47, %v1070_v18  ;;  %v5093_v55 = vmul.u32.u64.high %v1075_v47, %v1070_v18, %v5092_v38 }
 0x15d   : > { %v1074_v5 = vsel %vm1060_vm6, %v1071_v42, %v1073_v54  ;;  %v997_v61 = vshrl.u32 %v979_v9, %v995_v45  ;;  %v1000_v39 = vadd.s32 127, %v999_v28  ;;  %vm911_vm7 = vweird.f32 %v4819_v7 }
 0x15e   : > { %v5096_v34 = vmul.u32.u64.low %v1075_v47, %v1074_v5  ;;  %v5097_v57 = vmul.u32.u64.high %v1075_v47, %v1074_v5, %v5096_v34  ;;  %vm914_vm8 = vcmp.lt.s32.totalorder %v5053_v63, 2  ;;  %v7089_v0 = vand.u32 2147483647, %v4827_v59 }
 0x15f   : > { %v1066_v8 = vsel %vm1060_vm6, %v1063_v12, %v1065_v52  ;;  %vm1142_vm9 = vcmp.gt.s32.totalorder %v1141_v62, 0  ;;  %v998_v53 = vor.u32 %v997_v61, %v996_v25  ;;  %v1001_v37 = vshll.u32 %v1000_v39, 23 }
 0x160   : > { %vm5103_vm10 = vcmp.le.f32.partialorder %v7089_v0, 0.7853982  ;;  %v1010_v9 = vsel %vm925_vm1, %v1009_v50, %v5051_v26  ;;  %v1143_v35 = vsel %vm1142_vm9, %v1141_v62, 0  ;;  %vm915_vm11 = vcmp.eq.s32.totalorder %v5053_v63, 0 }
 0x161   : > { %vm918_vm12 = vcmp.eq.s32.totalorder %v5053_v63, 2  ;;  %v1085_v4 = vadd.s32 1, %v5093_v55  ;;  %v1145_v43 = vand.u32 31, %v1143_v35  ;;  %v4159_v36 = vpop.eup %4158  ;;  %v1002_v42 = vor.u32 4788187, %v1001_v37 }
 0x162   : > { %v1082_v33 = vmul.u32 %v1075_v47, %v1066_v8  ;;  %vm1084_vm13 = vc.u32 %v5097_v57, %v5092_v38  ;;  %v1139_v61 = vor.u32 8388608, %v5084_v2  ;;  %v4161_v30 = vpop.eup %4160  ;;  %v919_v12 = vxor.u32 2147483648, %v4159_v36 }
 0x163   : > { %v1012_v26 = vsel %vm5103_vm10, 0, %v1010_v9  ;;  %v1086_v50 = vsel %vm1084_vm13, %v1085_v4, %v5093_v55  ;;  %v1146_v62 = vsub.s32 32, %v1145_v43  ;;  %v916_v18 = vxor.u32 2147483648, %v4161_v30 }
 0x164   : > { %v1003_v17 = vand.u32 2147483647, %v1002_v42  ;;  %v1005_v45 = vcvt.s32.f32 %v998_v53  ;;  %v1087_v28 = vadd.s32 %v1086_v50, %v1082_v33  ;;  %v920_v47 = vsel %vm918_vm12, %v919_v12, %v4161_v30 }
 0x165   : > { %v5122_v52 = vshrl.u32 %v1143_v35, 5  ;;  %v1149_v54 = vshrl.u32 %v7068_v1, %v1146_v62  ;;  %v1238_v2 = vand.u32 2139095040, %v5045_v56  ;;  %v917_v25 = vsel %vm915_vm11, %v4159_v36, %v916_v18 }
 0x166   : > { %v1006_v5 = vmul.f32 %v1005_v45, %v1003_v17  ;;  %v1088_v55 = vadd.s32 536870912, %v1087_v28  ;;  %v1152_v39 = vshrl.u32 %v7065_v3, %v1146_v62  ;;  %v921_v34 = vsel %vm914_vm8, %v917_v25, %v920_v47 }
 0x167   : > { %v7092_v0 = vmov 683565275   ;;  %v1151_v53 = vshll.u32 %v7068_v1, %v1145_v43  ;;  %v1154_v37 = vshll.u32 %v7065_v3, %v1145_v43  ;;  %v922_v9 = vsel %vm911_vm7, nan, %v921_v34 }
 0x168   : > { %v1148_v8 = vshll.u32 %v7092_v0, %v1145_v43  ;;  %v1007_v35 = vxor.u32 2147483648, %v1006_v5  ;;  %v5136_v4 = vshrl.u32 %v1088_v55, 30  ;;  %v1155_v36 = vshrl.u32 %v7088_v58, %v1146_v62  ;;  %1968 = vst [vmem:[%s4804_s28 + $0x28] sm:$0xff] %v922_v9 }
 0x169   : > { %v1157_v42 = vshll.u32 %v7088_v58, %v1145_v43  ;;  %v1158_v33 = vshrl.u32 %v7076_v41, %v1146_v62  ;;  %v1160_v63 = vshll.u32 %v7076_v41, %v1145_v43  ;;  %v1161_v30 = vshrl.u32 %v7077_v48, %v1146_v62 }
 0x16a   : > { %v1008_v12 = vsel %vm925_vm1, %v1007_v35, %v1006_v5  ;;  %v1090_v7 = vshll.u32 %v5136_v4, 30  ;;  %v1150_v50 = vor.u32 %v1149_v54, %v1148_v8  ;;  %v1153_v18 = vor.u32 %v1152_v39, %v1151_v53 }
 0x16b   : > { %v5149_v17 = vmul.f32 %v4483_v24, %v4477_v22  ;;  %v1011_v45 = vsel %vm5103_vm10, %v4827_v59, %v1008_v12  ;;  %v1159_v47 = vor.u32 %v1158_v33, %v1157_v42  ;;  %v1162_v43 = vor.u32 %v1161_v30, %v1160_v63 }
 0x16c   : > { %4162 = vcosq.f32 %v1011_v45  ;;  %v5154_v25 = vsub.s32 %v1087_v28, %v1090_v7  ;;  %v1156_v55 = vor.u32 %v1155_v36, %v1154_v37  ;;  %v5156_v34 = vshll.u32 %v1139_v61, 8  ;;  %v5175_v36 = vpop.permute.xlu0 %272 }
 0x16d   : > { %4164 = vsinq.f32 %v1011_v45  ;;  %v1016_v5 = vadd.s32 3, %v1012_v26  ;;  %vm1163_vm14 = vcmp.lt.s32.totalorder %v5122_v52, 1  ;;  %v1239_v54 = vshrl.u32 %v1238_v2, 23 }
 0x16e   : > { %v1093_v22 = vsub.s32 0, %v5154_v25  ;;  %v1147_v39 = vshrl.u32 %v7092_v0, %v1146_v62  ;;  %vm1166_vm15 = vcmp.lt.s32.totalorder %v5122_v52, 4  ;;  %v1171_v49 = vsel %vm1163_vm14, %v1150_v50, %v1153_v18 }
 0x16f   : > { %vm1164_vm0 = vcmp.lt.s32.totalorder %v5122_v52, 2  ;;  %vm1165_vm1 = vcmp.lt.s32.totalorder %v5122_v52, 3  ;;  %v1172_v61 = vsel %vm1166_vm15, %v1159_v47, 920167782  ;;  %v1176_v28 = vsel %vm1166_vm15, %v1162_v43, 1326507024 }
 0x170   : > { %v3835_v26 = vmin.u32 %v1093_v22, %v5154_v25  ;;  %v1168_v8 = vsel %vm1166_vm15, %v1156_v55, 2102212464  ;;  %v1173_v2 = vsel %vm1165_vm1, %v1156_v55, %v1172_v61  ;;  %v1175_v62 = vsel %vm1163_vm14, %v1153_v18, %v1156_v55 }
 0x171   : > { %v1017_v53 = vand.u32 3, %v1016_v5  ;;  %v1174_v37 = vsel %vm1164_vm0, %v1171_v49, %v1173_v2  ;;  %v1177_v9 = vsel %vm1165_vm1, %v1159_v47, %v1176_v28  ;;  %v3842_v35 = vadd.s32 4294967169, %v1239_v54 }
 0x172   : > { %v1095_v42 = vclz %v3835_v26  ;;  %v1113_v33 = vsub.s32 4, %v5136_v4  ;;  %v1167_v63 = vsel %vm1163_vm14, %v1147_v39, %v1150_v50  ;;  %v7064_v30 = vand.u32 2147483647, %v5045_v56 }
 0x173   : > { %v1169_v12 = vsel %vm1165_vm1, %v1153_v18, %v1168_v8  ;;  %v1178_v7 = vsel %vm1164_vm0, %v1175_v62, %v1177_v9  ;;  %v5186_v45 = vmul.u32.u64.low %v5156_v34, %v1174_v37  ;;  %v5187_v47 = vmul.u32.u64.high %v5156_v34, %v1174_v37, %v5186_v45 }
 0x174   : > { %v3836_v43 = vadd.s32 4294967294, %v1095_v42  ;;  %v5191_v55 = vmul.u32.u64.low %v5156_v34, %v1178_v7  ;;  %v5192_v5 = vmul.u32.u64.high %v5156_v34, %v1178_v7, %v5191_v55  ;;  %v1245_v54 = vadd.s32 1, %v3842_v35 }
 0x175   : > { %v5196_v50 = vadd.f32 %v5175_v36, %v4813_v32  ;;  %vm1018_vm2 = vcmp.lt.s32.totalorder %v1017_v53, 2  ;;  %v7093_v18 = vand.u32 2147483647, %v4938_v6  ;;  %vm1029_vm4 = vcmp.lt.s32.totalorder %v4938_v6, 0 }
 0x176   : > { %vm1015_vm5 = vweird.f32 %v4827_v59  ;;  %vm1019_vm6 = vcmp.eq.s32.totalorder %v1017_v53, 0  ;;  %vm3837_vm7 = vcmp.lt.s32.totalorder %v3836_v43, 0  ;;  %v1170_v39 = vsel %vm1164_vm0, %v1167_v63, %v1169_v12 }
 0x177   : > { %vm5200_vm3 = vcmp.le.f32.partialorder %v7093_v18, 0.7853982  ;;  %vm1246_vm8 = vcmp.gt.s32.totalorder %v1245_v54, 0  ;;  %v1098_v49 = vsel %vm3837_vm7, 0, %v3836_v43  ;;  %v1189_v32 = vadd.s32 1, %v5187_v47 }
 0x178   : > { %v1242_v61 = vand.u32 8388607, %v7064_v30  ;;  %v1247_v28 = vsel %vm1246_vm8, %v1245_v54, 0  ;;  %v1083_v26 = vadd.s32 %v5092_v38, %v5097_v57  ;;  %v1099_v8 = vsub.s32 32, %v1098_v49 }
 0x179   : > { %v1103_v2 = vsub.s32 4294967266, %v1098_v49  ;;  %v1114_v62 = vsel %vm1029_vm4, %v1113_v33, %v5136_v4  ;;  %v4163_v37 = vpop.eup %4162  ;;  %v1100_v52 = vshll.u32 %v5154_v25, %v1098_v49  ;;  %v1186_v9 = vmul.u32 %v5156_v34, %v1170_v39 }
 0x17a   : > { %vm1188_vm10 = vc.u32 %v5192_v5, %v5186_v45  ;;  %v1249_v35 = vand.u32 31, %v1247_v28  ;;  %v4165_v42 = vpop.eup %4164  ;;  %v1023_v63 = vxor.u32 2147483648, %v4163_v37  ;;  %v1101_v12 = vshrl.u32 %v1083_v26, %v1099_v8 }
 0x17b   : > { %v1104_v7 = vadd.s32 127, %v1103_v2  ;;  %v1190_v38 = vsel %vm1188_vm10, %v1189_v32, %v5187_v47  ;;  %v1020_v57 = vxor.u32 2147483648, %v4165_v42  ;;  %vm1022_vm9 = vcmp.eq.s32.totalorder %v1017_v53, 2 }
 0x17c   : > { %v1191_v43 = vadd.s32 %v1190_v38, %v1186_v9  ;;  %v1250_v55 = vsub.s32 32, %v1249_v35  ;;  %v1024_v4 = vsel %vm1022_vm9, %v1023_v63, %v4165_v42  ;;  %v1102_v33 = vor.u32 %v1101_v12, %v1100_v52 }
 0x17d   : > { %v1105_v54 = vshll.u32 %v1104_v7, 23  ;;  %v1116_v25 = vsel %vm5200_vm3, 0, %v1114_v62  ;;  %v1021_v34 = vsel %vm1019_vm6, %v4163_v37, %v1020_v57  ;;  %v1243_v39 = vor.u32 8388608, %v1242_v61 }
 0x17e   : > { %v1192_v18 = vadd.s32 536870912, %v1191_v43  ;;  %v1342_v49 = vand.u32 2139095040, %v5196_v50  ;;  %v1025_v26 = vsel %vm1018_vm2, %v1021_v34, %v1024_v4  ;;  %v1248_v32 = vshrl.u32 %v1247_v28, 5 }
 0x17f   : > { %v1106_v47 = vor.u32 4788187, %v1105_v54  ;;  %v1253_v8 = vshrl.u32 %v7068_v1, %v1250_v55  ;;  %v1026_v2 = vsel %vm1015_vm5, nan, %v1025_v26  ;;  %v1252_v9 = vshll.u32 %v7092_v0, %v1249_v35 }
 0x180   : > { %v1193_v52 = vshrl.u32 %v1192_v18, 30  ;;  %v1256_v62 = vshrl.u32 %v7065_v3, %v1250_v55  ;;  %v1109_v42 = vcvt.s32.f32 %v1102_v33  ;;  %v1255_v61 = vshll.u32 %v7068_v1, %v1249_v35  ;;  %1969 = vst [vmem:[%s4804_s28 + $0x30] sm:$0xff] %v1026_v2 }
 0x181   : > { %v1107_v37 = vand.u32 2147483647, %v1106_v47  ;;  %v1259_v63 = vshrl.u32 %v7088_v58, %v1250_v55  ;;  %v1258_v28 = vshll.u32 %v7065_v3, %v1249_v35  ;;  %v1261_v12 = vshll.u32 %v7088_v58, %v1249_v35 }
 0x182   : > { %v1194_v53 = vshll.u32 %v1193_v52, 30  ;;  %v1262_v59 = vshrl.u32 %v7076_v41, %v1250_v55  ;;  %v5239_v7 = vadd.f32 %v5175_v36, %v4901_v60  ;;  %v1254_v57 = vor.u32 %v1253_v8, %v1252_v9 }
 0x183   : > { %v1110_v38 = vmul.f32 %v1109_v42, %v1107_v37  ;;  %v1265_v4 = vshrl.u32 %v7077_v48, %v1250_v55  ;;  %vm1133_vm11 = vcmp.lt.s32.totalorder %v5005_v20, 0  ;;  %v1257_v54 = vor.u32 %v1256_v62, %v1255_v61 }
 0x184   : > { %v5243_v33 = vsub.s32 %v1191_v43, %v1194_v53  ;;  %v1260_v34 = vor.u32 %v1259_v63, %v1258_v28  ;;  %v1263_v18 = vor.u32 %v1262_v59, %v1261_v12  ;;  %v1120_v47 = vadd.s32 3, %v1116_v25 }
 0x185   : > { %v1111_v26 = vxor.u32 2147483648, %v1110_v38  ;;  %v1264_v2 = vshll.u32 %v7076_v41, %v1249_v35  ;;  %v1283_v30 = vshll.u32 %v1243_v39, 8  ;;  %vm1267_vm12 = vcmp.lt.s32.totalorder %v1248_v32, 1 }
 0x186   : > { %v1197_v3 = vsub.s32 0, %v5243_v33  ;;  %vm1270_vm13 = vcmp.lt.s32.totalorder %v1248_v32, 4  ;;  %v1343_v60 = vshrl.u32 %v1342_v49, 23  ;;  %vm1269_vm14 = vcmp.lt.s32.totalorder %v1248_v32, 3 }
 0x187   : > { %v1112_v8 = vsel %vm1029_vm4, %v1111_v26, %v1110_v38  ;;  %v1266_v9 = vor.u32 %v1265_v4, %v1264_v2  ;;  %v1276_v43 = vsel %vm1270_vm13, %v1263_v18, 920167782  ;;  %v1272_v35 = vsel %vm1270_vm13, %v1260_v34, 2102212464 }
 0x188   : > { %v1115_v62 = vsel %vm5200_vm3, %v4938_v6, %v1112_v8  ;;  %v3839_v25 = vmin.u32 %v1197_v3, %v5243_v33  ;;  %v1275_v39 = vsel %vm1267_vm12, %v1254_v57, %v1257_v54  ;;  %v1217_v37 = vsub.s32 4, %v1193_v52 }
 0x189   : > { %4166 = vcosq.f32 %v1115_v62  ;;  %v1251_v49 = vshrl.u32 %v7092_v0, %v1250_v55  ;;  %v1277_v42 = vsel %vm1269_vm14, %v1260_v34, %v1276_v43  ;;  %vm1268_vm15 = vcmp.lt.s32.totalorder %v1248_v32, 2 }
 0x18a   : > { %4168 = vsinq.f32 %v1115_v62  ;;  %v1199_v61 = vclz %v3839_v25  ;;  %v1279_v63 = vsel %vm1267_vm12, %v1257_v54, %v1260_v34  ;;  %v1273_v53 = vsel %vm1269_vm14, %v1257_v54, %v1272_v35  ;;  %v5281_v62 = vpop.permute.xlu1 %276 }
 0x18b   : > { %v1271_v22 = vsel %vm1267_vm12, %v1251_v49, %v1254_v57  ;;  %v1278_v3 = vsel %vm1268_vm15, %v1275_v39, %v1277_v42  ;;  %v1280_v28 = vsel %vm1270_vm13, %v1266_v9, 1326507024  ;;  %v1218_v55 = vsel %vm1133_vm11, %v1217_v37, %v1193_v52 }
 0x18c   : > { %v3840_v12 = vadd.s32 4294967294, %v1199_v61  ;;  %v1281_v59 = vsel %vm1269_vm14, %v1263_v18, %v1280_v28  ;;  %v5263_v38 = vmul.u32.u64.low %v1283_v30, %v1278_v3  ;;  %v5264_v4 = vmul.u32.u64.high %v1283_v30, %v1278_v3, %v5263_v38 }
 0x18d   : > { %v1282_v26 = vsel %vm1268_vm15, %v1279_v63, %v1281_v59  ;;  %v1339_v34 = vand.u32 2147483647, %v5196_v50  ;;  %v3846_v2 = vadd.s32 4294967169, %v1343_v60  ;;  %v1274_v57 = vsel %vm1268_vm15, %v1271_v22, %v1273_v53 }
 0x18e   : > { %vm3841_vm0 = vcmp.lt.s32.totalorder %v3840_v12, 0  ;;  %v5270_v54 = vmul.u32.u64.low %v1283_v30, %v1282_v26  ;;  %v5271_v8 = vmul.u32.u64.high %v1283_v30, %v1282_v26, %v5270_v54  ;;  %v7096_v9 = vand.u32 2147483647, %v5005_v20 }
 0x18f   : > { %v1187_v18 = vadd.s32 %v5186_v45, %v5192_v5  ;;  %v1202_v43 = vsel %vm3841_vm0, 0, %v3840_v12  ;;  %v1349_v52 = vadd.s32 1, %v3846_v2  ;;  %v1293_v39 = vadd.s32 1, %v5264_v4 }
 0x190   : > { %vm5275_vm1 = vcmp.le.f32.partialorder %v7096_v9, 0.7853982  ;;  %v1203_v25 = vsub.s32 32, %v1202_v43  ;;  %v1207_v60 = vsub.s32 4294967266, %v1202_v43  ;;  %v1121_v37 = vand.u32 3, %v1120_v47 }
 0x191   : > { %v1220_v35 = vsel %vm5275_vm1, 0, %v1218_v55  ;;  %v1290_v49 = vmul.u32 %v1283_v30, %v1274_v57  ;;  %v1346_v42 = vand.u32 8388607, %v1339_v34  ;;  %vm1350_vm2 = vcmp.gt.s32.totalorder %v1349_v52, 0 }
 0x192   : > { %v1204_v61 = vshll.u32 %v5243_v33, %v1202_v43  ;;  %v1205_v45 = vshrl.u32 %v1187_v18, %v1203_v25  ;;  %v1208_v5 = vadd.s32 127, %v1207_v60  ;;  %vm1292_vm3 = vc.u32 %v5271_v8, %v5263_v38 }
 0x193   : > { %v5293_v63 = vadd.f32 %v5281_v62, %v4929_v44  ;;  %v1224_v22 = vadd.s32 3, %v1220_v35  ;;  %v1294_v53 = vsel %vm1292_vm3, %v1293_v39, %v5264_v4  ;;  %v1351_v47 = vsel %vm1350_vm2, %v1349_v52, 0 }
 0x194   : > { %vm1119_vm4 = vweird.f32 %v4938_v6  ;;  %v1206_v30 = vor.u32 %v1205_v45, %v1204_v61  ;;  %v1209_v3 = vshll.u32 %v1208_v5, 23  ;;  %v1295_v28 = vadd.s32 %v1294_v53, %v1290_v49 }
 0x195   : > { %vm1122_vm5 = vcmp.lt.s32.totalorder %v1121_v37, 2  ;;  %v1347_v33 = vor.u32 8388608, %v1346_v42  ;;  %v1353_v12 = vand.u32 31, %v1351_v47  ;;  %v1446_v59 = vand.u32 2139095040, %v5239_v7 }
 0x196   : > { %v4167_v55 = vpop.eup %4166  ;;  %vm1123_vm6 = vcmp.eq.s32.totalorder %v1121_v37, 0  ;;  %vm1126_vm7 = vcmp.eq.s32.totalorder %v1121_v37, 2  ;;  %v1210_v26 = vor.u32 4788187, %v1209_v3  ;;  %v1296_v44 = vadd.s32 536870912, %v1295_v28 }
 0x197   : > { %v4169_v2 = vpop.eup %4168  ;;  %v1127_v57 = vxor.u32 2147483648, %v4167_v55  ;;  %v5298_v54 = vand.u32 3, %v1224_v22  ;;  %v1354_v4 = vsub.s32 32, %v1353_v12  ;;  %v1443_v9 = vand.u32 2147483647, %v5239_v7 }
 0x198   : > { %v1124_v18 = vxor.u32 2147483648, %v4169_v2  ;;  %v1211_v43 = vand.u32 2147483647, %v1210_v26  ;;  %v1213_v52 = vcvt.s32.f32 %v1206_v30  ;;  %v5301_v25 = vshrl.u32 %v1296_v44, 30 }
 0x199   : > { %v1128_v60 = vsel %vm1126_vm7, %v1127_v57, %v4169_v2  ;;  %v1357_v35 = vshrl.u32 %v7068_v1, %v1354_v4  ;;  %v5304_v39 = vshll.u32 %v1347_v33, 8  ;;  %v1447_v49 = vshrl.u32 %v1446_v59, 23 }
 0x19a   : > { %v1125_v42 = vsel %vm1123_vm6, %v4167_v55, %v1124_v18  ;;  %v1214_v61 = vmul.f32 %v1213_v52, %v1211_v43  ;;  %v1298_v45 = vshll.u32 %v5301_v25, 30  ;;  %v7099_v5 = vmov 2131351028  }
 0x19b   : > { %v1360_v22 = vshrl.u32 %v7099_v5, %v1354_v4  ;;  %v1129_v53 = vsel %vm1122_vm5, %v1125_v42, %v1128_v60  ;;  %v1356_v30 = vshll.u32 %v7092_v0, %v1353_v12  ;;  %v1359_v3 = vshll.u32 %v7068_v1, %v1353_v12 }
 0x19c   : > { %v1363_v26 = vshrl.u32 %v7088_v58, %v1354_v4  ;;  %v1130_v33 = vsel %vm1119_vm4, nan, %v1129_v53  ;;  %v1215_v59 = vxor.u32 2147483648, %v1214_v61  ;;  %v5315_v44 = vsub.s32 %v1295_v28, %v1298_v45 }
 0x19d   : > { %v1362_v55 = vshll.u32 %v7099_v5, %v1353_v12  ;;  %v1352_v2 = vshrl.u32 %v1351_v47, 5  ;;  %v1358_v57 = vor.u32 %v1357_v35, %v1356_v30  ;;  %v1365_v18 = vshll.u32 %v7088_v58, %v1353_v12  ;;  %1970 = vst [vmem:[%s4804_s28 + $0x38] sm:$0xff] %v1130_v33 }
 0x19e   : > { %v1366_v37 = vshrl.u32 %v7076_v41, %v1354_v4  ;;  %v1216_v43 = vsel %vm1133_vm11, %v1215_v59, %v1214_v61  ;;  %v1301_v52 = vsub.s32 0, %v5315_v44  ;;  %v1361_v60 = vor.u32 %v1360_v22, %v1359_v3 }
 0x19f   : > { %v1364_v6 = vor.u32 %v1363_v26, %v1362_v55  ;;  %v1219_v28 = vsel %vm5275_vm1, %v5005_v20, %v1216_v43  ;;  %v1368_v47 = vshll.u32 %v7076_v41, %v1353_v12  ;;  %v1369_v35 = vshrl.u32 %v7077_v48, %v1354_v4 }
 0x1a0   : > { %v1367_v42 = vor.u32 %v1366_v37, %v1365_v18  ;;  %4170 = vcosq.f32 %v1219_v28  ;;  %v3843_v45 = vmin.u32 %v1301_v52, %v5315_v44  ;;  %v3850_v53 = vadd.s32 4294967169, %v1447_v49 }
 0x1a1   : > { %v1450_v61 = vand.u32 8388607, %v1443_v9  ;;  %4172 = vsinq.f32 %v1219_v28  ;;  %v1355_v22 = vshrl.u32 %v7092_v0, %v1354_v4  ;;  %v1370_v30 = vor.u32 %v1369_v35, %v1368_v47 }
 0x1a2   : > { %vm1371_vm8 = vcmp.lt.s32.totalorder %v1352_v2, 1  ;;  %v1303_v3 = vclz %v3843_v45  ;;  %vm1372_vm10 = vcmp.lt.s32.totalorder %v1352_v2, 2  ;;  %vm1373_vm9 = vcmp.lt.s32.totalorder %v1352_v2, 3 }
 0x1a3   : > { %vm1374_vm11 = vcmp.lt.s32.totalorder %v1352_v2, 4  ;;  %v1379_v12 = vsel %vm1371_vm8, %v1358_v57, %v1361_v60  ;;  %v1383_v33 = vsel %vm1371_vm8, %v1361_v60, %v1364_v6  ;;  %v1375_v55 = vsel %vm1371_vm8, %v1355_v22, %v1358_v57 }
 0x1a4   : > { %v1376_v32 = vsel %vm1374_vm11, %v1364_v6, 2102212464  ;;  %v1380_v26 = vsel %vm1374_vm11, %v1367_v42, 920167782  ;;  %v3844_v59 = vadd.s32 4294967294, %v1303_v3  ;;  %v1453_v28 = vadd.s32 1, %v3850_v53 }
 0x1a5   : > { %v1381_v18 = vsel %vm1373_vm9, %v1364_v6, %v1380_v26  ;;  %v1384_v49 = vsel %vm1374_vm11, %v1370_v30, 1326507024  ;;  %v1377_v37 = vsel %vm1373_vm9, %v1361_v60, %v1376_v32  ;;  %v1291_v45 = vadd.s32 %v5263_v38, %v5271_v8 }
 0x1a6   : > { %v1382_v43 = vsel %vm1372_vm10, %v1379_v12, %v1381_v18  ;;  %v1385_v52 = vsel %vm1373_vm9, %v1367_v42, %v1384_v49  ;;  %vm3845_vm12 = vcmp.lt.s32.totalorder %v3844_v59, 0  ;;  %v1378_v42 = vsel %vm1372_vm10, %v1375_v55, %v1377_v37 }
 0x1a7   : > { %v1386_v4 = vsel %vm1372_vm10, %v1383_v33, %v1385_v52  ;;  %v5336_v47 = vmul.u32.u64.low %v5304_v39, %v1382_v43  ;;  %v5337_v35 = vmul.u32.u64.high %v5304_v39, %v1382_v43, %v5336_v47  ;;  %v1306_v3 = vsel %vm3845_vm12, 0, %v3844_v59 }
 0x1a8   : > { %v5343_v57 = vmul.u32.u64.low %v5304_v39, %v1386_v4  ;;  %v5344_v6 = vmul.u32.u64.high %v5304_v39, %v1386_v4, %v5343_v57  ;;  %v1307_v60 = vsub.s32 32, %v1306_v3  ;;  %v1311_v22 = vsub.s32 4294967266, %v1306_v3 }
 0x1a9   : > { %vm1454_vm13 = vcmp.gt.s32.totalorder %v1453_v28, 0  ;;  %v5349_v53 = vadd.f32 %v5281_v62, %v4933_v29  ;;  %v1321_v30 = vsub.s32 4, %v5301_v25  ;;  %v1451_v32 = vor.u32 8388608, %v1450_v61 }
 0x1aa   : > { %v1455_v12 = vsel %vm1454_vm13, %v1453_v28, 0  ;;  %vm1223_vm14 = vweird.f32 %v5005_v20  ;;  %v1308_v38 = vshll.u32 %v5315_v44, %v1306_v3  ;;  %v1309_v8 = vshrl.u32 %v1291_v45, %v1307_v60 }
 0x1ab   : > { %v1312_v26 = vadd.s32 127, %v1311_v22  ;;  %v1397_v33 = vadd.s32 1, %v5337_v35  ;;  %vm1237_vm15 = vcmp.lt.s32.totalorder %v5045_v56, 0  ;;  %v1394_v2 = vmul.u32 %v5304_v39, %v1378_v42 }
 0x1ac   : > { %vm1396_vm0 = vc.u32 %v5344_v6, %v5336_v47  ;;  %v1457_v29 = vand.u32 31, %v1455_v12  ;;  %vm1226_vm1 = vcmp.lt.s32.totalorder %v5298_v54, 2  ;;  %v1310_v61 = vor.u32 %v1309_v8, %v1308_v38 }
 0x1ad   : > { %v1313_v59 = vshll.u32 %v1312_v26, 23  ;;  %v1398_v55 = vsel %vm1396_vm0, %v1397_v33, %v5337_v35  ;;  %v4171_v18 = vpop.eup %4170  ;;  %vm1227_vm2 = vcmp.eq.s32.totalorder %v5298_v54, 0  ;;  %vm1230_vm3 = vcmp.eq.s32.totalorder %v5298_v54, 2 }
 0x1ae   : > { %v7100_v44 = vand.u32 2147483647, %v5045_v56  ;;  %v1399_v39 = vadd.s32 %v1398_v55, %v1394_v2  ;;  %v1458_v37 = vsub.s32 32, %v1457_v29  ;;  %v4173_v43 = vpop.eup %4172  ;;  %v1231_v52 = vxor.u32 2147483648, %v4171_v18 }
 0x1af   : > { %v1314_v28 = vor.u32 4788187, %v1313_v59  ;;  %v1322_v4 = vsel %vm1237_vm15, %v1321_v30, %v5301_v25  ;;  %v5372_v35 = vshll.u32 %v1451_v32, 8  ;;  %v1228_v45 = vxor.u32 2147483648, %v4173_v43 }
 0x1b0   : > { %vm5365_vm4 = vcmp.le.f32.partialorder %v7100_v44, 0.7853982  ;;  %v1400_v3 = vadd.s32 536870912, %v1399_v39  ;;  %v5374_v57 = vshrl.u32 %v1455_v12, 5  ;;  %v1460_v60 = vshll.u32 %v7092_v0, %v1457_v29 }
 0x1b1   : > { %v1232_v22 = vsel %vm1230_vm3, %v1231_v52, %v4173_v43  ;;  %v1315_v42 = vand.u32 2147483647, %v1314_v28  ;;  %v1317_v38 = vcvt.s32.f32 %v1310_v61  ;;  %v1461_v8 = vshrl.u32 %v7068_v1, %v1458_v37 }
 0x1b2   : > { %v1229_v26 = vsel %vm1227_vm2, %v4171_v18, %v1228_v45  ;;  %v5380_v33 = vshrl.u32 %v1400_v3, 30  ;;  %v1464_v25 = vshrl.u32 %v7099_v5, %v1458_v37  ;;  %v1467_v30 = vshrl.u32 %v7088_v58, %v1458_v37 }
 0x1b3   : > { %v1233_v32 = vsel %vm1226_vm1, %v1229_v26, %v1232_v22  ;;  %v1318_v12 = vmul.f32 %v1317_v38, %v1315_v42  ;;  %v1463_v2 = vshll.u32 %v7068_v1, %v1457_v29  ;;  %v1466_v61 = vshll.u32 %v7099_v5, %v1457_v29 }
 0x1b4   : > { %v1234_v59 = vsel %vm1223_vm14, nan, %v1233_v32  ;;  %v1402_v55 = vshll.u32 %v5380_v33, 30  ;;  %v1469_v18 = vshll.u32 %v7088_v58, %v1457_v29  ;;  %v1470_v44 = vshrl.u32 %v7076_v41, %v1458_v37 }
 0x1b5   : > { %v1319_v43 = vxor.u32 2147483648, %v1318_v12  ;;  %v1462_v52 = vor.u32 %v1461_v8, %v1460_v60  ;;  %v1472_v28 = vshll.u32 %v7076_v41, %v1457_v29  ;;  %v1473_v54 = vshrl.u32 %v7077_v48, %v1458_v37  ;;  %1971 = vst [vmem:[%s4804_s28 + $0x40] sm:$0xff] %v1234_v59  ;;  %v5418_v59 = vpop.permute.xlu0 %280 }
 0x1b6   : > { %v5396_v45 = vsub.s32 %v1399_v39, %v1402_v55  ;;  %v1465_v3 = vor.u32 %v1464_v25, %v1463_v2  ;;  %v1468_v22 = vor.u32 %v1467_v30, %v1466_v61  ;;  %v1471_v42 = vor.u32 %v1470_v44, %v1469_v18 }
 0x1b7   : > { %v1320_v20 = vsel %vm1237_vm15, %v1319_v43, %v1318_v12  ;;  %v1324_v38 = vsel %vm5365_vm4, 0, %v1322_v4  ;;  %v1474_v26 = vor.u32 %v1473_v54, %v1472_v28  ;;  %v1550_v32 = vand.u32 2139095040, %v5293_v63 }
 0x1b8   : > { %v1323_v29 = vsel %vm5365_vm4, %v5045_v56, %v1320_v20  ;;  %v1405_v60 = vsub.s32 0, %v5396_v45  ;;  %vm1475_vm5 = vcmp.lt.s32.totalorder %v5374_v57, 1  ;;  %vm1478_vm6 = vcmp.lt.s32.totalorder %v5374_v57, 4 }
 0x1b9   : > { %4174 = vcosq.f32 %v1323_v29  ;;  %v1459_v39 = vshrl.u32 %v7092_v0, %v1458_v37  ;;  %vm1477_vm7 = vcmp.lt.s32.totalorder %v5374_v57, 3  ;;  %v1484_v8 = vsel %vm1478_vm6, %v1471_v42, 920167782 }
 0x1ba   : > { %4176 = vsinq.f32 %v1323_v29  ;;  %v3847_v4 = vmin.u32 %v1405_v60, %v5396_v45  ;;  %v1480_v25 = vsel %vm1478_vm6, %v1468_v22, 2102212464  ;;  %v1483_v49 = vsel %vm1475_vm5, %v1462_v52, %v1465_v3 }
 0x1bb   : > { %v1328_v30 = vadd.s32 3, %v1324_v38  ;;  %v1485_v12 = vsel %vm1477_vm7, %v1468_v22, %v1484_v8  ;;  %v1487_v2 = vsel %vm1475_vm5, %v1465_v3, %v1468_v22  ;;  %v1488_v61 = vsel %vm1478_vm6, %v1474_v26, 1326507024 }
 0x1bc   : > { %v1407_v37 = vclz %v3847_v4  ;;  %v1425_v55 = vsub.s32 4, %v5380_v33  ;;  %vm1476_vm8 = vcmp.lt.s32.totalorder %v5374_v57, 2  ;;  %v1479_v18 = vsel %vm1475_vm5, %v1459_v39, %v1462_v52 }
 0x1bd   : > { %v1481_v44 = vsel %vm1477_vm7, %v1465_v3, %v1480_v25  ;;  %v1486_v43 = vsel %vm1476_vm8, %v1483_v49, %v1485_v12  ;;  %v1489_v28 = vsel %vm1477_vm7, %v1471_v42, %v1488_v61  ;;  %v1551_v54 = vshrl.u32 %v1550_v32, 23 }
 0x1be   : > { %v3848_v22 = vadd.s32 4294967294, %v1407_v37  ;;  %v1490_v20 = vsel %vm1476_vm8, %v1487_v2, %v1489_v28  ;;  %v5429_v38 = vmul.u32.u64.low %v5372_v35, %v1486_v43  ;;  %v5430_v26 = vmul.u32.u64.high %v5372_v35, %v1486_v43, %v5429_v38 }
 0x1bf   : > { %v5435_v29 = vadd.f32 %v5418_v59, %v5149_v17  ;;  %v5438_v52 = vmul.u32.u64.low %v5372_v35, %v1490_v20  ;;  %v5439_v60 = vmul.u32.u64.high %v5372_v35, %v1490_v20, %v5438_v52  ;;  %v3854_v3 = vadd.s32 4294967169, %v1551_v54 }
 0x1c0   : > { %v1329_v39 = vand.u32 3, %v1328_v30  ;;  %vm1341_vm10 = vcmp.lt.s32.totalorder %v5196_v50, 0  ;;  %vm3849_vm9 = vcmp.lt.s32.totalorder %v3848_v22, 0  ;;  %v1482_v57 = vsel %vm1476_vm8, %v1479_v18, %v1481_v44 }
 0x1c1   : > { %v1395_v42 = vadd.s32 %v5336_v47, %v5344_v6  ;;  %v1410_v32 = vsel %vm3849_vm9, 0, %v3848_v22  ;;  %v1547_v8 = vand.u32 2147483647, %v5293_v63  ;;  %v1557_v4 = vadd.s32 1, %v3854_v3 }
 0x1c2   : > { %v1411_v25 = vsub.s32 32, %v1410_v32  ;;  %v1415_v17 = vsub.s32 4294967266, %v1410_v32  ;;  %v1426_v49 = vsel %vm1341_vm10, %v1425_v55, %v5380_v33  ;;  %v1501_v12 = vadd.s32 1, %v5430_v26 }
 0x1c3   : > { %v1412_v30 = vshll.u32 %v5396_v45, %v1410_v32  ;;  %v1498_v2 = vmul.u32 %v5372_v35, %v1482_v57  ;;  %vm1500_vm11 = vc.u32 %v5439_v60, %v5429_v38  ;;  %vm1558_vm12 = vcmp.gt.s32.totalorder %v1557_v4, 0 }
 0x1c4   : > { %v1413_v47 = vshrl.u32 %v1395_v42, %v1411_v25  ;;  %v1416_v6 = vadd.s32 127, %v1415_v17  ;;  %v1502_v61 = vsel %vm1500_vm11, %v1501_v12, %v5430_v26  ;;  %v1559_v37 = vsel %vm1558_vm12, %v1557_v4, 0 }
 0x1c5   : > { %vm5456_vm13 = vcmp.le.f32.partialorder %v1339_v34, 0.7853982  ;;  %v1503_v33 = vadd.s32 %v1502_v61, %v1498_v2  ;;  %v1554_v45 = vand.u32 8388607, %v1547_v8  ;;  %v1561_v35 = vand.u32 31, %v1559_v37 }
 0x1c6   : > { %v4175_v55 = vpop.eup %4174  ;;  %vm1327_vm14 = vweird.f32 %v5045_v56  ;;  %v1414_v44 = vor.u32 %v1413_v47, %v1412_v30  ;;  %v1417_v43 = vshll.u32 %v1416_v6, 23  ;;  %v1428_v28 = vsel %vm5456_vm13, 0, %v1426_v49 }
 0x1c7   : > { %v4177_v54 = vpop.eup %4176  ;;  %vm1330_vm15 = vcmp.lt.s32.totalorder %v1329_v39, 2  ;;  %v1335_v22 = vxor.u32 2147483648, %v4175_v55  ;;  %v1504_v34 = vadd.s32 536870912, %v1503_v33  ;;  %v1562_v20 = vsub.s32 32, %v1561_v35 }
 0x1c8   : > { %vm1331_vm0 = vcmp.eq.s32.totalorder %v1329_v39, 0  ;;  %v1332_v26 = vxor.u32 2147483648, %v4177_v54  ;;  %vm1334_vm1 = vcmp.eq.s32.totalorder %v1329_v39, 2  ;;  %v1418_v52 = vor.u32 4788187, %v1417_v43 }
 0x1c9   : > { %v1336_v3 = vsel %vm1334_vm1, %v1335_v22, %v4177_v54  ;;  %v5465_v57 = vadd.s32 3, %v1428_v28  ;;  %v5467_v42 = vshrl.u32 %v1504_v34, 30  ;;  %v1555_v32 = vor.u32 8388608, %v1554_v45 }
 0x1ca   : > { %v1333_v4 = vsel %vm1331_vm0, %v4175_v55, %v1332_v26  ;;  %v1419_v25 = vand.u32 2147483647, %v1418_v52  ;;  %v1421_v17 = vcvt.s32.f32 %v1414_v44  ;;  %v1565_v49 = vshrl.u32 %v7068_v1, %v1562_v20 }
 0x1cb   : > { %v1337_v12 = vsel %vm1330_vm15, %v1333_v4, %v1336_v3  ;;  %v1506_v30 = vshll.u32 %v5467_v42, 30  ;;  %v1568_v2 = vshrl.u32 %v7099_v5, %v1562_v20  ;;  %v1654_v47 = vand.u32 2139095040, %v5349_v53 }
 0x1cc   : > { %v1338_v6 = vsel %vm1327_vm14, nan, %v1337_v12  ;;  %v1422_v61 = vmul.f32 %v1421_v17, %v1419_v25  ;;  %v1564_v45 = vshll.u32 %v7092_v0, %v1561_v35  ;;  %v1571_v55 = vshrl.u32 %v7088_v58, %v1562_v20 }
 0x1cd   : > { %v5478_v43 = vsub.s32 %v1503_v33, %v1506_v30  ;;  %v1560_v44 = vshrl.u32 %v1559_v37, 5  ;;  %v1567_v39 = vshll.u32 %v7068_v1, %v1561_v35  ;;  %v1574_v28 = vshrl.u32 %v7076_v41, %v1562_v20  ;;  %1972 = vst [vmem:[%s4804_s28 + $0x48] sm:$0xff] %v1338_v6 }
 0x1ce   : > { %v1423_v54 = vxor.u32 2147483648, %v1422_v61  ;;  %v1566_v22 = vor.u32 %v1565_v49, %v1564_v45  ;;  %v1570_v34 = vshll.u32 %v7099_v5, %v1561_v35  ;;  %v1573_v56 = vshll.u32 %v7088_v58, %v1561_v35 }
 0x1cf   : > { %v1509_v26 = vsub.s32 0, %v5478_v43  ;;  %v1569_v52 = vor.u32 %v1568_v2, %v1567_v39  ;;  %v1576_v3 = vshll.u32 %v7076_v41, %v1561_v35  ;;  %v1577_v33 = vshrl.u32 %v7077_v48, %v1562_v20 }
 0x1d0   : > { %v1424_v37 = vsel %vm1341_vm10, %v1423_v54, %v1422_v61  ;;  %v1572_v4 = vor.u32 %v1571_v55, %v1570_v34  ;;  %v1575_v25 = vor.u32 %v1574_v28, %v1573_v56  ;;  %v1595_v17 = vshll.u32 %v1555_v32, 8 }
 0x1d1   : > { %v1427_v49 = vsel %vm5456_vm13, %v5196_v50, %v1424_v37  ;;  %v3851_v12 = vmin.u32 %v1509_v26, %v5478_v43  ;;  %v1578_v30 = vor.u32 %v1577_v33, %v1576_v3  ;;  %v1655_v6 = vshrl.u32 %v1654_v47, 23 }
 0x1d2   : > { %4178 = vcosq.f32 %v1427_v49  ;;  %v1563_v2 = vshrl.u32 %v7092_v0, %v1562_v20  ;;  %vm1579_vm2 = vcmp.lt.s32.totalorder %v1560_v44, 1  ;;  %vm1580_vm3 = vcmp.lt.s32.totalorder %v1560_v44, 2 }
 0x1d3   : > { %4180 = vsinq.f32 %v1427_v49  ;;  %v1511_v35 = vclz %v3851_v12  ;;  %vm1582_vm4 = vcmp.lt.s32.totalorder %v1560_v44, 4  ;;  %v1587_v61 = vsel %vm1579_vm2, %v1566_v22, %v1569_v52 }
 0x1d4   : > { %vm1581_vm5 = vcmp.lt.s32.totalorder %v1560_v44, 3  ;;  %v1584_v45 = vsel %vm1582_vm4, %v1572_v4, 2102212464  ;;  %v1588_v32 = vsel %vm1582_vm4, %v1575_v25, 920167782  ;;  %v1591_v55 = vsel %vm1579_vm2, %v1569_v52, %v1572_v4 }
 0x1d5   : > { %v3852_v39 = vadd.s32 4294967294, %v1511_v35  ;;  %v1583_v18 = vsel %vm1579_vm2, %v1563_v2, %v1566_v22  ;;  %v1589_v28 = vsel %vm1581_vm5, %v1572_v4, %v1588_v32  ;;  %v1592_v54 = vsel %vm1582_vm4, %v1578_v30, 1326507024 }
 0x1d6   : > { %v1585_v34 = vsel %vm1581_vm5, %v1569_v52, %v1584_v45  ;;  %v1590_v47 = vsel %vm1580_vm3, %v1587_v61, %v1589_v28  ;;  %v1593_v56 = vsel %vm1581_vm5, %v1575_v25, %v1592_v54  ;;  %v3858_v26 = vadd.s32 4294967169, %v1655_v6 }
 0x1d7   : > { %vm3853_vm6 = vcmp.lt.s32.totalorder %v3852_v39, 0  ;;  %v1594_v20 = vsel %vm1580_vm3, %v1591_v55, %v1593_v56  ;;  %v5497_v3 = vmul.u32.u64.low %v1595_v17, %v1590_v47  ;;  %v5498_v33 = vmul.u32.u64.high %v1595_v17, %v1590_v47, %v5497_v3 }
 0x1d8   : > { %v1514_v37 = vsel %vm3853_vm6, 0, %v3852_v39  ;;  %v1529_v49 = vsub.s32 4, %v5467_v42  ;;  %v5502_v12 = vmul.u32.u64.low %v1595_v17, %v1594_v20  ;;  %v5503_v35 = vmul.u32.u64.high %v1595_v17, %v1594_v20, %v5502_v12 }
 0x1d9   : > { %v1499_v22 = vadd.s32 %v5429_v38, %v5439_v60  ;;  %v1515_v52 = vsub.s32 32, %v1514_v37  ;;  %v1519_v4 = vsub.s32 4294967266, %v1514_v37  ;;  %v1586_v25 = vsel %vm1580_vm3, %v1583_v18, %v1585_v34 }
 0x1da   : > { %v1433_v30 = vand.u32 3, %v5465_v57  ;;  %vm1445_vm7 = vcmp.lt.s32.totalorder %v5239_v7, 0  ;;  %v1651_v6 = vand.u32 2147483647, %v5349_v53  ;;  %v1661_v2 = vadd.s32 1, %v3858_v26 }
 0x1db   : > { %v1516_v61 = vshll.u32 %v5478_v43, %v1514_v37  ;;  %v1517_v45 = vshrl.u32 %v1499_v22, %v1515_v52  ;;  %v1520_v32 = vadd.s32 127, %v1519_v4  ;;  %v1605_v55 = vadd.s32 1, %v5498_v33 }
 0x1dc   : > { %v1530_v38 = vsel %vm1445_vm7, %v1529_v49, %v5467_v42  ;;  %v1602_v60 = vmul.u32 %v1595_v17, %v1586_v25  ;;  %vm1604_vm8 = vc.u32 %v5503_v35, %v5497_v3  ;;  %vm1662_vm10 = vcmp.gt.s32.totalorder %v1661_v2, 0 }
 0x1dd   : > { %v1518_v57 = vor.u32 %v1517_v45, %v1516_v61  ;;  %v1521_v44 = vshll.u32 %v1520_v32, 23  ;;  %v1606_v39 = vsel %vm1604_vm8, %v1605_v55, %v5498_v33  ;;  %v1663_v18 = vsel %vm1662_vm10, %v1661_v2, 0 }
 0x1de   : > { %vm1431_vm9 = vweird.f32 %v5196_v50  ;;  %vm5522_vm11 = vcmp.le.f32.partialorder %v1443_v9, 0.7853982  ;;  %v1607_v28 = vadd.s32 %v1606_v39, %v1602_v60  ;;  %v1665_v42 = vand.u32 31, %v1663_v18 }
 0x1df   : > { %v4179_v17 = vpop.eup %4178  ;;  %vm1434_vm12 = vcmp.lt.s32.totalorder %v1433_v30, 2  ;;  %v1522_v54 = vor.u32 4788187, %v1521_v44  ;;  %v1532_v34 = vsel %vm5522_vm11, 0, %v1530_v38  ;;  %v1658_v47 = vand.u32 8388607, %v1651_v6 }
 0x1e0   : > { %v4181_v56 = vpop.eup %4180  ;;  %vm1435_vm13 = vcmp.eq.s32.totalorder %v1433_v30, 0  ;;  %v1439_v26 = vxor.u32 2147483648, %v4179_v17  ;;  %v1608_v20 = vadd.s32 536870912, %v1607_v28  ;;  %v1666_v33 = vsub.s32 32, %v1665_v42 }
 0x1e1   : > { %v1436_v9 = vxor.u32 2147483648, %v4181_v56  ;;  %vm1438_vm14 = vcmp.eq.s32.totalorder %v1433_v30, 2  ;;  %v1523_v37 = vand.u32 2147483647, %v1522_v54  ;;  %v1525_v49 = vcvt.s32.f32 %v1518_v57 }
 0x1e2   : > { %v1440_v12 = vsel %vm1438_vm14, %v1439_v26, %v4181_v56  ;;  %v1536_v22 = vadd.s32 3, %v1532_v34  ;;  %v5530_v52 = vshrl.u32 %v1608_v20, 30  ;;  %v1669_v4 = vshrl.u32 %v7068_v1, %v1666_v33 }
 0x1e3   : > { %v1437_v25 = vsel %vm1435_vm13, %v4179_v17, %v1436_v9  ;;  %v1526_v2 = vmul.f32 %v1525_v49, %v1523_v37  ;;  %v1659_v61 = vor.u32 8388608, %v1658_v47  ;;  %v1668_v45 = vshll.u32 %v7092_v0, %v1665_v42 }
 0x1e4   : > { %v1441_v32 = vsel %vm1434_vm12, %v1437_v25, %v1440_v12  ;;  %v1610_v55 = vshll.u32 %v5530_v52, 30  ;;  %v1672_v38 = vshrl.u32 %v7099_v5, %v1666_v33  ;;  %v1675_v60 = vshrl.u32 %v7088_v58, %v1666_v33 }
 0x1e5   : > { %v1442_v57 = vsel %vm1431_vm9, nan, %v1441_v32  ;;  %v1527_v44 = vxor.u32 2147483648, %v1526_v2  ;;  %v1664_v39 = vshrl.u32 %v1663_v18, 5  ;;  %v1671_v17 = vshll.u32 %v7068_v1, %v1665_v42 }
 0x1e6   : > { %v5541_v54 = vsub.s32 %v1607_v28, %v1610_v55  ;;  %v1670_v34 = vor.u32 %v1669_v4, %v1668_v45  ;;  %v1674_v47 = vshll.u32 %v7099_v5, %v1665_v42  ;;  %v1678_v30 = vshrl.u32 %v7076_v41, %v1666_v33  ;;  %1973 = vst [vmem:[%s4804_s28 + $0x50] sm:$0xff] %v1442_v57 }
 0x1e7   : > { %v1528_v56 = vsel %vm1445_vm7, %v1527_v44, %v1526_v2  ;;  %v1677_v26 = vshll.u32 %v7088_v58, %v1665_v42  ;;  %v1680_v50 = vshll.u32 %v7076_v41, %v1665_v42  ;;  %v1681_v20 = vshrl.u32 %v7077_v48, %v1666_v33 }
 0x1e8   : > { %v1531_v18 = vsel %vm5522_vm11, %v5239_v7, %v1528_v56  ;;  %v1613_v28 = vsub.s32 0, %v5541_v54  ;;  %v1673_v9 = vor.u32 %v1672_v38, %v1671_v17  ;;  %v1676_v37 = vor.u32 %v1675_v60, %v1674_v47 }
 0x1e9   : > { %4182 = vcosq.f32 %v1531_v18  ;;  %v1679_v49 = vor.u32 %v1678_v30, %v1677_v26  ;;  %v1682_v12 = vor.u32 %v1681_v20, %v1680_v50  ;;  %v250_v4 = vmul.f32 %v4483_v24, %v4481_v23 }
 0x1ea   : > { %4184 = vsinq.f32 %v1531_v18  ;;  %v5557_v25 = vand.u32 3, %v1536_v22  ;;  %v3855_v42 = vmin.u32 %v1613_v28, %v5541_v54  ;;  %vm1683_vm15 = vcmp.lt.s32.totalorder %v1664_v39, 1 }
 0x1eb   : > { %vm1685_vm0 = vcmp.lt.s32.totalorder %v1664_v39, 3  ;;  %v1699_v2 = vshll.u32 %v1659_v61, 8  ;;  %v1758_v43 = vand.u32 2139095040, %v5435_v29  ;;  %vm1686_vm1 = vcmp.lt.s32.totalorder %v1664_v39, 4 }
 0x1ec   : > { %v1615_v45 = vclz %v3855_v42  ;;  %v1691_v32 = vsel %vm1683_vm15, %v1670_v34, %v1673_v9  ;;  %v1695_v55 = vsel %vm1683_vm15, %v1673_v9, %v1676_v37  ;;  %v1667_v38 = vshrl.u32 %v7092_v0, %v1666_v33 }
 0x1ed   : > { %v1688_v60 = vsel %vm1686_vm1, %v1676_v37, 2102212464  ;;  %v1692_v23 = vsel %vm1686_vm1, %v1679_v49, 920167782  ;;  %v1696_v57 = vsel %vm1686_vm1, %v1682_v12, 1326507024  ;;  %vm1535_vm4 = vweird.f32 %v5239_v7 }
 0x1ee   : > { %v3856_v22 = vadd.s32 4294967294, %v1615_v45  ;;  %vm1684_vm2 = vcmp.lt.s32.totalorder %v1664_v39, 2  ;;  %v1693_v44 = vsel %vm1685_vm0, %v1676_v37, %v1692_v23  ;;  %v1697_v17 = vsel %vm1685_vm0, %v1679_v49, %v1696_v57 }
 0x1ef   : > { %v1687_v61 = vsel %vm1683_vm15, %v1667_v38, %v1670_v34  ;;  %v1694_v47 = vsel %vm1684_vm2, %v1691_v32, %v1693_v44  ;;  %v1698_v30 = vsel %vm1684_vm2, %v1695_v55, %v1697_v17  ;;  %v1759_v56 = vshrl.u32 %v1758_v43, 23 }
 0x1f0   : > { %vm3857_vm3 = vcmp.lt.s32.totalorder %v3856_v22, 0  ;;  %v1689_v26 = vsel %vm1685_vm0, %v1673_v9, %v1688_v60  ;;  %v5570_v33 = vmul.u32.u64.low %v1699_v2, %v1698_v30  ;;  %v5571_v50 = vmul.u32.u64.high %v1699_v2, %v1698_v30, %v5570_v33 }
 0x1f1   : > { %v1618_v20 = vsel %vm3857_vm3, 0, %v3856_v22  ;;  %v5573_v18 = vmul.u32.u64.low %v1699_v2, %v1694_v47  ;;  %v5574_v28 = vmul.u32.u64.high %v1699_v2, %v1694_v47, %v5573_v18  ;;  %v3862_v37 = vadd.s32 4294967169, %v1759_v56 }
 0x1f2   : > { %v5578_v49 = vadd.f32 %v5418_v59, %v250_v4  ;;  %v1603_v34 = vadd.s32 %v5497_v3, %v5503_v35  ;;  %v1619_v12 = vsub.s32 32, %v1618_v20  ;;  %v1623_v42 = vsub.s32 4294967266, %v1618_v20 }
 0x1f3   : > { %vm1538_vm5 = vcmp.lt.s32.totalorder %v5557_v25, 2  ;;  %vm1549_vm6 = vcmp.lt.s32.totalorder %v5293_v63, 0  ;;  %v1690_v9 = vsel %vm1684_vm2, %v1687_v61, %v1689_v26  ;;  %v1765_v43 = vadd.s32 1, %v3862_v37 }
 0x1f4   : > { %v1620_v45 = vshll.u32 %v5541_v54, %v1618_v20  ;;  %v1621_v32 = vshrl.u32 %v1603_v34, %v1619_v12  ;;  %v1624_v55 = vadd.s32 127, %v1623_v42  ;;  %vm1708_vm7 = vc.u32 %v5571_v50, %v5573_v18 }
 0x1f5   : > { %v1633_v3 = vsub.s32 4, %v5530_v52  ;;  %v1709_v35 = vadd.s32 1, %v5574_v28  ;;  %v1755_v4 = vand.u32 2147483647, %v5435_v29  ;;  %vm1766_vm8 = vcmp.gt.s32.totalorder %v1765_v43, 0 }
 0x1f6   : > { %v4183_v38 = vpop.eup %4182  ;;  %v1622_v60 = vor.u32 %v1621_v32, %v1620_v45  ;;  %v1625_v23 = vshll.u32 %v1624_v55, 23  ;;  %v1706_v39 = vmul.u32 %v1699_v2, %v1690_v9  ;;  %v1767_v57 = vsel %vm1766_vm8, %v1765_v43, 0 }
 0x1f7   : > { %v4185_v22 = vpop.eup %4184  ;;  %vm1539_vm10 = vcmp.eq.s32.totalorder %v5557_v25, 0  ;;  %v1543_v54 = vxor.u32 2147483648, %v4183_v38  ;;  %v1710_v44 = vsel %vm1708_vm7, %v1709_v35, %v5574_v28  ;;  %v1769_v17 = vand.u32 31, %v1767_v57 }
 0x1f8   : > { %v1540_v61 = vxor.u32 2147483648, %v4185_v22  ;;  %vm1542_vm9 = vcmp.eq.s32.totalorder %v5557_v25, 2  ;;  %vm5597_vm11 = vcmp.le.f32.partialorder %v1547_v8, 0.7853982  ;;  %v1626_v30 = vor.u32 4788187, %v1625_v23 }
 0x1f9   : > { %v1711_v56 = vadd.s32 %v1710_v44, %v1706_v39  ;;  %v1544_v2 = vsel %vm1542_vm9, %v1543_v54, %v4185_v22  ;;  %v1634_v26 = vsel %vm1549_vm6, %v1633_v3, %v5530_v52  ;;  %v1762_v33 = vand.u32 8388607, %v1755_v4 }
 0x1fa   : > { %v1770_v20 = vsub.s32 32, %v1769_v17  ;;  %v1541_v28 = vsel %vm1539_vm10, %v4183_v38, %v1540_v61  ;;  %v1627_v37 = vand.u32 2147483647, %v1626_v30  ;;  %v1629_v34 = vcvt.s32.f32 %v1622_v60 }
 0x1fb   : > { %v1712_v12 = vadd.s32 536870912, %v1711_v56  ;;  %v1545_v8 = vsel %vm1538_vm5, %v1541_v28, %v1544_v2  ;;  %v1862_v43 = vand.u32 2139095040, %v5578_v49  ;;  %v1768_v3 = vshrl.u32 %v1767_v57, 5 }
 0x1fc   : > { %v1773_v42 = vshrl.u32 %v7068_v1, %v1770_v20  ;;  %v1776_v9 = vshrl.u32 %v7099_v5, %v1770_v20  ;;  %v1546_v52 = vsel %vm1535_vm4, nan, %v1545_v8  ;;  %v1630_v45 = vmul.f32 %v1629_v34, %v1627_v37 }
 0x1fd   : > { %v5613_v32 = vshrl.u32 %v1712_v12, 30  ;;  %v1779_v55 = vshrl.u32 %v7088_v58, %v1770_v20  ;;  %v1772_v35 = vshll.u32 %v7092_v0, %v1769_v17  ;;  %v1775_v25 = vshll.u32 %v7068_v1, %v1769_v17  ;;  %1974 = vst [vmem:[%s4804_s28 + $0x58] sm:$0xff] %v1546_v52 }
 0x1fe   : > { %v1782_v38 = vshrl.u32 %v7076_v41, %v1770_v20  ;;  %v1631_v60 = vxor.u32 2147483648, %v1630_v45  ;;  %v1778_v39 = vshll.u32 %v7099_v5, %v1769_v17  ;;  %v1781_v7 = vshll.u32 %v7088_v58, %v1769_v17 }
 0x1ff   : > { %v1714_v23 = vshll.u32 %v5613_v32, 30  ;;  %v1774_v22 = vor.u32 %v1773_v42, %v1772_v35  ;;  %v1777_v54 = vor.u32 %v1776_v9, %v1775_v25  ;;  %v1784_v44 = vshll.u32 %v7076_v41, %v1769_v17 }
 0x200   : > { %v1785_v57 = vshrl.u32 %v7077_v48, %v1770_v20  ;;  %v1632_v61 = vsel %vm1549_vm6, %v1631_v60, %v1630_v45  ;;  %v1780_v2 = vor.u32 %v1779_v55, %v1778_v39  ;;  %v1783_v28 = vor.u32 %v1782_v38, %v1781_v7 }
 0x201   : > { %v5627_v30 = vsub.s32 %v1711_v56, %v1714_v23  ;;  %v1635_v37 = vsel %vm5597_vm11, %v5293_v63, %v1632_v61  ;;  %v1636_v34 = vsel %vm5597_vm11, 0, %v1634_v26  ;;  %v1763_v12 = vor.u32 8388608, %v1762_v33 }
 0x202   : > { %v1786_v8 = vor.u32 %v1785_v57, %v1784_v44  ;;  %4186 = vcosq.f32 %v1635_v37  ;;  %v1771_v42 = vshrl.u32 %v7092_v0, %v1770_v20  ;;  %v1863_v9 = vshrl.u32 %v1862_v43, 23 }
 0x203   : > { %v1717_v17 = vsub.s32 0, %v5627_v30  ;;  %4188 = vsinq.f32 %v1635_v37  ;;  %vm1787_vm12 = vcmp.lt.s32.totalorder %v1768_v3, 1  ;;  %vm1789_vm13 = vcmp.lt.s32.totalorder %v1768_v3, 3 }
 0x204   : > { %vm1790_vm14 = vcmp.lt.s32.totalorder %v1768_v3, 4  ;;  %v1795_v45 = vsel %vm1787_vm12, %v1774_v22, %v1777_v54  ;;  %v1640_v35 = vadd.s32 3, %v1636_v34  ;;  %v1799_v26 = vsel %vm1787_vm12, %v1777_v54, %v1780_v2 }
 0x205   : > { %v3859_v56 = vmin.u32 %v1717_v17, %v5627_v30  ;;  %v1792_v52 = vsel %vm1790_vm14, %v1780_v2, 2102212464  ;;  %v1796_v55 = vsel %vm1790_vm14, %v1783_v28, 920167782  ;;  %v1800_v33 = vsel %vm1790_vm14, %v1786_v8, 1326507024 }
 0x206   : > { %v1797_v47 = vsel %vm1789_vm13, %v1780_v2, %v1796_v55  ;;  %vm1788_vm15 = vcmp.lt.s32.totalorder %v1768_v3, 2  ;;  %v1791_v38 = vsel %vm1787_vm12, %v1771_v42, %v1774_v22  ;;  %v1803_v60 = vshll.u32 %v1763_v12, 8 }
 0x207   : > { %v1719_v25 = vclz %v3859_v56  ;;  %v1793_v20 = vsel %vm1789_vm13, %v1777_v54, %v1792_v52  ;;  %v1798_v43 = vsel %vm1788_vm15, %v1795_v45, %v1797_v47  ;;  %v1801_v23 = vsel %vm1789_vm13, %v1783_v28, %v1800_v33 }
 0x208   : > { %v3866_v39 = vadd.s32 4294967169, %v1863_v9  ;;  %v1802_v44 = vsel %vm1788_vm15, %v1799_v26, %v1801_v23  ;;  %v5640_v57 = vmul.u32.u64.low %v1803_v60, %v1798_v43  ;;  %v5641_v61 = vmul.u32.u64.high %v1803_v60, %v1798_v43, %v5640_v57 }
 0x209   : > { %v3860_v7 = vadd.s32 4294967294, %v1719_v25  ;;  %v5644_v37 = vmul.u32.u64.low %v1803_v60, %v1802_v44  ;;  %v5645_v34 = vmul.u32.u64.high %v1803_v60, %v1802_v44, %v5644_v37  ;;  %v1794_v8 = vsel %vm1788_vm15, %v1791_v38, %v1793_v20 }
 0x20a   : > { %v1869_v2 = vadd.s32 1, %v3866_v39  ;;  %v1641_v22 = vand.u32 3, %v1640_v35  ;;  %v1707_v3 = vadd.s32 %v5573_v18, %v5571_v50  ;;  %v1813_v17 = vadd.s32 1, %v5641_v61 }
 0x20b   : > { %vm3861_vm0 = vcmp.lt.s32.totalorder %v3860_v7, 0  ;;  %vm1639_vm2 = vweird.f32 %v5293_v63  ;;  %v1810_v42 = vmul.u32 %v1803_v60, %v1794_v8  ;;  %vm1812_vm3 = vc.u32 %v5645_v34, %v5640_v57 }
 0x20c   : > { %v1722_v12 = vsel %vm3861_vm0, 0, %v3860_v7  ;;  %vm1870_vm1 = vcmp.gt.s32.totalorder %v1869_v2, 0  ;;  %v1814_v55 = vsel %vm1812_vm3, %v1813_v17, %v5641_v61  ;;  %vm1653_vm4 = vcmp.lt.s32.totalorder %v5349_v53, 0 }
 0x20d   : > { %v1723_v54 = vsub.s32 32, %v1722_v12  ;;  %v1727_v28 = vsub.s32 4294967266, %v1722_v12  ;;  %v1871_v9 = vsel %vm1870_vm1, %v1869_v2, 0  ;;  %v1724_v56 = vshll.u32 %v5627_v30, %v1722_v12 }
 0x20e   : > { %v1737_v50 = vsub.s32 4, %v5613_v32  ;;  %v1815_v18 = vadd.s32 %v1814_v55, %v1810_v42  ;;  %v1873_v47 = vand.u32 31, %v1871_v9  ;;  %vm1646_vm5 = vcmp.eq.s32.totalorder %v1641_v22, 2 }
 0x20f   : > { %v1725_v52 = vshrl.u32 %v1707_v3, %v1723_v54  ;;  %v1728_v45 = vadd.s32 127, %v1727_v28  ;;  %v4187_v35 = vpop.eup %4186  ;;  %vm5659_vm6 = vcmp.le.f32.partialorder %v1651_v6, 0.7853982  ;;  %v1859_v43 = vand.u32 2147483647, %v5578_v49 }
 0x210   : > { %v4189_v26 = vpop.eup %4188  ;;  %v1647_v33 = vxor.u32 2147483648, %v4187_v35  ;;  %v1816_v20 = vadd.s32 536870912, %v1815_v18  ;;  %v1874_v23 = vsub.s32 32, %v1873_v47  ;;  %vm1642_vm7 = vcmp.lt.s32.totalorder %v1641_v22, 2 }
 0x211   : > { %v1726_v25 = vor.u32 %v1725_v52, %v1724_v56  ;;  %v1729_v38 = vshll.u32 %v1728_v45, 23  ;;  %v1644_v60 = vxor.u32 2147483648, %v4189_v26  ;;  %vm1643_vm8 = vcmp.eq.s32.totalorder %v1641_v22, 0 }
 0x212   : > { %v1648_v39 = vsel %vm1646_vm5, %v1647_v33, %v4189_v26  ;;  %v1738_v37 = vsel %vm1653_vm4, %v1737_v50, %v5613_v32  ;;  %v5667_v2 = vshrl.u32 %v1816_v20, 30  ;;  %v1877_v12 = vshrl.u32 %v7068_v1, %v1874_v23 }
 0x213   : > { %v1730_v7 = vor.u32 4788187, %v1729_v38  ;;  %v1645_v44 = vsel %vm1643_vm8, %v4187_v35, %v1644_v60  ;;  %v1733_v61 = vcvt.s32.f32 %v1726_v25  ;;  %v1880_v3 = vshrl.u32 %v7099_v5, %v1874_v23 }
 0x214   : > { %v1649_v6 = vsel %vm1642_vm7, %v1645_v44, %v1648_v39  ;;  %v1818_v54 = vshll.u32 %v5667_v2, 30  ;;  %v1866_v28 = vand.u32 8388607, %v1859_v43  ;;  %v1872_v17 = vshrl.u32 %v1871_v9, 5 }
 0x215   : > { %v1731_v8 = vand.u32 2147483647, %v1730_v7  ;;  %v1650_v22 = vsel %vm1639_vm2, nan, %v1649_v6  ;;  %v1876_v32 = vshll.u32 %v7092_v0, %v1873_v47  ;;  %v1879_v56 = vshll.u32 %v7068_v1, %v1873_v47 }
 0x216   : > { %v1883_v52 = vshrl.u32 %v7088_v58, %v1874_v23  ;;  %1975 = vst [vmem:[%s4804_s28 + $0x60] sm:$0xff] %v1650_v22  ;;  %v1819_v45 = vsub.s32 %v1815_v18, %v1818_v54  ;;  %v1882_v55 = vshll.u32 %v7099_v5, %v1873_v47  ;;  %v1885_v63 = vshll.u32 %v7088_v58, %v1873_v47 }
 0x217   : > { %v1734_v42 = vmul.f32 %v1733_v61, %v1731_v8  ;;  %v1886_v35 = vshrl.u32 %v7076_v41, %v1874_v23  ;;  %v1878_v26 = vor.u32 %v1877_v12, %v1876_v32  ;;  %v1881_v33 = vor.u32 %v1880_v3, %v1879_v56 }
 0x218   : > { %v1889_v9 = vshrl.u32 %v7077_v48, %v1874_v23  ;;  %v1821_v25 = vsub.s32 0, %v1819_v45  ;;  %v1884_v38 = vor.u32 %v1883_v52, %v1882_v55  ;;  %v1888_v20 = vshll.u32 %v7076_v41, %v1873_v47 }
 0x219   : > { %v1735_v50 = vxor.u32 2147483648, %v1734_v42  ;;  %v1887_v60 = vor.u32 %v1886_v35, %v1885_v63  ;;  %v1740_v18 = vsel %vm5659_vm6, 0, %v1738_v37  ;;  %v1867_v7 = vor.u32 8388608, %v1866_v28 }
 0x21a   : > { %vm1891_vm10 = vcmp.lt.s32.totalorder %v1872_v17, 1  ;;  %v3863_v61 = vmin.u32 %v1821_v25, %v1819_v45  ;;  %v1890_v6 = vor.u32 %v1889_v9, %v1888_v20  ;;  %vm1894_vm9 = vcmp.lt.s32.totalorder %v1872_v17, 4 }
 0x21b   : > { %v1736_v39 = vsel %vm1653_vm4, %v1735_v50, %v1734_v42  ;;  %v1875_v8 = vshrl.u32 %v7092_v0, %v1874_v23  ;;  %v1899_v47 = vsel %vm1891_vm10, %v1878_v26, %v1881_v33  ;;  %v1900_v12 = vsel %vm1894_vm9, %v1887_v60, 920167782 }
 0x21c   : > { %v1739_v44 = vsel %vm5659_vm6, %v5349_v53, %v1736_v39  ;;  %v1823_v3 = vclz %v3863_v61  ;;  %vm1893_vm11 = vcmp.lt.s32.totalorder %v1872_v17, 3  ;;  %v1896_v37 = vsel %vm1894_vm9, %v1884_v38, 2102212464 }
 0x21d   : > { %4190 = vcosq.f32 %v1739_v44  ;;  %vm1892_vm12 = vcmp.lt.s32.totalorder %v1872_v17, 2  ;;  %v1901_v22 = vsel %vm1893_vm11, %v1884_v38, %v1900_v12  ;;  %v1903_v30 = vsel %vm1891_vm10, %v1881_v33, %v1884_v38 }
 0x21e   : > { %4192 = vsinq.f32 %v1739_v44  ;;  %v1907_v54 = vshll.u32 %v1867_v7, 8  ;;  %v3864_v28 = vadd.s32 4294967294, %v1823_v3  ;;  %v1895_v42 = vsel %vm1891_vm10, %v1875_v8, %v1878_v26 }
 0x21f   : > { %v1902_v23 = vsel %vm1892_vm12, %v1899_v47, %v1901_v22  ;;  %v1904_v32 = vsel %vm1894_vm9, %v1890_v6, 1326507024  ;;  %v1897_v56 = vsel %vm1893_vm11, %v1881_v33, %v1896_v37  ;;  %v1744_v50 = vadd.s32 3, %v1740_v18 }
 0x220   : > { %v1905_v52 = vsel %vm1893_vm11, %v1887_v60, %v1904_v32  ;;  %v5700_v55 = vmul.u32.u64.low %v1907_v54, %v1902_v23  ;;  %v5701_v63 = vmul.u32.u64.high %v1907_v54, %v1902_v23, %v5700_v55  ;;  %vm3865_vm13 = vcmp.lt.s32.totalorder %v3864_v28, 0  ;;  %v3805_v60 = vld [vmem:[%s4464_s25 + $0x1] ss:$2 sm:$0x3] }
 0x221   : > { %v1906_v35 = vsel %vm1892_vm12, %v1903_v30, %v1905_v52  ;;  %v1826_v9 = vsel %vm3865_vm13, 0, %v3864_v28  ;;  %v1811_v26 = vadd.s32 %v5640_v57, %v5645_v34  ;;  %v1898_v33 = vsel %vm1892_vm12, %v1895_v42, %v1897_v56 }
 0x222   : > { %v5705_v25 = vmul.u32.u64.low %v1907_v54, %v1906_v35  ;;  %v5706_v38 = vmul.u32.u64.high %v1907_v54, %v1906_v35, %v5705_v25  ;;  %v1827_v20 = vsub.s32 32, %v1826_v9  ;;  %v1831_v39 = vsub.s32 4294967266, %v1826_v9 }
 0x223   : > { %v1917_v7 = vadd.s32 1, %v5701_v63  ;;  %v1828_v44 = vshll.u32 %v1819_v45, %v1826_v9  ;;  %v1745_v8 = vand.u32 3, %v1744_v50  ;;  %v1914_v47 = vmul.u32 %v1907_v54, %v1898_v33 }
 0x224   : > { %v1829_v61 = vshrl.u32 %v1811_v26, %v1827_v20  ;;  %v1832_v6 = vadd.s32 127, %v1831_v39  ;;  %vm1916_vm14 = vc.u32 %v5706_v38, %v5700_v55  ;;  %v7111_v57 = vsub.s32 0, %v4459_v15 }
 0x225   : > { %v1918_v3 = vsel %vm1916_vm14, %v1917_v7, %v5701_v63  ;;  %v1841_v17 = vsub.s32 4, %v5667_v2  ;;  %vm1743_vm15 = vweird.f32 %v5349_v53  ;;  %vm5724_vm0 = vcmp.le.f32.partialorder %v1755_v4, 0.7853982 }
 0x226   : > { %v1830_v18 = vor.u32 %v1829_v61, %v1828_v44  ;;  %v1833_v12 = vshll.u32 %v1832_v6, 23  ;;  %v5718_v34 = vrot.slane %v3805_v60, %v7111_v57  ;;  %v1919_v37 = vadd.s32 %v1918_v3, %v1914_v47 }
 0x227   : > { %vm1757_vm1 = vcmp.lt.s32.totalorder %v5435_v29, 0  ;;  %vm1750_vm2 = vcmp.eq.s32.totalorder %v1745_v8, 2  ;;  %v7114_v23 = vsub.s32 1, %v4459_v15  ;;  %vm1747_vm3 = vcmp.eq.s32.totalorder %v1745_v8, 0 }
 0x228   : > { %v1834_v30 = vor.u32 4788187, %v1833_v12  ;;  %v1920_v42 = vadd.s32 536870912, %v1919_v37  ;;  %v1837_v63 = vcvt.s32.f32 %v1830_v18  ;;  %v1990_v4 = vmul.f32 %v5718_v34, %v4453_v11 }
 0x229   : > { %v5731_v32 = vrot.slane %v3805_v60, %v7114_v23  ;;  %v1842_v50 = vsel %vm1757_vm1, %v1841_v17, %v5667_v2  ;;  %vm1746_vm4 = vcmp.lt.s32.totalorder %v1745_v8, 2  ;;  %vm1861_vm5 = vcmp.lt.s32.totalorder %v5578_v49, 0 }
 0x22a   : > { %v4191_v22 = vpop.eup %4190  ;;  %v1835_v52 = vand.u32 2147483647, %v1834_v30  ;;  %v1921_v9 = vshrl.u32 %v1920_v42, 30  ;;  %v5739_v15 = vadd.f32 %v1990_v4, %v4489_v27  ;;  %v1844_v2 = vsel %vm5724_vm0, 0, %v1842_v50 }
 0x22b   : > { %v4193_v54 = vpop.eup %4192  ;;  %v1751_v28 = vxor.u32 2147483648, %v4191_v22  ;;  %v1991_v44 = vmul.f32 %v5731_v32, %v4453_v11  ;;  %vm5755_vm6 = vcmp.le.f32.partialorder %v1859_v43, 0.7853982  ;;  %v1848_v12 = vadd.s32 3, %v1844_v2 }
 0x22c   : > { %v1748_v56 = vxor.u32 2147483648, %v4193_v54  ;;  %v1838_v26 = vmul.f32 %v1837_v63, %v1835_v52  ;;  %v1922_v39 = vshll.u32 %v1921_v9, 30  ;;  %v1945_v33 = vsub.s32 4, %v1921_v9 }
 0x22d   : > { %v1752_v35 = vsel %vm1750_vm2, %v1751_v28, %v4193_v54  ;;  %v5760_v47 = vadd.f32 %v1991_v44, %v4489_v27  ;;  %v2022_v18 = vand.u32 2147483647, %v5739_v15  ;;  %v2025_v57 = vand.u32 2139095040, %v5739_v15 }
 0x22e   : > { %v1749_v25 = vsel %vm1747_vm3, %v4191_v22, %v1748_v56  ;;  %v1839_v7 = vxor.u32 2147483648, %v1838_v26  ;;  %v1923_v61 = vsub.s32 %v1919_v37, %v1922_v39  ;;  %v1946_v6 = vsel %vm1861_vm5, %v1945_v33, %v1921_v9 }
 0x22f   : > { %v1753_v20 = vsel %vm1746_vm4, %v1749_v25, %v1752_v35  ;;  %v1948_v43 = vsel %vm5755_vm6, 0, %v1946_v6  ;;  %v1992_v17 = vmul.f32 %v5718_v34, %v4457_v14  ;;  %v2026_v37 = vshrl.u32 %v2025_v57, 23 }
 0x230   : > { %v1754_v60 = vsel %vm1743_vm15, nan, %v1753_v20  ;;  %v1840_v8 = vsel %vm1757_vm1, %v1839_v7, %v1838_v26  ;;  %v1925_v3 = vsub.s32 0, %v1923_v61  ;;  %v2029_v22 = vand.u32 8388607, %v2022_v18 }
 0x231   : > { %1976 = vst [vmem:[%s4804_s28 + $0x68] sm:$0xff] %v1754_v60  ;;  %v1843_v11 = vsel %vm5724_vm0, %v5435_v29, %v1840_v8  ;;  %v5774_v45 = vadd.f32 %v1992_v17, %v4498_v31  ;;  %v2126_v30 = vand.u32 2147483647, %v5760_v47  ;;  %v2129_v54 = vand.u32 2139095040, %v5760_v47 }
 0x232   : > { %4194 = vcosq.f32 %v1843_v11  ;;  %v3867_v27 = vmin.u32 %v1925_v3, %v1923_v61  ;;  %v1849_v28 = vand.u32 3, %v1848_v12  ;;  %v1952_v23 = vadd.s32 3, %v1948_v43 }
 0x233   : > { %4196 = vsinq.f32 %v1843_v11  ;;  %v3870_v56 = vadd.s32 4294967169, %v2026_v37  ;;  %v2130_v52 = vshrl.u32 %v2129_v54, 23  ;;  %v2030_v4 = vor.u32 8388608, %v2029_v22 }
 0x234   : > { %v1927_v42 = vclz %v3867_v27  ;;  %v5780_v9 = vand.u32 8388607, %v2126_v30  ;;  %v2233_v25 = vand.u32 2139095040, %v5774_v45  ;;  %vm1854_vm7 = vcmp.eq.s32.totalorder %v1849_v28, 2 }
 0x235   : > { %v2032_v35 = vadd.s32 1, %v3870_v56  ;;  %v3874_v50 = vadd.s32 4294967169, %v2130_v52  ;;  %v1915_v26 = vadd.s32 %v5700_v55, %v5706_v38  ;;  %v5787_v20 = vmul.f32 %v5731_v32, %v4457_v14 }
 0x236   : > { %v3868_v63 = vadd.s32 4294967294, %v1927_v42  ;;  %vm1851_vm10 = vcmp.eq.s32.totalorder %v1849_v28, 0  ;;  %v5789_v33 = vand.u32 3, %v1952_v23  ;;  %vm1850_vm11 = vcmp.lt.s32.totalorder %v1849_v28, 2 }
 0x237   : > { %vm2033_vm9 = vcmp.gt.s32.totalorder %v2032_v35, 0  ;;  %v2136_v60 = vadd.s32 1, %v3874_v50  ;;  %v5791_v6 = vshll.u32 %v2030_v4, 8  ;;  %vm1847_vm12 = vweird.f32 %v5435_v29 }
 0x238   : > { %vm3869_vm8 = vcmp.lt.s32.totalorder %v3868_v63, 0  ;;  %v2034_v44 = vsel %vm2033_vm9, %v2032_v35, 0  ;;  %v2134_v38 = vor.u32 8388608, %v5780_v9  ;;  %v5795_v14 = vshrl.u32 %v2233_v25, 23 }
 0x239   : > { %v1930_v39 = vsel %vm3869_vm8, 0, %v3868_v63  ;;  %v2036_v55 = vand.u32 31, %v2034_v44  ;;  %vm2137_vm13 = vcmp.gt.s32.totalorder %v2136_v60, 0  ;;  %v2035_v3 = vshrl.u32 %v2034_v44, 5 }
 0x23a   : > { %v1931_v7 = vsub.s32 32, %v1930_v39  ;;  %v1935_v2 = vsub.s32 4294967266, %v1930_v39  ;;  %v1932_v8 = vshll.u32 %v1923_v61, %v1930_v39  ;;  %v2138_v27 = vsel %vm2137_vm13, %v2136_v60, 0 }
 0x23b   : > { %v2037_v57 = vsub.s32 32, %v2036_v55  ;;  %v2039_v43 = vshll.u32 %v7092_v0, %v2036_v55  ;;  %v2042_v17 = vshll.u32 %v7068_v1, %v2036_v55  ;;  %v2045_v42 = vshll.u32 %v7099_v5, %v2036_v55 }
 0x23c   : > { %v1933_v11 = vshrl.u32 %v1915_v26, %v1931_v7  ;;  %v1936_v12 = vadd.s32 127, %v1935_v2  ;;  %v2048_v23 = vshll.u32 %v7088_v58, %v2036_v55  ;;  %v2051_v4 = vshll.u32 %v7076_v41, %v2036_v55 }
 0x23d   : > { %v2040_v61 = vshrl.u32 %v7068_v1, %v2037_v57  ;;  %v2043_v63 = vshrl.u32 %v7099_v5, %v2037_v57  ;;  %v2046_v26 = vshrl.u32 %v7088_v58, %v2037_v57  ;;  %v2049_v2 = vshrl.u32 %v7076_v41, %v2037_v57 }
 0x23e   : > { %v1934_v22 = vor.u32 %v1933_v11, %v1932_v8  ;;  %v1937_v54 = vshll.u32 %v1936_v12, 23  ;;  %v2052_v12 = vshrl.u32 %v7077_v48, %v2037_v57  ;;  %vm2054_vm14 = vcmp.lt.s32.totalorder %v2035_v3, 1 }
 0x23f   : > { %v4195_v37 = vpop.eup %4194  ;;  %v2041_v60 = vor.u32 %v2040_v61, %v2039_v43  ;;  %v2044_v7 = vor.u32 %v2043_v63, %v2042_v17  ;;  %v2047_v11 = vor.u32 %v2046_v26, %v2045_v42  ;;  %vm2055_vm15 = vcmp.lt.s32.totalorder %v2035_v3, 2 }
 0x240   : > { %v4197_v56 = vpop.eup %4196  ;;  %v1855_v52 = vxor.u32 2147483648, %v4195_v37  ;;  %v1938_v50 = vor.u32 4788187, %v1937_v54  ;;  %v1941_v25 = vcvt.s32.f32 %v1934_v22  ;;  %v2038_v54 = vshrl.u32 %v7092_v0, %v2037_v57 }
 0x241   : > { %v1852_v35 = vxor.u32 2147483648, %v4197_v56  ;;  %v2050_v22 = vor.u32 %v2049_v2, %v2048_v23  ;;  %v2053_v43 = vor.u32 %v2052_v12, %v2051_v4  ;;  %vm2056_vm0 = vcmp.lt.s32.totalorder %v2035_v3, 3 }
 0x242   : > { %v1856_v39 = vsel %vm1854_vm7, %v1855_v52, %v4197_v56  ;;  %v1939_v8 = vand.u32 2147483647, %v1938_v50  ;;  %vm2057_vm1 = vcmp.lt.s32.totalorder %v2035_v3, 4  ;;  %v2058_v17 = vsel %vm2054_vm14, %v2038_v54, %v2041_v60 }
 0x243   : > { %v1853_v44 = vsel %vm1851_vm10, %v4195_v37, %v1852_v35  ;;  %v2062_v37 = vsel %vm2054_vm14, %v2041_v60, %v2044_v7  ;;  %v2059_v61 = vsel %vm2057_vm1, %v2047_v11, 2102212464  ;;  %v2063_v63 = vsel %vm2057_vm1, %v2050_v22, 920167782 }
 0x244   : > { %v1857_v55 = vsel %vm1850_vm11, %v1853_v44, %v1856_v39  ;;  %v1942_v52 = vmul.f32 %v1941_v25, %v1939_v8  ;;  %v2066_v28 = vsel %vm2054_vm14, %v2044_v7, %v2047_v11  ;;  %v2060_v35 = vsel %vm2056_vm0, %v2044_v7, %v2059_v61 }
 0x245   : > { %v1858_v56 = vsel %vm1847_vm12, nan, %v1857_v55  ;;  %v2064_v50 = vsel %vm2056_vm0, %v2047_v11, %v2063_v63  ;;  %v2067_v57 = vsel %vm2057_vm1, %v2053_v43, 1326507024  ;;  %v2140_v23 = vand.u32 31, %v2138_v27 }
 0x246   : > { %1977 = vst [vmem:[%s4804_s28 + $0x70] sm:$0xff] %v1858_v56  ;;  %v1943_v42 = vxor.u32 2147483648, %v1942_v52  ;;  %v2061_v25 = vsel %vm2055_vm15, %v2058_v17, %v2060_v35  ;;  %v2065_v4 = vsel %vm2055_vm15, %v2062_v37, %v2064_v50  ;;  %v2068_v26 = vsel %vm2056_vm0, %v2050_v22, %v2067_v57 }
 0x247   : > { %v2069_v60 = vsel %vm2055_vm15, %v2066_v28, %v2068_v26  ;;  %v5823_v2 = vmul.u32.u64.low %v5791_v6, %v2065_v4  ;;  %v5824_v7 = vmul.u32.u64.high %v5791_v6, %v2065_v4, %v5823_v2  ;;  %v5833_v11 = vshll.u32 %v2134_v38, 8 }
 0x248   : > { %v1944_v29 = vsel %vm1861_vm5, %v1943_v42, %v1942_v52  ;;  %v5828_v44 = vmul.u32.u64.low %v5791_v6, %v2069_v60  ;;  %v5829_v8 = vmul.u32.u64.high %v5791_v6, %v2069_v60, %v5828_v44  ;;  %v2139_v12 = vshrl.u32 %v2138_v27, 5 }
 0x249   : > { %v1947_v39 = vsel %vm5755_vm6, %v5578_v49, %v1944_v29  ;;  %v2141_v53 = vsub.s32 32, %v2140_v23  ;;  %v3878_v3 = vadd.s32 4294967169, %v5795_v14  ;;  %v2077_v55 = vmul.u32 %v5791_v6, %v2061_v25 }
 0x24a   : > { %4198 = vcosq.f32 %v1947_v39  ;;  %v2143_v54 = vshll.u32 %v7092_v0, %v2140_v23  ;;  %v2146_v22 = vshll.u32 %v7068_v1, %v2140_v23  ;;  %v2149_v56 = vshll.u32 %v7099_v5, %v2140_v23 }
 0x24b   : > { %4200 = vsinq.f32 %v1947_v39  ;;  %v2080_v52 = vadd.s32 1, %v5824_v7  ;;  %v2144_v43 = vshrl.u32 %v7068_v1, %v2141_v53  ;;  %v2147_v9 = vshrl.u32 %v7099_v5, %v2141_v53 }
 0x24c   : > { %v2152_v38 = vshll.u32 %v7088_v58, %v2140_v23  ;;  %vm2079_vm2 = vc.u32 %v5829_v8, %v5823_v2  ;;  %v2150_v14 = vshrl.u32 %v7088_v58, %v2141_v53  ;;  %v2153_v6 = vshrl.u32 %v7076_v41, %v2141_v53 }
 0x24d   : > { %v2155_v27 = vshll.u32 %v7076_v41, %v2140_v23  ;;  %v2081_v17 = vsel %vm2079_vm2, %v2080_v52, %v5824_v7  ;;  %v2145_v37 = vor.u32 %v2144_v43, %v2143_v54  ;;  %v2148_v42 = vor.u32 %v2147_v9, %v2146_v22 }
 0x24e   : > { %v2156_v61 = vshrl.u32 %v7077_v48, %v2141_v53  ;;  %v2082_v63 = vadd.s32 %v2081_v17, %v2077_v55  ;;  %v2151_v28 = vor.u32 %v2150_v14, %v2149_v56  ;;  %v2154_v35 = vor.u32 %v2153_v6, %v2152_v38 }
 0x24f   : > { %vm2158_vm3 = vcmp.lt.s32.totalorder %v2139_v12, 1  ;;  %v2142_v50 = vshrl.u32 %v7092_v0, %v2141_v53  ;;  %vm2160_vm4 = vcmp.lt.s32.totalorder %v2139_v12, 3  ;;  %vm2161_vm5 = vcmp.lt.s32.totalorder %v2139_v12, 4 }
 0x250   : > { %v2157_v57 = vor.u32 %v2156_v61, %v2155_v27  ;;  %v2083_v29 = vadd.s32 536870912, %v2082_v63  ;;  %v2163_v25 = vsel %vm2161_vm5, %v2151_v28, 2102212464  ;;  %v2166_v4 = vsel %vm2158_vm3, %v2145_v37, %v2148_v42 }
 0x251   : > { %v2167_v26 = vsel %vm2161_vm5, %v2154_v35, 920167782  ;;  %vm2159_vm6 = vcmp.lt.s32.totalorder %v2139_v12, 2  ;;  %v2170_v39 = vsel %vm2158_vm3, %v2148_v42, %v2151_v28  ;;  %v2162_v44 = vsel %vm2158_vm3, %v2142_v50, %v2145_v37 }
 0x252   : > { %v2168_v23 = vsel %vm2160_vm4, %v2151_v28, %v2167_v26  ;;  %v2171_v60 = vsel %vm2161_vm5, %v2157_v57, 1326507024  ;;  %v2084_v7 = vshrl.u32 %v2083_v29, 30  ;;  %v2164_v22 = vsel %vm2160_vm4, %v2148_v42, %v2163_v25 }
 0x253   : > { %v2169_v55 = vsel %vm2159_vm6, %v2166_v4, %v2168_v23  ;;  %v2172_v54 = vsel %vm2160_vm4, %v2154_v35, %v2171_v60  ;;  %vm1951_vm7 = vweird.f32 %v5578_v49  ;;  %vm1954_vm8 = vcmp.lt.s32.totalorder %v5789_v33, 2 }
 0x254   : > { %v2173_v56 = vsel %vm2159_vm6, %v2170_v39, %v2172_v54  ;;  %v5855_v53 = vmul.u32.u64.low %v5833_v11, %v2169_v55  ;;  %v5856_v52 = vmul.u32.u64.high %v5833_v11, %v2169_v55, %v5855_v53  ;;  %v2085_v43 = vshll.u32 %v2084_v7, 30 }
 0x255   : > { %v5860_v9 = vmul.u32.u64.low %v5833_v11, %v2173_v56  ;;  %v5861_v38 = vmul.u32.u64.high %v5833_v11, %v2173_v56, %v5860_v9  ;;  %v1994_v6 = vmul.f32 %v5718_v34, %v4451_v10  ;;  %v5868_v27 = vadd.f32 %v5787_v20, %v4498_v31 }
 0x256   : > { %v2240_v17 = vadd.s32 1, %v3878_v3  ;;  %v5870_v61 = vsub.s32 %v2082_v63, %v2085_v43  ;;  %v2165_v28 = vsel %vm2159_vm6, %v2162_v44, %v2164_v22  ;;  %v7067_v35 = vand.u32 2147483647, %v5774_v45 }
 0x257   : > { %v4199_v14 = vpop.eup %4198  ;;  %vm1958_vm10 = vcmp.eq.s32.totalorder %v5789_v33, 2  ;;  %v2184_v57 = vadd.s32 1, %v5856_v52  ;;  %vm1955_vm11 = vcmp.eq.s32.totalorder %v5789_v33, 0  ;;  %v2108_v3 = vsub.s32 4, %v2084_v7 }
 0x258   : > { %v4201_v37 = vpop.eup %4200  ;;  %v1959_v42 = vxor.u32 2147483648, %v4199_v14  ;;  %vm2241_vm9 = vcmp.gt.s32.totalorder %v2240_v17, 0  ;;  %v2088_v20 = vsub.s32 0, %v5870_v61  ;;  %v2181_v63 = vmul.u32 %v5833_v11, %v2165_v28 }
 0x259   : > { %v1956_v50 = vxor.u32 2147483648, %v4201_v37  ;;  %vm2183_vm12 = vc.u32 %v5861_v38, %v5855_v53  ;;  %v2242_v12 = vsel %vm2241_vm9, %v2240_v17, 0  ;;  %v2237_v23 = vand.u32 8388607, %v7067_v35 }
 0x25a   : > { %v1960_v31 = vsel %vm1958_vm10, %v1959_v42, %v4201_v37  ;;  %v3871_v4 = vmin.u32 %v2088_v20, %v5870_v61  ;;  %v2185_v26 = vsel %vm2183_vm12, %v2184_v57, %v5856_v52  ;;  %vm2024_vm13 = vcmp.lt.s32.totalorder %v5739_v15, 0 }
 0x25b   : > { %v1957_v29 = vsel %vm1955_vm11, %v4199_v14, %v1956_v50  ;;  %v2186_v60 = vadd.s32 %v2185_v26, %v2181_v63  ;;  %v2244_v11 = vand.u32 31, %v2242_v12  ;;  %v5892_v44 = vmul.f32 %v5731_v32, %v4451_v10 }
 0x25c   : > { %v1961_v25 = vsel %vm1954_vm8, %v1957_v29, %v1960_v31  ;;  %v2090_v33 = vclz %v3871_v4  ;;  %v5896_v55 = vsel %vm2024_vm13, %v2108_v3, %v2084_v7  ;;  %v5900_v54 = vmul.f32 %v5718_v34, %v4455_v13 }
 0x25d   : > { %v1962_v39 = vsel %vm1951_vm7, nan, %v1961_v25  ;;  %v5903_v49 = vadd.f32 %v1994_v6, %v4595_v40  ;;  %v2187_v22 = vadd.s32 536870912, %v2186_v60  ;;  %v2245_v56 = vsub.s32 32, %v2244_v11 }
 0x25e   : > { %1978 = vst [vmem:[%s4804_s28 + $0x78] sm:$0xff] %v1962_v39  ;;  %vm5907_vm14 = vcmp.le.f32.partialorder %v2022_v18, 0.7853982  ;;  %v2078_v10 = vadd.s32 %v5823_v2, %v5829_v8  ;;  %v3872_v7 = vadd.s32 4294967294, %v2090_v33  ;;  %v2238_v43 = vor.u32 8388608, %v2237_v23 }
 0x25f   : > { %v2111_v9 = vsel %vm5907_vm14, 0, %v5896_v55  ;;  %v5917_v14 = vadd.s32 %v5855_v53, %v5861_v38  ;;  %v5919_v6 = vshrl.u32 %v2187_v22, 30  ;;  %v2243_v18 = vshrl.u32 %v2242_v12, 5 }
 0x260   : > { %vm3873_vm15 = vcmp.lt.s32.totalorder %v3872_v7, 0  ;;  %v2247_v37 = vshll.u32 %v7092_v0, %v2244_v11  ;;  %v2248_v42 = vshrl.u32 %v7068_v1, %v2245_v56  ;;  %v2251_v28 = vshrl.u32 %v7099_v5, %v2245_v56 }
 0x261   : > { %v2093_v2 = vsel %vm3873_vm15, 0, %v3872_v7  ;;  %v2189_v8 = vshll.u32 %v5919_v6, 30  ;;  %v2254_v50 = vshrl.u32 %v7088_v58, %v2245_v56  ;;  %v2250_v38 = vshll.u32 %v7068_v1, %v2244_v11 }
 0x262   : > { %v2094_v57 = vsub.s32 32, %v2093_v2  ;;  %v2098_v53 = vsub.s32 4294967266, %v2093_v2  ;;  %v2257_v31 = vshrl.u32 %v7076_v41, %v2245_v56  ;;  %v2253_v3 = vshll.u32 %v7099_v5, %v2244_v11 }
 0x263   : > { %v5929_v20 = vsub.s32 %v2186_v60, %v2189_v8  ;;  %v2256_v29 = vshll.u32 %v7088_v58, %v2244_v11  ;;  %v2260_v63 = vshrl.u32 %v7077_v48, %v2245_v56  ;;  %v2095_v12 = vshll.u32 %v5870_v61, %v2093_v2 }
 0x264   : > { %v2096_v25 = vshrl.u32 %v2078_v10, %v2094_v57  ;;  %v2099_v4 = vadd.s32 127, %v2098_v53  ;;  %v2259_v26 = vshll.u32 %v7076_v41, %v2244_v11  ;;  %v2249_v39 = vor.u32 %v2248_v42, %v2247_v37 }
 0x265   : > { %v2192_v23 = vsub.s32 0, %v5929_v20  ;;  %v2252_v33 = vor.u32 %v2251_v28, %v2250_v38  ;;  %v2255_v22 = vor.u32 %v2254_v50, %v2253_v3  ;;  %v2258_v8 = vor.u32 %v2257_v31, %v2256_v29 }
 0x266   : > { %v2097_v7 = vor.u32 %v2096_v25, %v2095_v12  ;;  %v2100_v60 = vshll.u32 %v2099_v4, 23  ;;  %v2278_v35 = vshll.u32 %v2238_v43, 8  ;;  %vm2128_vm0 = vcmp.lt.s32.totalorder %v5760_v47, 0 }
 0x267   : > { %v3875_v1 = vmin.u32 %v2192_v23, %v5929_v20  ;;  %v2212_v17 = vsub.s32 4, %v5919_v6  ;;  %v2246_v61 = vshrl.u32 %v7092_v0, %v2245_v56  ;;  %v2261_v10 = vor.u32 %v2260_v63, %v2259_v26 }
 0x268   : > { %v2101_v2 = vor.u32 4788187, %v2100_v60  ;;  %vm2262_vm1 = vcmp.lt.s32.totalorder %v2243_v18, 1  ;;  %vm2263_vm2 = vcmp.lt.s32.totalorder %v2243_v18, 2  ;;  %vm2265_vm3 = vcmp.lt.s32.totalorder %v2243_v18, 4 }
 0x269   : > { %v2194_v11 = vclz %v3875_v1  ;;  %vm2264_vm4 = vcmp.lt.s32.totalorder %v2243_v18, 3  ;;  %v2267_v37 = vsel %vm2265_vm3, %v2255_v22, 2102212464  ;;  %v2270_v42 = vsel %vm2262_vm1, %v2249_v39, %v2252_v33 }
 0x26a   : > { %v2102_v28 = vand.u32 2147483647, %v2101_v2  ;;  %v2104_v50 = vcvt.s32.f32 %v2097_v7  ;;  %v2271_v43 = vsel %vm2265_vm3, %v2258_v8, 920167782  ;;  %v2274_v57 = vsel %vm2262_vm1, %v2252_v33, %v2255_v22 }
 0x26b   : > { %v3876_v53 = vadd.s32 4294967294, %v2194_v11  ;;  %v2266_v38 = vsel %vm2262_vm1, %v2246_v61, %v2249_v39  ;;  %v2272_v31 = vsel %vm2264_vm4, %v2255_v22, %v2271_v43  ;;  %v2275_v3 = vsel %vm2265_vm3, %v2261_v10, 1326507024 }
 0x26c   : > { %v2105_v29 = vmul.f32 %v2104_v50, %v2102_v28  ;;  %v2268_v12 = vsel %vm2264_vm4, %v2252_v33, %v2267_v37  ;;  %v2273_v56 = vsel %vm2263_vm2, %v2270_v42, %v2272_v31  ;;  %v2276_v63 = vsel %vm2264_vm4, %v2258_v8, %v2275_v3 }
 0x26d   : > { %vm3877_vm5 = vcmp.lt.s32.totalorder %v3876_v53, 0  ;;  %v2277_v25 = vsel %vm2263_vm2, %v2274_v57, %v2276_v63  ;;  %v5943_v1 = vmul.u32.u64.low %v2278_v35, %v2273_v56  ;;  %v5944_v4 = vmul.u32.u64.high %v2278_v35, %v2273_v56, %v5943_v1 }
 0x26e   : > { %v2106_v26 = vxor.u32 2147483648, %v2105_v29  ;;  %v2197_v23 = vsel %vm3877_vm5, 0, %v3876_v53  ;;  %v5946_v7 = vmul.u32.u64.low %v2278_v35, %v2277_v25  ;;  %v5947_v60 = vmul.u32.u64.high %v2278_v35, %v2277_v25, %v5946_v7 }
 0x26f   : > { %v2198_v2 = vsub.s32 32, %v2197_v23  ;;  %v2202_v39 = vsub.s32 4294967266, %v2197_v23  ;;  %v2269_v22 = vsel %vm2263_vm2, %v2266_v38, %v2268_v12  ;;  %v2337_v33 = vand.u32 2139095040, %v5868_v27 }
 0x270   : > { %v2107_v8 = vsel %vm2024_vm13, %v2106_v26, %v2105_v29  ;;  %v2115_v61 = vadd.s32 3, %v2111_v9  ;;  %v2199_v10 = vshll.u32 %v5929_v20, %v2197_v23  ;;  %v2213_v11 = vsel %vm2128_vm0, %v2212_v17, %v5919_v6 }
 0x271   : > { %v2110_v18 = vsel %vm5907_vm14, %v5739_v15, %v2107_v8  ;;  %v2200_v37 = vshrl.u32 %v5917_v14, %v2198_v2  ;;  %v2203_v42 = vadd.s32 127, %v2202_v39  ;;  %v2288_v28 = vadd.s32 1, %v5944_v4 }
 0x272   : > { %4202 = vcosq.f32 %v2110_v18  ;;  %v2285_v50 = vmul.u32 %v2278_v35, %v2269_v22  ;;  %vm2287_vm6 = vc.u32 %v5947_v60, %v5943_v1  ;;  %v2338_v55 = vshrl.u32 %v2337_v33, 23 }
 0x273   : > { %4204 = vsinq.f32 %v2110_v18  ;;  %v2201_v9 = vor.u32 %v2200_v37, %v2199_v10  ;;  %v2204_v20 = vshll.u32 %v2203_v42, 23  ;;  %v2289_v43 = vsel %vm2287_vm6, %v2288_v28, %v5944_v4 }
 0x274   : > { %vm5970_vm7 = vcmp.le.f32.partialorder %v2126_v30, 0.7853982  ;;  %v2290_v14 = vadd.s32 %v2289_v43, %v2285_v50  ;;  %v3882_v6 = vadd.s32 4294967169, %v2338_v55  ;;  %v7121_v17 = vand.u32 2147483647, %v5868_v27 }
 0x275   : > { %v2205_v35 = vor.u32 4788187, %v2204_v20  ;;  %v2215_v53 = vsel %vm5970_vm7, 0, %v2213_v11  ;;  %v2438_v38 = vand.u32 2147483647, %v5903_v49  ;;  %v2441_v31 = vand.u32 2139095040, %v5903_v49 }
 0x276   : > { %v2341_v57 = vand.u32 8388607, %v7121_v17  ;;  %v5982_v3 = vmul.f32 %v5731_v32, %v4455_v13  ;;  %v5986_v30 = vmul.f32 %v5718_v34, %v4466_v16  ;;  %v2291_v29 = vadd.s32 536870912, %v2290_v14 }
 0x277   : > { %v2344_v12 = vadd.s32 1, %v3882_v6  ;;  %v5990_v56 = vmul.f32 %v5731_v32, %v4466_v16  ;;  %v2116_v63 = vand.u32 3, %v2115_v61  ;;  %v2206_v25 = vand.u32 2147483647, %v2205_v35 }
 0x278   : > { %v2208_v4 = vcvt.s32.f32 %v2201_v9  ;;  %v2219_v26 = vadd.s32 3, %v2215_v53  ;;  %v5992_v23 = vshrl.u32 %v2291_v29, 30  ;;  %v2342_v7 = vor.u32 8388608, %v2341_v57 }
 0x279   : > { %vm2345_vm8 = vcmp.gt.s32.totalorder %v2344_v12, 0  ;;  %v2442_v39 = vshrl.u32 %v2441_v31, 23  ;;  %v5996_v22 = vand.u32 8388607, %v2438_v38  ;;  %v6000_v33 = vmul.f32 %v5718_v34, %v4470_v19 }
 0x27a   : > { %v2209_v13 = vmul.f32 %v2208_v4, %v2206_v25  ;;  %v2346_v2 = vsel %vm2345_vm8, %v2344_v12, 0  ;;  %v6004_v16 = vadd.f32 %v5892_v44, %v4595_v40  ;;  %v2293_v8 = vshll.u32 %v5992_v23, 30 }
 0x27b   : > { %v2348_v61 = vand.u32 31, %v2346_v2  ;;  %vm2117_vm10 = vcmp.lt.s32.totalorder %v2116_v63, 2  ;;  %vm2118_vm9 = vcmp.eq.s32.totalorder %v2116_v63, 0  ;;  %vm2121_vm11 = vcmp.eq.s32.totalorder %v2116_v63, 2 }
 0x27c   : > { %v2210_v10 = vxor.u32 2147483648, %v2209_v13  ;;  %vm2114_vm12 = vweird.f32 %v5739_v15  ;;  %v6008_v11 = vand.u32 3, %v2219_v26  ;;  %v6011_v18 = vadd.s32 %v5943_v1, %v5947_v60 }
 0x27d   : > { %v6013_v37 = vsub.s32 %v2290_v14, %v2293_v8  ;;  %v2349_v42 = vsub.s32 32, %v2348_v61  ;;  %v6017_v44 = vshll.u32 %v2342_v7, 8  ;;  %v3886_v28 = vadd.s32 4294967169, %v2442_v39 }
 0x27e   : > { %v2211_v40 = vsel %vm2128_vm0, %v2210_v10, %v2209_v13  ;;  %v2446_v50 = vor.u32 8388608, %v5996_v22  ;;  %v2316_v1 = vsub.s32 4, %v5992_v23  ;;  %v2351_v60 = vshll.u32 %v7092_v0, %v2348_v61 }
 0x27f   : > { %v2214_v55 = vsel %vm5970_vm7, %v5760_v47, %v2211_v40  ;;  %v2296_v9 = vsub.s32 0, %v6013_v37  ;;  %v4203_v20 = vpop.eup %4202  ;;  %v7122_v43 = vmov 2475754826   ;;  %v2355_v6 = vshrl.u32 %v7099_v5, %v2349_v42 }
 0x280   : > { %4206 = vcosq.f32 %v2214_v55  ;;  %v2352_v14 = vshrl.u32 %v7122_v43, %v2349_v42  ;;  %v2358_v17 = vshrl.u32 %v7088_v58, %v2349_v42  ;;  %v4205_v57 = vpop.eup %4204  ;;  %v2122_v35 = vxor.u32 2147483648, %v4203_v20 }
 0x281   : > { %4208 = vsinq.f32 %v2214_v55  ;;  %v3879_v52 = vmin.u32 %v2296_v9, %v6013_v37  ;;  %v2354_v53 = vshll.u32 %v7122_v43, %v2348_v61  ;;  %v2119_v31 = vxor.u32 2147483648, %v4205_v57 }
 0x282   : > { %v2347_v29 = vshrl.u32 %v2346_v2, 5  ;;  %v2357_v12 = vshll.u32 %v7099_v5, %v2348_v61  ;;  %v2448_v25 = vadd.s32 1, %v3886_v28  ;;  %v2123_v4 = vsel %vm2121_vm11, %v2122_v35, %v4205_v57 }
 0x283   : > { %v2298_v26 = vclz %v3879_v52  ;;  %v2353_v7 = vor.u32 %v2352_v14, %v2351_v60  ;;  %v2356_v13 = vor.u32 %v2355_v6, %v2354_v53  ;;  %v2120_v39 = vsel %vm2118_vm9, %v4203_v20, %v2119_v31 }
 0x284   : > { %v2359_v8 = vor.u32 %v2358_v17, %v2357_v12  ;;  %v2360_v10 = vshll.u32 %v7088_v58, %v2348_v61  ;;  %v2361_v40 = vshrl.u32 %v7076_v41, %v2349_v42  ;;  %v2124_v55 = vsel %vm2117_vm10, %v2120_v39, %v2123_v4 }
 0x285   : > { %v3880_v9 = vadd.s32 4294967294, %v2298_v26  ;;  %v2363_v2 = vshll.u32 %v7076_v41, %v2348_v61  ;;  %v2364_v28 = vshrl.u32 %v7077_v48, %v2349_v42  ;;  %v2125_v57 = vsel %vm2114_vm12, nan, %v2124_v55 }
 0x286   : > { %v2350_v60 = vshrl.u32 %v7092_v0, %v2349_v42  ;;  %v2362_v14 = vor.u32 %v2361_v40, %v2360_v10  ;;  %vm2366_vm13 = vcmp.lt.s32.totalorder %v2347_v29, 1  ;;  %vm2225_vm14 = vcmp.eq.s32.totalorder %v6008_v11, 2  ;;  %3686 = vst [vmem:[%s4804_s28 + $0x80] sm:$0xff] %v2125_v57 }
 0x287   : > { %vm2232_vm15 = vcmp.lt.s32.totalorder %v5774_v45, 0  ;;  %vm3881_vm0 = vcmp.lt.s32.totalorder %v3880_v9, 0  ;;  %v2365_v20 = vor.u32 %v2364_v28, %v2363_v2  ;;  %vm2367_vm1 = vcmp.lt.s32.totalorder %v2347_v29, 2 }
 0x288   : > { %vm2369_vm2 = vcmp.lt.s32.totalorder %v2347_v29, 4  ;;  %vm2222_vm3 = vcmp.eq.s32.totalorder %v6008_v11, 0  ;;  %v2301_v63 = vsel %vm3881_vm0, 0, %v3880_v9  ;;  %vm2368_vm4 = vcmp.lt.s32.totalorder %v2347_v29, 3 }
 0x289   : > { %v2370_v15 = vsel %vm2366_vm13, %v2350_v60, %v2353_v7  ;;  %v2371_v61 = vsel %vm2369_vm2, %v2359_v8, 2102212464  ;;  %vm2221_vm5 = vcmp.lt.s32.totalorder %v6008_v11, 2  ;;  %v2302_v42 = vsub.s32 32, %v2301_v63 }
 0x28a   : > { %v2306_v6 = vsub.s32 4294967266, %v2301_v63  ;;  %v2372_v17 = vsel %vm2368_vm4, %v2356_v13, %v2371_v61  ;;  %v2374_v35 = vsel %vm2366_vm13, %v2353_v7, %v2356_v13  ;;  %vm2218_vm6 = vweird.f32 %v5760_v47 }
 0x28b   : > { %v2303_v52 = vshll.u32 %v6013_v37, %v2301_v63  ;;  %v2375_v53 = vsel %vm2369_vm2, %v2362_v14, 920167782  ;;  %v2378_v31 = vsel %vm2366_vm13, %v2356_v13, %v2359_v8  ;;  %v2379_v12 = vsel %vm2369_vm2, %v2365_v20, 1326507024 }
 0x28c   : > { %v2304_v4 = vshrl.u32 %v6011_v18, %v2302_v42  ;;  %v2307_v26 = vadd.s32 127, %v2306_v6  ;;  %v2376_v39 = vsel %vm2368_vm4, %v2359_v8, %v2375_v53  ;;  %v2380_v10 = vsel %vm2368_vm4, %v2362_v14, %v2379_v12 }
 0x28d   : > { %v2373_v40 = vsel %vm2367_vm1, %v2370_v15, %v2372_v17  ;;  %v2377_v7 = vsel %vm2367_vm1, %v2374_v35, %v2376_v39  ;;  %v2381_v55 = vsel %vm2367_vm1, %v2378_v31, %v2380_v10  ;;  %vm2449_vm7 = vcmp.gt.s32.totalorder %v2448_v25, 0  ;;  %v4207_v37 = vpop.eup %4206 }
 0x28e   : > { %v2305_v9 = vor.u32 %v2304_v4, %v2303_v52  ;;  %v2308_v2 = vshll.u32 %v2307_v26, 23  ;;  %v6063_v13 = vmul.u32.u64.low %v6017_v44, %v2381_v55  ;;  %v6064_v28 = vmul.u32.u64.high %v6017_v44, %v2381_v55, %v6063_v13  ;;  %v4209_v18 = vpop.eup %4208 }
 0x28f   : > { %v2226_v57 = vxor.u32 2147483648, %v4207_v37  ;;  %v6067_v8 = vmul.u32.u64.low %v6017_v44, %v2377_v7  ;;  %v6068_v60 = vmul.u32.u64.high %v6017_v44, %v2377_v7, %v6067_v8  ;;  %v2450_v14 = vsel %vm2449_vm7, %v2448_v25, 0 }
 0x290   : > { %v2223_v20 = vxor.u32 2147483648, %v4209_v18  ;;  %v7123_v29 = vand.u32 2147483647, %v5774_v45  ;;  %v2309_v15 = vor.u32 4788187, %v2308_v2  ;;  %v6079_v61 = vshll.u32 %v2446_v50, 8 }
 0x291   : > { %v2545_v42 = vand.u32 2139095040, %v6004_v16  ;;  %v2227_v6 = vsel %vm2225_vm14, %v2226_v57, %v4209_v18  ;;  %v2317_v25 = vsel %vm2232_vm15, %v2316_v1, %v5992_v23  ;;  %v2389_v17 = vmul.u32 %v6017_v44, %v2373_v40 }
 0x292   : > { %vm6073_vm8 = vcmp.le.f32.partialorder %v7123_v29, 0.7853982  ;;  %v2452_v35 = vand.u32 31, %v2450_v14  ;;  %v2224_v52 = vsel %vm2222_vm3, %v4207_v37, %v2223_v20  ;;  %v2310_v22 = vand.u32 2147483647, %v2309_v15 }
 0x293   : > { %v2312_v50 = vcvt.s32.f32 %v2305_v9  ;;  %vm2391_vm10 = vc.u32 %v6064_v28, %v6067_v8  ;;  %v2228_v53 = vsel %vm2221_vm5, %v2224_v52, %v2227_v6  ;;  %v2392_v31 = vadd.s32 1, %v6068_v60 }
 0x294   : > { %v6097_v12 = vshrl.u32 %v2450_v14, 5  ;;  %v2453_v23 = vsub.s32 32, %v2452_v35  ;;  %v2229_v44 = vsel %vm2218_vm6, nan, %v2228_v53  ;;  %v2455_v4 = vshll.u32 %v7092_v0, %v2452_v35 }
 0x295   : > { %v2313_v1 = vmul.f32 %v2312_v50, %v2310_v22  ;;  %v2458_v26 = vshll.u32 %v7122_v43, %v2452_v35  ;;  %v2393_v39 = vsel %vm2391_vm10, %v2392_v31, %v6068_v60  ;;  %v2461_v40 = vshll.u32 %v7099_v5, %v2452_v35  ;;  %3687 = vst [vmem:[%s4804_s28 + $0x88] sm:$0xff] %v2229_v44 }
 0x296   : > { %v2456_v10 = vshrl.u32 %v7122_v43, %v2453_v23  ;;  %v2459_v11 = vshrl.u32 %v7099_v5, %v2453_v23  ;;  %v2394_v55 = vadd.s32 %v2393_v39, %v2389_v17  ;;  %v2462_v37 = vshrl.u32 %v7088_v58, %v2453_v23 }
 0x297   : > { %v2314_v7 = vxor.u32 2147483648, %v2313_v1  ;;  %v2464_v47 = vshll.u32 %v7088_v58, %v2452_v35  ;;  %v2465_v13 = vshrl.u32 %v7076_v41, %v2453_v23  ;;  %v2467_v18 = vshll.u32 %v7076_v41, %v2452_v35 }
 0x298   : > { %v2457_v9 = vor.u32 %v2456_v10, %v2455_v4  ;;  %v2460_v2 = vor.u32 %v2459_v11, %v2458_v26  ;;  %v2395_v60 = vadd.s32 536870912, %v2394_v55  ;;  %v2463_v14 = vor.u32 %v2462_v37, %v2461_v40 }
 0x299   : > { %v2315_v57 = vsel %vm2232_vm15, %v2314_v7, %v2313_v1  ;;  %v2468_v20 = vshrl.u32 %v7077_v48, %v2453_v23  ;;  %v2319_v15 = vsel %vm6073_vm8, 0, %v2317_v25  ;;  %v2466_v6 = vor.u32 %v2465_v13, %v2464_v47 }
 0x29a   : > { %v2318_v29 = vsel %vm6073_vm8, %v5774_v45, %v2315_v57  ;;  %v2546_v17 = vshrl.u32 %v2545_v42, 23  ;;  %v2396_v52 = vshrl.u32 %v2395_v60, 30  ;;  %vm2470_vm9 = vcmp.lt.s32.totalorder %v6097_v12, 1 }
 0x29b   : > { %4210 = vcosq.f32 %v2318_v29  ;;  %v2469_v22 = vor.u32 %v2468_v20, %v2467_v18  ;;  %v2454_v35 = vshrl.u32 %v7092_v0, %v2453_v23  ;;  %vm2473_vm11 = vcmp.lt.s32.totalorder %v6097_v12, 4 }
 0x29c   : > { %4212 = vsinq.f32 %v2318_v29  ;;  %v2478_v50 = vsel %vm2470_vm9, %v2457_v9, %v2460_v2  ;;  %v2397_v53 = vshll.u32 %v2396_v52, 30  ;;  %vm2472_vm12 = vcmp.lt.s32.totalorder %v6097_v12, 3 }
 0x29d   : > { %v2475_v31 = vsel %vm2473_vm11, %v2463_v14, 2102212464  ;;  %v2479_v44 = vsel %vm2473_vm11, %v2466_v6, 920167782  ;;  %vm2471_vm13 = vcmp.lt.s32.totalorder %v6097_v12, 2  ;;  %v2482_v42 = vsel %vm2470_vm9, %v2460_v2, %v2463_v14 }
 0x29e   : > { %v2480_v63 = vsel %vm2472_vm12, %v2463_v14, %v2479_v44  ;;  %v2483_v25 = vsel %vm2473_vm11, %v2469_v22, 1326507024  ;;  %v2323_v1 = vadd.s32 3, %v2319_v15  ;;  %v6125_v4 = vsub.s32 %v2394_v55, %v2397_v53 }
 0x29f   : > { %v2474_v26 = vsel %vm2470_vm9, %v2454_v35, %v2457_v9  ;;  %v2481_v23 = vsel %vm2471_vm13, %v2478_v50, %v2480_v63  ;;  %v2476_v39 = vsel %vm2472_vm12, %v2460_v2, %v2475_v31  ;;  %v2484_v10 = vsel %vm2472_vm12, %v2466_v6, %v2483_v25 }
 0x2a0   : > { %v6130_v11 = vmul.u32.u64.low %v6079_v61, %v2481_v23  ;;  %v6131_v40 = vmul.u32.u64.high %v6079_v61, %v2481_v23, %v6130_v11  ;;  %v6136_v7 = vmul.f32 %v5731_v32, %v4470_v19  ;;  %v6140_v37 = vmul.f32 %v5718_v34, %v4473_v21 }
 0x2a1   : > { %v2400_v55 = vsub.s32 0, %v6125_v4  ;;  %v2485_v47 = vsel %vm2471_vm13, %v2482_v42, %v2484_v10  ;;  %v2420_v9 = vsub.s32 4, %v2396_v52  ;;  %v3890_v18 = vadd.s32 4294967169, %v2546_v17 }
 0x2a2   : > { %v6146_v2 = vmul.u32.u64.low %v6079_v61, %v2485_v47  ;;  %v6147_v13 = vmul.u32.u64.high %v6079_v61, %v2485_v47, %v6146_v2  ;;  %v6151_v57 = vmul.f32 %v5731_v32, %v4473_v21  ;;  %v2324_v19 = vand.u32 3, %v2323_v1 }
 0x2a3   : > { %v3883_v60 = vmin.u32 %v2400_v55, %v6125_v4  ;;  %v2477_v14 = vsel %vm2471_vm13, %v2474_v26, %v2476_v39  ;;  %v6158_v20 = vmul.f32 %v5718_v34, %v4483_v24  ;;  %v6162_v29 = vadd.f32 %v5900_v54, %v4821_v46 }
 0x2a4   : > { %v2496_v15 = vadd.s32 1, %v6131_v40  ;;  %v2552_v6 = vadd.s32 1, %v3890_v18  ;;  %vm2322_vm14 = vweird.f32 %v5774_v45  ;;  %v7126_v21 = vand.u32 2147483647, %v5868_v27 }
 0x2a5   : > { %vm2336_vm0 = vcmp.lt.s32.totalorder %v5868_v27, 0  ;;  %v2402_v12 = vclz %v3883_v60  ;;  %v2542_v34 = vand.u32 2147483647, %v6004_v16  ;;  %v2493_v22 = vmul.u32 %v6079_v61, %v2477_v14 }
 0x2a6   : > { %vm6168_vm15 = vcmp.le.f32.partialorder %v7126_v21, 0.7853982  ;;  %v2421_v54 = vsel %vm2336_vm0, %v2420_v9, %v2396_v52  ;;  %vm2495_vm1 = vc.u32 %v6147_v13, %v6130_v11  ;;  %vm2553_vm2 = vcmp.gt.s32.totalorder %v2552_v6, 0 }
 0x2a7   : > { %vm2325_vm3 = vcmp.lt.s32.totalorder %v2324_v19, 2  ;;  %v3884_v35 = vadd.s32 4294967294, %v2402_v12  ;;  %v2497_v50 = vsel %vm2495_vm1, %v2496_v15, %v6131_v40  ;;  %v2554_v53 = vsel %vm2553_vm2, %v2552_v6, 0 }
 0x2a8   : > { %v4211_v31 = vpop.eup %4210  ;;  %vm2326_vm4 = vcmp.eq.s32.totalorder %v2324_v19, 0  ;;  %vm2329_vm5 = vcmp.eq.s32.totalorder %v2324_v19, 2  ;;  %v2498_v44 = vadd.s32 %v2497_v50, %v2493_v22  ;;  %v2556_v63 = vand.u32 31, %v2554_v53 }
 0x2a9   : > { %v4213_v42 = vpop.eup %4212  ;;  %v2330_v25 = vxor.u32 2147483648, %v4211_v31  ;;  %vm3885_vm6 = vcmp.lt.s32.totalorder %v3884_v35, 0  ;;  %v2423_v61 = vsel %vm6168_vm15, 0, %v2421_v54  ;;  %v2549_v52 = vand.u32 8388607, %v2542_v34 }
 0x2aa   : > { %v2327_v1 = vxor.u32 2147483648, %v4213_v42  ;;  %v2405_v26 = vsel %vm3885_vm6, 0, %v3884_v35  ;;  %v2499_v23 = vadd.s32 536870912, %v2498_v44  ;;  %v2557_v39 = vsub.s32 32, %v2556_v63 }
 0x2ab   : > { %v2331_v10 = vsel %vm2329_vm5, %v2330_v25, %v4213_v42  ;;  %v2390_v40 = vadd.s32 %v6067_v8, %v6064_v28  ;;  %v2406_v55 = vsub.s32 32, %v2405_v26  ;;  %v2410_v47 = vsub.s32 4294967266, %v2405_v26 }
 0x2ac   : > { %v2328_v9 = vsel %vm2326_vm4, %v4211_v31, %v2327_v1  ;;  %v2407_v2 = vshll.u32 %v6125_v4, %v2405_v26  ;;  %v6188_v18 = vadd.s32 3, %v2423_v61  ;;  %v6190_v60 = vshrl.u32 %v2499_v23, 30 }
 0x2ad   : > { %v2332_v14 = vsel %vm2325_vm3, %v2328_v9, %v2331_v10  ;;  %v2408_v15 = vshrl.u32 %v2390_v40, %v2406_v55  ;;  %v2411_v6 = vadd.s32 127, %v2410_v47  ;;  %v2560_v21 = vshrl.u32 %v7122_v43, %v2557_v39 }
 0x2ae   : > { %v2333_v28 = vsel %vm2322_vm14, nan, %v2332_v14  ;;  %v2501_v8 = vshll.u32 %v6190_v60, 30  ;;  %v2550_v12 = vor.u32 8388608, %v2549_v52  ;;  %v2646_v54 = vand.u32 2147483647, %v6162_v29 }
 0x2af   : > { %v2409_v22 = vor.u32 %v2408_v15, %v2407_v2  ;;  %v2412_v4 = vshll.u32 %v2411_v6, 23  ;;  %v2559_v35 = vshll.u32 %v7092_v0, %v2556_v63  ;;  %v2563_v50 = vshrl.u32 %v7099_v5, %v2557_v39  ;;  %3688 = vst [vmem:[%s4804_s28 + $0x90] sm:$0xff] %v2333_v28 }
 0x2b0   : > { %v6201_v19 = vsub.s32 %v2498_v44, %v2501_v8  ;;  %v2562_v31 = vshll.u32 %v7122_v43, %v2556_v63  ;;  %v2566_v42 = vshrl.u32 %v7088_v58, %v2557_v39  ;;  %v2649_v45 = vand.u32 2139095040, %v6162_v29 }
 0x2b1   : > { %v2413_v25 = vor.u32 4788187, %v2412_v4  ;;  %v2555_v61 = vshrl.u32 %v2554_v53, 5  ;;  %v2561_v52 = vor.u32 %v2560_v21, %v2559_v35  ;;  %v2565_v1 = vshll.u32 %v7099_v5, %v2556_v63 }
 0x2b2   : > { %v2416_v26 = vcvt.s32.f32 %v2409_v22  ;;  %v2504_v23 = vsub.s32 0, %v6201_v19  ;;  %v2564_v10 = vor.u32 %v2563_v50, %v2562_v31  ;;  %v2568_v40 = vshll.u32 %v7088_v58, %v2556_v63 }
 0x2b3   : > { %v2414_v55 = vand.u32 2147483647, %v2413_v25  ;;  %v2569_v44 = vshrl.u32 %v7076_v41, %v2557_v39  ;;  %v2571_v47 = vshll.u32 %v7076_v41, %v2556_v63  ;;  %v2572_v9 = vshrl.u32 %v7077_v48, %v2557_v39 }
 0x2b4   : > { %v2494_v2 = vadd.s32 %v6130_v11, %v6147_v13  ;;  %v3887_v53 = vmin.u32 %v2504_v23, %v6201_v19  ;;  %v2567_v14 = vor.u32 %v2566_v42, %v2565_v1  ;;  %v6215_v15 = vshll.u32 %v2550_v12, 8 }
 0x2b5   : > { %v2417_v6 = vmul.f32 %v2416_v26, %v2414_v55  ;;  %v2570_v21 = vor.u32 %v2569_v44, %v2568_v40  ;;  %v2573_v28 = vor.u32 %v2572_v9, %v2571_v47  ;;  %v2650_v8 = vshrl.u32 %v2649_v45, 23 }
 0x2b6   : > { %v2506_v22 = vclz %v3887_v53  ;;  %v2524_v4 = vsub.s32 4, %v6190_v60  ;;  %v2558_v35 = vshrl.u32 %v7092_v0, %v2557_v39  ;;  %vm2574_vm7 = vcmp.lt.s32.totalorder %v2555_v61, 1 }
 0x2b7   : > { %v2418_v63 = vxor.u32 2147483648, %v2417_v6  ;;  %vm2575_vm8 = vcmp.lt.s32.totalorder %v2555_v61, 2  ;;  %vm2577_vm10 = vcmp.lt.s32.totalorder %v2555_v61, 4  ;;  %v2582_v11 = vsel %vm2574_vm7, %v2561_v52, %v2564_v10 }
 0x2b8   : > { %v3888_v13 = vadd.s32 4294967294, %v2506_v22  ;;  %vm2576_vm9 = vcmp.lt.s32.totalorder %v2555_v61, 3  ;;  %v2579_v50 = vsel %vm2577_vm10, %v2567_v14, 2102212464  ;;  %v2583_v12 = vsel %vm2577_vm10, %v2570_v21, 920167782 }
 0x2b9   : > { %v2419_v31 = vsel %vm2336_vm0, %v2418_v63, %v2417_v6  ;;  %v2578_v42 = vsel %vm2574_vm7, %v2558_v35, %v2561_v52  ;;  %v2584_v45 = vsel %vm2576_vm9, %v2567_v14, %v2583_v12  ;;  %v2587_v25 = vsel %vm2577_vm10, %v2573_v28, 1326507024 }
 0x2ba   : > { %v2422_v39 = vsel %vm6168_vm15, %v5868_v27, %v2419_v31  ;;  %vm3889_vm11 = vcmp.lt.s32.totalorder %v3888_v13, 0  ;;  %v2585_v1 = vsel %vm2575_vm8, %v2582_v11, %v2584_v45  ;;  %v2586_v26 = vsel %vm2574_vm7, %v2564_v10, %v2567_v14 }
 0x2bb   : > { %4214 = vcosq.f32 %v2422_v39  ;;  %v2509_v23 = vsel %vm3889_vm11, 0, %v3888_v13  ;;  %v2580_v40 = vsel %vm2576_vm9, %v2564_v10, %v2579_v50  ;;  %v2588_v55 = vsel %vm2576_vm9, %v2570_v21, %v2587_v25 }
 0x2bc   : > { %4216 = vsinq.f32 %v2422_v39  ;;  %v2510_v44 = vsub.s32 32, %v2509_v23  ;;  %v2511_v47 = vshll.u32 %v6201_v19, %v2509_v23  ;;  %v2514_v52 = vsub.s32 4294967266, %v2509_v23 }
 0x2bd   : > { %v2589_v9 = vsel %vm2575_vm8, %v2586_v26, %v2588_v55  ;;  %v6231_v53 = vmul.u32.u64.low %v6215_v15, %v2585_v1  ;;  %v6232_v17 = vmul.u32.u64.high %v6215_v15, %v2585_v1, %v6231_v53  ;;  %v3894_v6 = vadd.s32 4294967169, %v2650_v8 }
 0x2be   : > { %v2512_v28 = vshrl.u32 %v2494_v2, %v2510_v44  ;;  %v2515_v22 = vadd.s32 127, %v2514_v52  ;;  %v6236_v14 = vmul.u32.u64.low %v6215_v15, %v2589_v9  ;;  %v6237_v35 = vmul.u32.u64.high %v6215_v15, %v2589_v9, %v6236_v14 }
 0x2bf   : > { %v6241_v10 = vadd.f32 %v5982_v3, %v4821_v46  ;;  %vm2440_vm12 = vcmp.lt.s32.totalorder %v5903_v49, 0  ;;  %v2581_v19 = vsel %vm2575_vm8, %v2578_v42, %v2580_v40  ;;  %v2656_v21 = vadd.s32 1, %v3894_v6 }
 0x2c0   : > { %v6247_v63 = vadd.f32 %v5986_v30, %v4995_v51  ;;  %v2513_v8 = vor.u32 %v2512_v28, %v2511_v47  ;;  %v2516_v2 = vshll.u32 %v2515_v22, 23  ;;  %v2525_v11 = vsel %vm2440_vm12, %v2524_v4, %v6190_v60 }
 0x2c1   : > { %v2428_v13 = vand.u32 3, %v6188_v18  ;;  %vm6255_vm13 = vcmp.le.f32.partialorder %v2438_v38, 0.7853982  ;;  %v2600_v3 = vadd.s32 1, %v6232_v17  ;;  %vm2657_vm14 = vcmp.gt.s32.totalorder %v2656_v21, 0 }
 0x2c2   : > { %v2517_v61 = vor.u32 4788187, %v2516_v2  ;;  %v2597_v30 = vmul.u32 %v6215_v15, %v2581_v19  ;;  %vm2599_vm15 = vc.u32 %v6237_v35, %v6231_v53  ;;  %v2653_v60 = vand.u32 8388607, %v2646_v54 }
 0x2c3   : > { %v2527_v18 = vsel %vm6255_vm13, 0, %v2525_v11  ;;  %v2601_v38 = vsel %vm2599_vm15, %v2600_v3, %v6232_v17  ;;  %v2658_v4 = vsel %vm2657_vm14, %v2656_v21, 0  ;;  %v2753_v50 = vand.u32 2139095040, %v6241_v10 }
 0x2c4   : > { %v2518_v12 = vand.u32 2147483647, %v2517_v61  ;;  %v2520_v31 = vcvt.s32.f32 %v2513_v8  ;;  %v2602_v42 = vadd.s32 %v2601_v38, %v2597_v30  ;;  %v2660_v45 = vand.u32 31, %v2658_v4 }
 0x2c5   : > { %v6271_v15 = vadd.f32 %v5990_v56, %v4995_v51  ;;  %v6275_v25 = vadd.f32 %v6000_v33, %v5175_v36  ;;  %vm2426_vm0 = vweird.f32 %v5868_v27  ;;  %vm2429_vm1 = vcmp.lt.s32.totalorder %v2428_v13, 2 }
 0x2c6   : > { %vm2430_vm2 = vcmp.eq.s32.totalorder %v2428_v13, 0  ;;  %v2521_v39 = vmul.f32 %v2520_v31, %v2518_v12  ;;  %v2603_v1 = vadd.s32 536870912, %v2602_v42  ;;  %v2661_v26 = vsub.s32 32, %v2660_v45 }
 0x2c7   : > { %vm2433_vm3 = vcmp.eq.s32.totalorder %v2428_v13, 2  ;;  %v2531_v23 = vadd.s32 3, %v2527_v18  ;;  %v2654_v40 = vor.u32 8388608, %v2653_v60  ;;  %v2754_v55 = vshrl.u32 %v2753_v50, 23 }
 0x2c8   : > { %v4215_v44 = vpop.eup %4214  ;;  %v2522_v47 = vxor.u32 2147483648, %v2521_v39  ;;  %v6278_v52 = vshrl.u32 %v2603_v1, 30  ;;  %v6280_v51 = vshrl.u32 %v2658_v4, 5  ;;  %v2663_v56 = vshll.u32 %v7092_v0, %v2660_v45 }
 0x2c9   : > { %v4217_v33 = vpop.eup %4216  ;;  %v2434_v9 = vxor.u32 2147483648, %v4215_v44  ;;  %v2664_v17 = vshrl.u32 %v7122_v43, %v2661_v26  ;;  %v2667_v6 = vshrl.u32 %v7099_v5, %v2661_v26  ;;  %v2670_v28 = vshrl.u32 %v7088_v58, %v2661_v26 }
 0x2ca   : > { %v2431_v22 = vxor.u32 2147483648, %v4217_v33  ;;  %v2523_v14 = vsel %vm2440_vm12, %v2522_v47, %v2521_v39  ;;  %v2605_v19 = vshll.u32 %v6278_v52, 30  ;;  %v2673_v21 = vshrl.u32 %v7076_v41, %v2661_v26 }
 0x2cb   : > { %v2435_v8 = vsel %vm2433_vm3, %v2434_v9, %v4217_v33  ;;  %v2526_v2 = vsel %vm6255_vm13, %v5903_v49, %v2523_v14  ;;  %v2666_v11 = vshll.u32 %v7122_v43, %v2660_v45  ;;  %v2669_v3 = vshll.u32 %v7099_v5, %v2660_v45 }
 0x2cc   : > { %v2432_v61 = vsel %vm2430_vm2, %v4215_v44, %v2431_v22  ;;  %4218 = vcosq.f32 %v2526_v2  ;;  %v6297_v30 = vsub.s32 %v2602_v42, %v2605_v19  ;;  %v2672_v60 = vshll.u32 %v7088_v58, %v2660_v45 }
 0x2cd   : > { %v2436_v18 = vsel %vm2429_vm1, %v2432_v61, %v2435_v8  ;;  %4220 = vsinq.f32 %v2526_v2  ;;  %v2665_v38 = vor.u32 %v2664_v17, %v2663_v56  ;;  %v2668_v4 = vor.u32 %v2667_v6, %v2666_v11 }
 0x2ce   : > { %v2437_v46 = vsel %vm2426_vm0, nan, %v2436_v18  ;;  %v2608_v50 = vsub.s32 0, %v6297_v30  ;;  %v2671_v12 = vor.u32 %v2670_v28, %v2669_v3  ;;  %v2674_v31 = vor.u32 %v2673_v21, %v2672_v60 }
 0x2cf   : > { %v6304_v39 = vand.u32 3, %v2531_v23  ;;  %v2675_v1 = vshll.u32 %v7076_v41, %v2660_v45  ;;  %v2676_v42 = vshrl.u32 %v7077_v48, %v2661_v26  ;;  %v2694_v44 = vshll.u32 %v2654_v40, 8  ;;  %3689 = vst [vmem:[%s4804_s28 + $0x98] sm:$0xff] %v2437_v46 }
 0x2d0   : > { %vm2544_vm4 = vcmp.lt.s32.totalorder %v6004_v16, 0  ;;  %v3891_v13 = vmin.u32 %v2608_v50, %v6297_v30  ;;  %vm2678_vm5 = vcmp.lt.s32.totalorder %v6280_v51, 1  ;;  %vm2681_vm6 = vcmp.lt.s32.totalorder %v6280_v51, 4 }
 0x2d1   : > { %v3898_v27 = vadd.s32 4294967169, %v2754_v55  ;;  %v2662_v47 = vshrl.u32 %v7092_v0, %v2661_v26  ;;  %v2677_v56 = vor.u32 %v2676_v42, %v2675_v1  ;;  %v2686_v23 = vsel %vm2678_vm5, %v2665_v38, %v2668_v4 }
 0x2d2   : > { %v2687_v45 = vsel %vm2681_vm6, %v2674_v31, 920167782  ;;  %v2610_v33 = vclz %v3891_v13  ;;  %v2628_v40 = vsub.s32 4, %v6278_v52  ;;  %vm2680_vm7 = vcmp.lt.s32.totalorder %v6280_v51, 3 }
 0x2d3   : > { %v2683_v9 = vsel %vm2681_vm6, %v2671_v12, 2102212464  ;;  %vm2679_vm8 = vcmp.lt.s32.totalorder %v6280_v51, 2  ;;  %v2688_v17 = vsel %vm2680_vm7, %v2671_v12, %v2687_v45  ;;  %v2690_v6 = vsel %vm2678_vm5, %v2668_v4, %v2671_v12 }
 0x2d4   : > { %v2691_v55 = vsel %vm2681_vm6, %v2677_v56, 1326507024  ;;  %v3892_v28 = vadd.s32 4294967294, %v2610_v33  ;;  %v2682_v26 = vsel %vm2678_vm5, %v2662_v47, %v2665_v38  ;;  %v2689_v22 = vsel %vm2679_vm8, %v2686_v23, %v2688_v17 }
 0x2d5   : > { %v2692_v14 = vsel %vm2680_vm7, %v2674_v31, %v2691_v55  ;;  %vm6327_vm10 = vcmp.le.f32.partialorder %v2542_v34, 0.7853982  ;;  %v2684_v21 = vsel %vm2680_vm7, %v2668_v4, %v2683_v9  ;;  %vm2530_vm9 = vweird.f32 %v5903_v49 }
 0x2d6   : > { %v2693_v8 = vsel %vm2679_vm8, %v2690_v6, %v2692_v14  ;;  %v6333_v2 = vmul.u32.u64.low %v2694_v44, %v2689_v22  ;;  %v6334_v11 = vmul.u32.u64.high %v2694_v44, %v2689_v22, %v6333_v2  ;;  %vm3893_vm11 = vcmp.lt.s32.totalorder %v3892_v28, 0 }
 0x2d7   : > { %v6338_v3 = vmul.u32.u64.low %v2694_v44, %v2693_v8  ;;  %v6339_v61 = vmul.u32.u64.high %v2694_v44, %v2693_v8, %v6338_v3  ;;  %v2760_v60 = vadd.s32 1, %v3898_v27  ;;  %vm2534_vm12 = vcmp.eq.s32.totalorder %v6304_v39, 0 }
 0x2d8   : > { %vm2537_vm13 = vcmp.eq.s32.totalorder %v6304_v39, 2  ;;  %v2598_v34 = vadd.s32 %v6231_v53, %v6237_v35  ;;  %v2613_v18 = vsel %vm3893_vm11, 0, %v3892_v28  ;;  %v2685_v46 = vsel %vm2679_vm8, %v2682_v26, %v2684_v21 }
 0x2d9   : > { %v2614_v38 = vsub.s32 32, %v2613_v18  ;;  %v2618_v4 = vsub.s32 4294967266, %v2613_v18  ;;  %vm2761_vm14 = vcmp.gt.s32.totalorder %v2760_v60, 0  ;;  %v4219_v50 = vpop.eup %4218  ;;  %v2629_v12 = vsel %vm2544_vm4, %v2628_v40, %v6278_v52 }
 0x2da   : > { %v2704_v31 = vadd.s32 1, %v6334_v11  ;;  %v2750_v1 = vand.u32 2147483647, %v6241_v10  ;;  %v2762_v42 = vsel %vm2761_vm14, %v2760_v60, 0  ;;  %v4221_v13 = vpop.eup %4220  ;;  %v2538_v27 = vxor.u32 2147483648, %v4219_v50 }
 0x2db   : > { %v2615_v53 = vshll.u32 %v6297_v30, %v2613_v18  ;;  %v2616_v35 = vshrl.u32 %v2598_v34, %v2614_v38  ;;  %v2619_v47 = vadd.s32 127, %v2618_v4  ;;  %v2535_v56 = vxor.u32 2147483648, %v4221_v13 }
 0x2dc   : > { %v2701_v51 = vmul.u32 %v2694_v44, %v2685_v46  ;;  %vm2703_vm15 = vc.u32 %v6339_v61, %v6333_v2  ;;  %v2764_v23 = vand.u32 31, %v2762_v42  ;;  %v2539_v52 = vsel %vm2537_vm13, %v2538_v27, %v4221_v13 }
 0x2dd   : > { %v2617_v45 = vor.u32 %v2616_v35, %v2615_v53  ;;  %v2620_v33 = vshll.u32 %v2619_v47, 23  ;;  %v2705_v40 = vsel %vm2703_vm15, %v2704_v31, %v6334_v11  ;;  %vm2533_vm0 = vcmp.lt.s32.totalorder %v6304_v39, 2 }
 0x2de   : > { %v2536_v30 = vsel %vm2534_vm12, %v4219_v50, %v2535_v56  ;;  %v2706_v9 = vadd.s32 %v2705_v40, %v2701_v51  ;;  %v2765_v17 = vsub.s32 32, %v2764_v23  ;;  %v2631_v55 = vsel %vm6327_vm10, 0, %v2629_v12 }
 0x2df   : > { %v2540_v44 = vsel %vm2533_vm0, %v2536_v30, %v2539_v52  ;;  %v2621_v6 = vor.u32 4788187, %v2620_v33  ;;  %v2757_v28 = vand.u32 8388607, %v2750_v1  ;;  %v2857_v39 = vand.u32 2139095040, %v6247_v63 }
 0x2e0   : > { %v2541_v26 = vsel %vm2530_vm9, nan, %v2540_v44  ;;  %v2707_v22 = vadd.s32 536870912, %v2706_v9  ;;  %v2768_v14 = vshrl.u32 %v7122_v43, %v2765_v17  ;;  %v2624_v8 = vcvt.s32.f32 %v2617_v45 }
 0x2e1   : > { %v2622_v21 = vand.u32 2147483647, %v2621_v6  ;;  %v2771_v11 = vshrl.u32 %v7099_v5, %v2765_v17  ;;  %v2774_v3 = vshrl.u32 %v7088_v58, %v2765_v17  ;;  %3690 = vst [vmem:[%s4804_s28 + $0xa0] sm:$0xff] %v2541_v26  ;;  %v2767_v34 = vshll.u32 %v7092_v0, %v2764_v23 }
 0x2e2   : > { %v2708_v60 = vshrl.u32 %v2707_v22, 30  ;;  %v2770_v18 = vshll.u32 %v7122_v43, %v2764_v23  ;;  %v2777_v49 = vshrl.u32 %v7076_v41, %v2765_v17  ;;  %v2763_v4 = vshrl.u32 %v2762_v42, 5 }
 0x2e3   : > { %v2625_v38 = vmul.f32 %v2624_v8, %v2622_v21  ;;  %v2773_v46 = vshll.u32 %v7099_v5, %v2764_v23  ;;  %v2776_v50 = vshll.u32 %v7088_v58, %v2764_v23  ;;  %v2769_v31 = vor.u32 %v2768_v14, %v2767_v34 }
 0x2e4   : > { %v2709_v12 = vshll.u32 %v2708_v60, 30  ;;  %v2772_v13 = vor.u32 %v2771_v11, %v2770_v18  ;;  %v2780_v27 = vshrl.u32 %v7077_v48, %v2765_v17  ;;  %v2779_v56 = vshll.u32 %v7076_v41, %v2764_v23 }
 0x2e5   : > { %v2626_v53 = vxor.u32 2147483648, %v2625_v38  ;;  %v2775_v35 = vor.u32 %v2774_v3, %v2773_v46  ;;  %v2778_v47 = vor.u32 %v2777_v49, %v2776_v50  ;;  %v2635_v51 = vadd.s32 3, %v2631_v55 }
 0x2e6   : > { %v6379_v52 = vsub.s32 %v2706_v9, %v2709_v12  ;;  %v2758_v45 = vor.u32 8388608, %v2757_v28  ;;  %v2858_v33 = vshrl.u32 %v2857_v39, 23  ;;  %v2766_v40 = vshrl.u32 %v7092_v0, %v2765_v17 }
 0x2e7   : > { %v2627_v42 = vsel %vm2544_vm4, %v2626_v53, %v2625_v38  ;;  %v2781_v30 = vor.u32 %v2780_v27, %v2779_v56  ;;  %vm2782_vm1 = vcmp.lt.s32.totalorder %v2763_v4, 1  ;;  %vm2784_vm2 = vcmp.lt.s32.totalorder %v2763_v4, 3 }
 0x2e8   : > { %v2630_v44 = vsel %vm6327_vm10, %v6004_v16, %v2627_v42  ;;  %v2712_v6 = vsub.s32 0, %v6379_v52  ;;  %vm2785_vm3 = vcmp.lt.s32.totalorder %v2763_v4, 4  ;;  %v2790_v9 = vsel %vm2782_vm1, %v2769_v31, %v2772_v13 }
 0x2e9   : > { %4222 = vcosq.f32 %v2630_v44  ;;  %v2787_v23 = vsel %vm2785_vm3, %v2775_v35, 2102212464  ;;  %v2791_v55 = vsel %vm2785_vm3, %v2778_v47, 920167782  ;;  %vm2783_vm4 = vcmp.lt.s32.totalorder %v2763_v4, 2 }
 0x2ea   : > { %4224 = vsinq.f32 %v2630_v44  ;;  %v3895_v28 = vmin.u32 %v2712_v6, %v6379_v52  ;;  %v2792_v17 = vsel %vm2784_vm2, %v2775_v35, %v2791_v55  ;;  %v2794_v19 = vsel %vm2782_vm1, %v2772_v13, %v2775_v35 }
 0x2eb   : > { %v2793_v26 = vsel %vm2783_vm4, %v2790_v9, %v2792_v17  ;;  %v2795_v22 = vsel %vm2785_vm3, %v2781_v30, 1326507024  ;;  %v2798_v14 = vshll.u32 %v2758_v45, 8  ;;  %v2732_v21 = vsub.s32 4, %v2708_v60 }
 0x2ec   : > { %v2714_v39 = vclz %v3895_v28  ;;  %v2786_v8 = vsel %vm2782_vm1, %v2766_v40, %v2769_v31  ;;  %v2788_v11 = vsel %vm2784_vm2, %v2772_v13, %v2787_v23  ;;  %v2796_v3 = vsel %vm2784_vm2, %v2778_v47, %v2795_v22 }
 0x2ed   : > { %v6396_v34 = vmul.u32.u64.low %v2798_v14, %v2793_v26  ;;  %v6397_v18 = vmul.u32.u64.high %v2798_v14, %v2793_v26, %v6396_v34  ;;  %v3902_v49 = vadd.s32 4294967169, %v2858_v33  ;;  %v6402_v38 = vadd.f32 %v6136_v7, %v5175_v36 }
 0x2ee   : > { %v2636_v46 = vand.u32 3, %v2635_v51  ;;  %v3896_v50 = vadd.s32 4294967294, %v2714_v39  ;;  %v2797_v12 = vsel %vm2783_vm4, %v2794_v19, %v2796_v3  ;;  %vm2648_vm5 = vcmp.lt.s32.totalorder %v6162_v29, 0 }
 0x2ef   : > { %v6406_v31 = vmul.u32.u64.low %v2798_v14, %v2797_v12  ;;  %v6407_v27 = vmul.u32.u64.high %v2798_v14, %v2797_v12, %v6406_v31  ;;  %v2864_v13 = vadd.s32 1, %v3902_v49  ;;  %vm6411_vm6 = vcmp.le.f32.partialorder %v2646_v54, 0.7853982 }
 0x2f0   : > { %vm3897_vm7 = vcmp.lt.s32.totalorder %v3896_v50, 0  ;;  %v2733_v36 = vsel %vm2648_vm5, %v2732_v21, %v2708_v60  ;;  %v2789_v7 = vsel %vm2783_vm4, %v2786_v8, %v2788_v11  ;;  %v2808_v47 = vadd.s32 1, %v6397_v18 }
 0x2f1   : > { %v2717_v35 = vsel %vm3897_vm7, 0, %v3896_v50  ;;  %v2854_v56 = vand.u32 2147483647, %v6247_v63  ;;  %vm2865_vm8 = vcmp.gt.s32.totalorder %v2864_v13, 0  ;;  %vm2637_vm10 = vcmp.lt.s32.totalorder %v2636_v46, 2 }
 0x2f2   : > { %v2702_v51 = vadd.s32 %v6333_v2, %v6339_v61  ;;  %v2718_v54 = vsub.s32 32, %v2717_v35  ;;  %v2722_v45 = vsub.s32 4294967266, %v2717_v35  ;;  %v2866_v33 = vsel %vm2865_vm8, %v2864_v13, 0 }
 0x2f3   : > { %vm2634_vm9 = vweird.f32 %v6004_v16  ;;  %v2735_v60 = vsel %vm6411_vm6, 0, %v2733_v36  ;;  %v2805_v4 = vmul.u32 %v2798_v14, %v2789_v7  ;;  %vm2807_vm11 = vc.u32 %v6407_v27, %v6396_v34 }
 0x2f4   : > { %v2868_v42 = vand.u32 31, %v2866_v33  ;;  %v2719_v40 = vshll.u32 %v6379_v52, %v2717_v35  ;;  %v2720_v30 = vshrl.u32 %v2702_v51, %v2718_v54  ;;  %v2723_v44 = vadd.s32 127, %v2722_v45 }
 0x2f5   : > { %v2809_v6 = vsel %vm2807_vm11, %v2808_v47, %v6397_v18  ;;  %vm2638_vm12 = vcmp.eq.s32.totalorder %v2636_v46, 0  ;;  %vm2641_vm13 = vcmp.eq.s32.totalorder %v2636_v46, 2  ;;  %v6429_v28 = vadd.s32 3, %v2735_v60 }
 0x2f6   : > { %v2810_v2 = vadd.s32 %v2809_v6, %v2805_v4  ;;  %v2869_v61 = vsub.s32 32, %v2868_v42  ;;  %v4223_v23 = vpop.eup %4222  ;;  %v2721_v9 = vor.u32 %v2720_v30, %v2719_v40  ;;  %v2724_v55 = vshll.u32 %v2723_v44, 23 }
 0x2f7   : > { %v2861_v17 = vand.u32 8388607, %v2854_v56  ;;  %v4225_v26 = vpop.eup %4224  ;;  %v2642_v19 = vxor.u32 2147483648, %v4223_v23  ;;  %v2867_v52 = vshrl.u32 %v2866_v33, 5  ;;  %v2961_v14 = vand.u32 2139095040, %v6271_v15 }
 0x2f8   : > { %v2811_v22 = vadd.s32 536870912, %v2810_v2  ;;  %v2639_v39 = vxor.u32 2147483648, %v4225_v26  ;;  %v2725_v21 = vor.u32 4788187, %v2724_v55  ;;  %v2872_v8 = vshrl.u32 %v7122_v43, %v2869_v61 }
 0x2f9   : > { %v2877_v11 = vshll.u32 %v7099_v5, %v2868_v42  ;;  %v2643_v3 = vsel %vm2641_vm13, %v2642_v19, %v4225_v26  ;;  %v2728_v18 = vcvt.s32.f32 %v2721_v9  ;;  %v2878_v50 = vshrl.u32 %v7088_v58, %v2869_v61 }
 0x2fa   : > { %v6437_v49 = vshrl.u32 %v2811_v22, 30  ;;  %v2640_v12 = vsel %vm2638_vm12, %v4223_v23, %v2639_v39  ;;  %v2726_v31 = vand.u32 2147483647, %v2725_v21  ;;  %v2875_v13 = vshrl.u32 %v7099_v5, %v2869_v61 }
 0x2fb   : > { %v2881_v36 = vshrl.u32 %v7076_v41, %v2869_v61  ;;  %v2644_v7 = vsel %vm2637_vm10, %v2640_v12, %v2643_v3  ;;  %v2871_v47 = vshll.u32 %v7092_v0, %v2868_v42  ;;  %v2874_v51 = vshll.u32 %v7122_v43, %v2868_v42 }
 0x2fc   : > { %v2813_v35 = vshll.u32 %v6437_v49, 30  ;;  %v2645_v54 = vsel %vm2634_vm9, nan, %v2644_v7  ;;  %v2729_v45 = vmul.f32 %v2728_v18, %v2726_v31  ;;  %v2879_v33 = vor.u32 %v2878_v50, %v2877_v11 }
 0x2fd   : > { %v2880_v60 = vshll.u32 %v7088_v58, %v2868_v42  ;;  %v2862_v40 = vor.u32 8388608, %v2861_v17  ;;  %v2873_v30 = vor.u32 %v2872_v8, %v2871_v47  ;;  %v2884_v46 = vshrl.u32 %v7077_v48, %v2869_v61  ;;  %3691 = vst [vmem:[%s4804_s28 + $0xa8] sm:$0xff] %v2645_v54 }
 0x2fe   : > { %v6450_v4 = vsub.s32 %v2810_v2, %v2813_v35  ;;  %v2730_v44 = vxor.u32 2147483648, %v2729_v45  ;;  %v2876_v6 = vor.u32 %v2875_v13, %v2874_v51  ;;  %v2883_v9 = vshll.u32 %v7076_v41, %v2868_v42 }
 0x2ff   : > { %v2882_v23 = vor.u32 %v2881_v36, %v2880_v60  ;;  %vm2889_vm14 = vcmp.lt.s32.totalorder %v2867_v52, 4  ;;  %v2958_v16 = vand.u32 2147483647, %v6271_v15  ;;  %v2962_v26 = vshrl.u32 %v2961_v14, 23 }
 0x300   : > { %v2816_v55 = vsub.s32 0, %v6450_v4  ;;  %v2731_v2 = vsel %vm2648_vm5, %v2730_v44, %v2729_v45  ;;  %v2870_v17 = vshrl.u32 %v7092_v0, %v2869_v61  ;;  %v2885_v19 = vor.u32 %v2884_v46, %v2883_v9 }
 0x301   : > { %v2891_v22 = vsel %vm2889_vm14, %v2879_v33, 2102212464  ;;  %v2734_v39 = vsel %vm6411_vm6, %v6162_v29, %v2731_v2  ;;  %vm2886_vm15 = vcmp.lt.s32.totalorder %v2867_v52, 1  ;;  %vm2888_vm0 = vcmp.lt.s32.totalorder %v2867_v52, 3 }
 0x302   : > { %v3899_v42 = vmin.u32 %v2816_v55, %v6450_v4  ;;  %4226 = vcosq.f32 %v2734_v39  ;;  %v2890_v21 = vsel %vm2886_vm15, %v2870_v17, %v2873_v30  ;;  %v2894_v8 = vsel %vm2886_vm15, %v2873_v30, %v2876_v6 }
 0x303   : > { %v2895_v14 = vsel %vm2889_vm14, %v2882_v23, 920167782  ;;  %4228 = vsinq.f32 %v2734_v39  ;;  %v2892_v3 = vsel %vm2888_vm0, %v2876_v6, %v2891_v22  ;;  %v2898_v61 = vsel %vm2886_vm15, %v2876_v6, %v2879_v33 }
 0x304   : > { %v2818_v11 = vclz %v3899_v42  ;;  %vm2887_vm1 = vcmp.lt.s32.totalorder %v2867_v52, 2  ;;  %v2896_v18 = vsel %vm2888_vm0, %v2879_v33, %v2895_v14  ;;  %v2899_v50 = vsel %vm2889_vm14, %v2885_v19, 1326507024 }
 0x305   : > { %v2902_v12 = vshll.u32 %v2862_v40, 8  ;;  %v2897_v31 = vsel %vm2887_vm1, %v2894_v8, %v2896_v18  ;;  %v2900_v13 = vsel %vm2888_vm0, %v2882_v23, %v2899_v50  ;;  %v3906_v36 = vadd.s32 4294967169, %v2962_v26 }
 0x306   : > { %v3900_v53 = vadd.s32 4294967294, %v2818_v11  ;;  %v2893_v7 = vsel %vm2887_vm1, %v2890_v21, %v2892_v3  ;;  %v2901_v35 = vsel %vm2887_vm1, %v2898_v61, %v2900_v13  ;;  %v6476_v52 = vadd.f32 %v6140_v37, %v5281_v62 }
 0x307   : > { %v6467_v47 = vmul.u32.u64.low %v2902_v12, %v2897_v31  ;;  %v6468_v51 = vmul.u32.u64.high %v2902_v12, %v2897_v31, %v6467_v47  ;;  %v6471_v54 = vmul.u32.u64.low %v2902_v12, %v2901_v35  ;;  %v6472_v45 = vmul.u32.u64.high %v2902_v12, %v2901_v35, %v6471_v54 }
 0x308   : > { %vm3901_vm2 = vcmp.lt.s32.totalorder %v3900_v53, 0  ;;  %v2968_v60 = vadd.s32 1, %v3906_v36  ;;  %v2740_v33 = vand.u32 3, %v6429_v28  ;;  %v2806_v40 = vadd.s32 %v6396_v34, %v6407_v27 }
 0x309   : > { %v2821_v30 = vsel %vm3901_vm2, 0, %v3900_v53  ;;  %v2836_v6 = vsub.s32 4, %v6437_v49  ;;  %v2909_v23 = vmul.u32 %v2902_v12, %v2893_v7  ;;  %v2912_v9 = vadd.s32 1, %v6468_v51 }
 0x30a   : > { %v2822_v46 = vsub.s32 32, %v2821_v30  ;;  %v2826_v44 = vsub.s32 4294967266, %v2821_v30  ;;  %vm2969_vm3 = vcmp.gt.s32.totalorder %v2968_v60, 0  ;;  %v2965_v55 = vand.u32 8388607, %v2958_v16 }
 0x30b   : > { %v2970_v26 = vsel %vm2969_vm3, %v2968_v60, 0  ;;  %v2823_v37 = vshll.u32 %v6450_v4, %v2821_v30  ;;  %vm2911_vm4 = vc.u32 %v6472_v45, %v6467_v47  ;;  %v6490_v34 = vadd.f32 %v6151_v57, %v5281_v62 }
 0x30c   : > { %v2824_v2 = vshrl.u32 %v2806_v40, %v2822_v46  ;;  %v2827_v28 = vadd.s32 127, %v2826_v44  ;;  %vm2738_vm5 = vweird.f32 %v6162_v29  ;;  %v2913_v27 = vsel %vm2911_vm4, %v2912_v9, %v6468_v51 }
 0x30d   : > { %v2972_v17 = vand.u32 31, %v2970_v26  ;;  %vm2752_vm6 = vcmp.lt.s32.totalorder %v6241_v10, 0  ;;  %v2914_v39 = vadd.s32 %v2913_v27, %v2909_v23  ;;  %vm2741_vm7 = vcmp.lt.s32.totalorder %v2740_v33, 2 }
 0x30e   : > { %v2825_v19 = vor.u32 %v2824_v2, %v2823_v37  ;;  %v2828_v22 = vshll.u32 %v2827_v28, 23  ;;  %vm2742_vm8 = vcmp.eq.s32.totalorder %v2740_v33, 0  ;;  %vm2745_vm10 = vcmp.eq.s32.totalorder %v2740_v33, 2 }
 0x30f   : > { %vm6497_vm9 = vcmp.le.f32.partialorder %v2750_v1, 0.7853982  ;;  %v2973_v62 = vsub.s32 32, %v2972_v17  ;;  %v4227_v57 = vpop.eup %4226  ;;  %v2837_v21 = vsel %vm2752_vm6, %v2836_v6, %v6437_v49  ;;  %v2915_v8 = vadd.s32 536870912, %v2914_v39 }
 0x310   : > { %v2829_v42 = vor.u32 4788187, %v2828_v22  ;;  %v2966_v14 = vor.u32 8388608, %v2965_v55  ;;  %v4229_v11 = vpop.eup %4228  ;;  %v2746_v3 = vxor.u32 2147483648, %v4227_v57  ;;  %v2832_v61 = vcvt.s32.f32 %v2825_v19 }
 0x311   : > { %v2971_v18 = vshrl.u32 %v2970_v26, 5  ;;  %v2976_v50 = vshrl.u32 %v7122_v43, %v2973_v62  ;;  %v2743_v12 = vxor.u32 2147483648, %v4229_v11  ;;  %v6505_v53 = vshrl.u32 %v2915_v8, 30 }
 0x312   : > { %v2830_v1 = vand.u32 2147483647, %v2829_v42  ;;  %v2982_v31 = vshrl.u32 %v7088_v58, %v2973_v62  ;;  %v2747_v13 = vsel %vm2745_vm10, %v2746_v3, %v4229_v11  ;;  %v2975_v36 = vshll.u32 %v7092_v0, %v2972_v17 }
 0x313   : > { %v2979_v49 = vshrl.u32 %v7099_v5, %v2973_v62  ;;  %v2985_v7 = vshrl.u32 %v7076_v41, %v2973_v62  ;;  %v2744_v35 = vsel %vm2742_vm8, %v4227_v57, %v2743_v12  ;;  %v2917_v54 = vshll.u32 %v6505_v53, 30 }
 0x314   : > { %v2833_v51 = vmul.f32 %v2832_v61, %v2830_v1  ;;  %v2981_v60 = vshll.u32 %v7099_v5, %v2972_v17  ;;  %v2748_v40 = vsel %vm2741_vm7, %v2744_v35, %v2747_v13  ;;  %v2977_v30 = vor.u32 %v2976_v50, %v2975_v36 }
 0x315   : > { %v2978_v46 = vshll.u32 %v7122_v43, %v2972_v17  ;;  %v2984_v44 = vshll.u32 %v7088_v58, %v2972_v17  ;;  %v2749_v6 = vsel %vm2738_vm5, nan, %v2748_v40  ;;  %v6520_v9 = vsub.s32 %v2914_v39, %v2917_v54 }
 0x316   : > { %v2834_v23 = vxor.u32 2147483648, %v2833_v51  ;;  %v2983_v55 = vor.u32 %v2982_v31, %v2981_v60  ;;  %v2987_v2 = vshll.u32 %v7076_v41, %v2972_v17  ;;  %v2988_v28 = vshrl.u32 %v7077_v48, %v2973_v62  ;;  %3692 = vst [vmem:[%s4804_s28 + $0xb0] sm:$0xff] %v2749_v6 }
 0x317   : > { %v2980_v26 = vor.u32 %v2979_v49, %v2978_v46  ;;  %v2986_v37 = vor.u32 %v2985_v7, %v2984_v44  ;;  %v2839_v27 = vsel %vm6497_vm9, 0, %v2837_v21  ;;  %v2920_v29 = vsub.s32 0, %v6520_v9 }
 0x318   : > { %v2835_v33 = vsel %vm2752_vm6, %v2834_v23, %v2833_v51  ;;  %v3006_v19 = vshll.u32 %v2966_v14, 8  ;;  %v2974_v39 = vshrl.u32 %v7092_v0, %v2973_v62  ;;  %v2989_v57 = vor.u32 %v2988_v28, %v2987_v2 }
 0x319   : > { %v2838_v22 = vsel %vm6497_vm9, %v6241_v10, %v2835_v33  ;;  %vm2993_vm11 = vcmp.lt.s32.totalorder %v2971_v18, 4  ;;  %v3903_v17 = vmin.u32 %v2920_v29, %v6520_v9  ;;  %vm2990_vm12 = vcmp.lt.s32.totalorder %v2971_v18, 1 }
 0x31a   : > { %4230 = vcosq.f32 %v2838_v22  ;;  %v2995_v42 = vsel %vm2993_vm11, %v2983_v55, 2102212464  ;;  %v2998_v8 = vsel %vm2990_vm12, %v2977_v30, %v2980_v26  ;;  %v2999_v21 = vsel %vm2993_vm11, %v2986_v37, 920167782 }
 0x31b   : > { %4232 = vsinq.f32 %v2838_v22  ;;  %v3065_v14 = vand.u32 2139095040, %v6275_v25  ;;  %v2922_v11 = vclz %v3903_v17  ;;  %vm2991_vm13 = vcmp.lt.s32.totalorder %v2971_v18, 2 }
 0x31c   : > { %vm2992_vm14 = vcmp.lt.s32.totalorder %v2971_v18, 3  ;;  %v2994_v4 = vsel %vm2990_vm12, %v2974_v39, %v2977_v30  ;;  %v3002_v61 = vsel %vm2990_vm12, %v2980_v26, %v2983_v55  ;;  %v3003_v50 = vsel %vm2993_vm11, %v2989_v57, 1326507024 }
 0x31d   : > { %v2996_v3 = vsel %vm2992_vm14, %v2980_v26, %v2995_v42  ;;  %v3000_v62 = vsel %vm2992_vm14, %v2983_v55, %v2999_v21  ;;  %v2843_v12 = vadd.s32 3, %v2839_v27  ;;  %v3904_v1 = vadd.s32 4294967294, %v2922_v11 }
 0x31e   : > { %v3001_v31 = vsel %vm2991_vm13, %v2998_v8, %v3000_v62  ;;  %v3004_v13 = vsel %vm2992_vm14, %v2986_v37, %v3003_v50  ;;  %v3066_v35 = vshrl.u32 %v3065_v14, 23  ;;  %v2997_v51 = vsel %vm2991_vm13, %v2994_v4, %v2996_v3 }
 0x31f   : > { %v3005_v36 = vsel %vm2991_vm13, %v3002_v61, %v3004_v13  ;;  %v6539_v49 = vmul.u32.u64.low %v3006_v19, %v3001_v31  ;;  %v6540_v7 = vmul.u32.u64.high %v3006_v19, %v3001_v31, %v6539_v49  ;;  %vm3905_vm15 = vcmp.lt.s32.totalorder %v3904_v1, 0 }
 0x320   : > { %v6543_v54 = vmul.u32.u64.low %v3006_v19, %v3005_v36  ;;  %v6544_v60 = vmul.u32.u64.high %v3006_v19, %v3005_v36, %v6543_v54  ;;  %vm2856_vm0 = vcmp.lt.s32.totalorder %v6247_v63, 0  ;;  %v2925_v40 = vsel %vm3905_vm15, 0, %v3904_v1 }
 0x321   : > { %v2940_v18 = vsub.s32 4, %v6505_v53  ;;  %v3910_v30 = vadd.s32 4294967169, %v3066_v35  ;;  %v2844_v46 = vand.u32 3, %v2843_v12  ;;  %v2910_v44 = vadd.s32 %v6467_v47, %v6472_v45 }
 0x322   : > { %v2926_v6 = vsub.s32 32, %v2925_v40  ;;  %v2930_v23 = vsub.s32 4294967266, %v2925_v40  ;;  %v3013_v55 = vmul.u32 %v3006_v19, %v2997_v51  ;;  %v3016_v26 = vadd.s32 1, %v6540_v7 }
 0x323   : > { %v3062_v37 = vand.u32 2147483647, %v6275_v25  ;;  %v3072_v2 = vadd.s32 1, %v3910_v30  ;;  %v2927_v28 = vshll.u32 %v6520_v9, %v2925_v40  ;;  %vm3015_vm1 = vc.u32 %v6544_v60, %v6539_v49 }
 0x324   : > { %v2928_v33 = vshrl.u32 %v2910_v44, %v2926_v6  ;;  %v2931_v27 = vadd.s32 127, %v2930_v23  ;;  %vm2842_vm2 = vweird.f32 %v6241_v10  ;;  %v2941_v47 = vsel %vm2856_vm0, %v2940_v18, %v6505_v53 }
 0x325   : > { %v3017_v45 = vsel %vm3015_vm1, %v3016_v26, %v6540_v7  ;;  %vm3073_vm3 = vcmp.gt.s32.totalorder %v3072_v2, 0  ;;  %vm2845_vm4 = vcmp.lt.s32.totalorder %v2844_v46, 2  ;;  %vm6562_vm5 = vcmp.le.f32.partialorder %v2854_v56, 0.7853982 }
 0x326   : > { %v2929_v29 = vor.u32 %v2928_v33, %v2927_v28  ;;  %v2932_v19 = vshll.u32 %v2931_v27, 23  ;;  %v3018_v22 = vadd.s32 %v3017_v45, %v3013_v55  ;;  %v3074_v39 = vsel %vm3073_vm3, %v3072_v2, 0 }
 0x327   : > { %v4231_v57 = vpop.eup %4230  ;;  %v3069_v17 = vand.u32 8388607, %v3062_v37  ;;  %v3076_v42 = vand.u32 31, %v3074_v39  ;;  %v2943_v14 = vsel %vm6562_vm5, 0, %v2941_v47  ;;  %vm2846_vm6 = vcmp.eq.s32.totalorder %v2844_v46, 0 }
 0x328   : > { %v4233_v53 = vpop.eup %4232  ;;  %v2850_v8 = vxor.u32 2147483648, %v4231_v57  ;;  %v2933_v21 = vor.u32 4788187, %v2932_v19  ;;  %v3019_v11 = vadd.s32 536870912, %v3018_v22  ;;  %vm2849_vm7 = vcmp.eq.s32.totalorder %v2844_v46, 2 }
 0x329   : > { %v2847_v4 = vxor.u32 2147483648, %v4233_v53  ;;  %v3077_v3 = vsub.s32 32, %v3076_v42  ;;  %v2936_v61 = vcvt.s32.f32 %v2929_v29  ;;  %v6572_v1 = vadd.s32 3, %v2943_v14 }
 0x32a   : > { %v2851_v62 = vsel %vm2849_vm7, %v2850_v8, %v4233_v53  ;;  %v2934_v56 = vand.u32 2147483647, %v2933_v21  ;;  %v6570_v50 = vshrl.u32 %v3019_v11, 30  ;;  %v3070_v31 = vor.u32 8388608, %v3069_v17 }
 0x32b   : > { %v2848_v12 = vsel %vm2846_vm6, %v4231_v57, %v2847_v4  ;;  %v3080_v13 = vshrl.u32 %v7122_v43, %v3077_v3  ;;  %v3169_v51 = vand.u32 2139095040, %v6402_v38  ;;  %v3079_v40 = vshll.u32 %v7092_v0, %v3076_v42 }
 0x32c   : > { %v2852_v36 = vsel %vm2845_vm4, %v2848_v12, %v2851_v62  ;;  %v2937_v7 = vmul.f32 %v2936_v61, %v2934_v56  ;;  %v3021_v35 = vshll.u32 %v6570_v50, 30  ;;  %v3083_v18 = vshrl.u32 %v7099_v5, %v3077_v3 }
 0x32d   : > { %v2853_v54 = vsel %vm2842_vm2, nan, %v2852_v36  ;;  %v3086_v30 = vshrl.u32 %v7088_v58, %v3077_v3  ;;  %v3075_v23 = vshrl.u32 %v3074_v39, 5  ;;  %v3082_v46 = vshll.u32 %v7122_v43, %v3076_v42 }
 0x32e   : > { %v2938_v44 = vxor.u32 2147483648, %v2937_v7  ;;  %v6583_v6 = vsub.s32 %v3018_v22, %v3021_v35  ;;  %3693 = vst [vmem:[%s4804_s28 + $0xb8] sm:$0xff] %v2853_v54  ;;  %v3081_v55 = vor.u32 %v3080_v13, %v3079_v40  ;;  %v3085_v26 = vshll.u32 %v7099_v5, %v3076_v42 }
 0x32f   : > { %v3088_v2 = vshll.u32 %v7088_v58, %v3076_v42  ;;  %v3089_v10 = vshrl.u32 %v7076_v41, %v3077_v3  ;;  %v3091_v27 = vshll.u32 %v7076_v41, %v3076_v42  ;;  %v3092_v47 = vshrl.u32 %v7077_v48, %v3077_v3 }
 0x330   : > { %v2939_v28 = vsel %vm2856_vm0, %v2938_v44, %v2937_v7  ;;  %v3024_v33 = vsub.s32 0, %v6583_v6  ;;  %v3084_v29 = vor.u32 %v3083_v18, %v3082_v46  ;;  %v3087_v19 = vor.u32 %v3086_v30, %v3085_v26 }
 0x331   : > { %v2942_v45 = vsel %vm6562_vm5, %v6247_v63, %v2939_v28  ;;  %v3090_v22 = vor.u32 %v3089_v10, %v3088_v2  ;;  %v3093_v57 = vor.u32 %v3092_v47, %v3091_v27  ;;  %v3110_v17 = vshll.u32 %v3070_v31, 8 }
 0x332   : > { %4234 = vcosq.f32 %v2942_v45  ;;  %v3907_v39 = vmin.u32 %v3024_v33, %v6583_v6  ;;  %v3078_v53 = vshrl.u32 %v7092_v0, %v3077_v3  ;;  %vm3094_vm8 = vcmp.lt.s32.totalorder %v3075_v23, 1 }
 0x333   : > { %4236 = vsinq.f32 %v2942_v45  ;;  %v3170_v8 = vshrl.u32 %v3169_v51, 23  ;;  %vm3095_vm10 = vcmp.lt.s32.totalorder %v3075_v23, 2  ;;  %vm3096_vm9 = vcmp.lt.s32.totalorder %v3075_v23, 3 }
 0x334   : > { %v3026_v42 = vclz %v3907_v39  ;;  %vm3097_vm11 = vcmp.lt.s32.totalorder %v3075_v23, 4  ;;  %v3102_v9 = vsel %vm3094_vm8, %v3081_v55, %v3084_v29  ;;  %v3106_v11 = vsel %vm3094_vm8, %v3084_v29, %v3087_v19 }
 0x335   : > { %v3099_v21 = vsel %vm3097_vm11, %v3087_v19, 2102212464  ;;  %v3103_v14 = vsel %vm3097_vm11, %v3090_v22, 920167782  ;;  %v3098_v62 = vsel %vm3094_vm8, %v3078_v53, %v3081_v55  ;;  %v3107_v61 = vsel %vm3097_vm11, %v3093_v57, 1326507024 }
 0x336   : > { %v3908_v4 = vadd.s32 4294967294, %v3026_v42  ;;  %v3104_v56 = vsel %vm3096_vm9, %v3087_v19, %v3103_v14  ;;  %v3100_v12 = vsel %vm3096_vm9, %v3084_v29, %v3099_v21  ;;  %v3108_v13 = vsel %vm3096_vm9, %v3090_v22, %v3107_v61 }
 0x337   : > { %v3105_v31 = vsel %vm3095_vm10, %v3102_v9, %v3104_v56  ;;  %v3914_v36 = vadd.s32 4294967169, %v3170_v8  ;;  %v3109_v3 = vsel %vm3095_vm10, %v3106_v11, %v3108_v13  ;;  %vm2960_vm13 = vcmp.lt.s32.totalorder %v6271_v15, 0 }
 0x338   : > { %vm3909_vm12 = vcmp.lt.s32.totalorder %v3908_v4, 0  ;;  %v6602_v7 = vmul.u32.u64.low %v3110_v17, %v3105_v31  ;;  %v6603_v35 = vmul.u32.u64.high %v3110_v17, %v3105_v31, %v6602_v7  ;;  %v3014_v18 = vadd.s32 %v6539_v49, %v6544_v60 }
 0x339   : > { %v3029_v51 = vsel %vm3909_vm12, 0, %v3908_v4  ;;  %v6607_v54 = vmul.u32.u64.low %v3110_v17, %v3109_v3  ;;  %v6608_v40 = vmul.u32.u64.high %v3110_v17, %v3109_v3, %v6607_v54  ;;  %v3101_v46 = vsel %vm3095_vm10, %v3098_v62, %v3100_v12 }
 0x33a   : > { %v3030_v30 = vsub.s32 32, %v3029_v51  ;;  %v3034_v44 = vsub.s32 4294967266, %v3029_v51  ;;  %v2948_v55 = vand.u32 3, %v6572_v1  ;;  %vm6616_vm14 = vcmp.le.f32.partialorder %v2958_v16, 0.7853982 }
 0x33b   : > { %v3044_v2 = vsub.s32 4, %v6570_v50  ;;  %v3176_v10 = vadd.s32 1, %v3914_v36  ;;  %vm2946_vm15 = vweird.f32 %v6247_v63  ;;  %v3031_v28 = vshll.u32 %v6583_v6, %v3029_v51 }
 0x33c   : > { %v3032_v49 = vshrl.u32 %v3014_v18, %v3030_v30  ;;  %v3035_v60 = vadd.s32 127, %v3034_v44  ;;  %v3120_v23 = vadd.s32 1, %v6603_v35  ;;  %v3117_v33 = vmul.u32 %v3110_v17, %v3101_v46 }
 0x33d   : > { %vm3119_vm0 = vc.u32 %v6608_v40, %v6602_v7  ;;  %v3166_v16 = vand.u32 2147483647, %v6402_v38  ;;  %vm3177_vm1 = vcmp.gt.s32.totalorder %v3176_v10, 0  ;;  %vm2949_vm2 = vcmp.lt.s32.totalorder %v2948_v55, 2 }
 0x33e   : > { %v3033_v1 = vor.u32 %v3032_v49, %v3031_v28  ;;  %v3036_v27 = vshll.u32 %v3035_v60, 23  ;;  %v3121_v47 = vsel %vm3119_vm0, %v3120_v23, %v6603_v35  ;;  %v3178_v45 = vsel %vm3177_vm1, %v3176_v10, 0 }
 0x33f   : > { %v4235_v29 = vpop.eup %4234  ;;  %v3045_v6 = vsel %vm2960_vm13, %v3044_v2, %v6570_v50  ;;  %v3122_v19 = vadd.s32 %v3121_v47, %v3117_v33  ;;  %v3180_v22 = vand.u32 31, %v3178_v45  ;;  %vm2950_vm3 = vcmp.eq.s32.totalorder %v2948_v55, 0 }
 0x340   : > { %v4237_v39 = vpop.eup %4236  ;;  %vm2953_vm4 = vcmp.eq.s32.totalorder %v2948_v55, 2  ;;  %v2954_v57 = vxor.u32 2147483648, %v4235_v29  ;;  %v3037_v17 = vor.u32 4788187, %v3036_v27  ;;  %v3173_v42 = vand.u32 8388607, %v3166_v16 }
 0x341   : > { %v2951_v53 = vxor.u32 2147483648, %v4237_v39  ;;  %v3123_v8 = vadd.s32 536870912, %v3122_v19  ;;  %v3181_v21 = vsub.s32 32, %v3180_v22  ;;  %v3040_v11 = vcvt.s32.f32 %v3033_v1 }
 0x342   : > { %v2955_v9 = vsel %vm2953_vm4, %v2954_v57, %v4237_v39  ;;  %v3038_v14 = vand.u32 2147483647, %v3037_v17  ;;  %v3047_v4 = vsel %vm6616_vm14, 0, %v3045_v6  ;;  %v3183_v56 = vshll.u32 %v7092_v0, %v3180_v22 }
 0x343   : > { %v2952_v50 = vsel %vm2950_vm3, %v4235_v29, %v2951_v53  ;;  %v6635_v62 = vshrl.u32 %v3123_v8, 30  ;;  %v3184_v61 = vshrl.u32 %v7122_v43, %v3181_v21  ;;  %v3187_v13 = vshrl.u32 %v7099_v5, %v3181_v21 }
 0x344   : > { %v2956_v12 = vsel %vm2949_vm2, %v2952_v50, %v2955_v9  ;;  %v3041_v31 = vmul.f32 %v3040_v11, %v3038_v14  ;;  %v3190_v36 = vshrl.u32 %v7088_v58, %v3181_v21  ;;  %v3174_v51 = vor.u32 8388608, %v3173_v42 }
 0x345   : > { %v2957_v3 = vsel %vm2946_vm15, nan, %v2956_v12  ;;  %v3125_v35 = vshll.u32 %v6635_v62, 30  ;;  %v3186_v54 = vshll.u32 %v7122_v43, %v3180_v22  ;;  %v3179_v30 = vshrl.u32 %v3178_v45, 5 }
 0x346   : > { %v3042_v18 = vxor.u32 2147483648, %v3041_v31  ;;  %v3185_v44 = vor.u32 %v3184_v61, %v3183_v56  ;;  %v3189_v46 = vshll.u32 %v7099_v5, %v3180_v22  ;;  %3694 = vst [vmem:[%s4804_s28 + $0xc0] sm:$0xff] %v2957_v3  ;;  %v3192_v10 = vshll.u32 %v7088_v58, %v3180_v22 }
 0x347   : > { %v6648_v55 = vsub.s32 %v3122_v19, %v3125_v35  ;;  %v3188_v2 = vor.u32 %v3187_v13, %v3186_v54  ;;  %v3193_v28 = vshrl.u32 %v7076_v41, %v3181_v21  ;;  %v3195_v60 = vshll.u32 %v7076_v41, %v3180_v22 }
 0x348   : > { %v3043_v63 = vsel %vm2960_vm13, %v3042_v18, %v3041_v31  ;;  %v3191_v49 = vor.u32 %v3190_v36, %v3189_v46  ;;  %v3196_v23 = vshrl.u32 %v7077_v48, %v3181_v21  ;;  %v3051_v1 = vadd.s32 3, %v3047_v4 }
 0x349   : > { %v3046_v33 = vsel %vm6616_vm14, %v6271_v15, %v3043_v63  ;;  %v3128_v27 = vsub.s32 0, %v6648_v55  ;;  %v3194_v47 = vor.u32 %v3193_v28, %v3192_v10  ;;  %v3182_v45 = vshrl.u32 %v7092_v0, %v3181_v21 }
 0x34a   : > { %4238 = vcosq.f32 %v3046_v33  ;;  %v3197_v29 = vor.u32 %v3196_v23, %v3195_v60  ;;  %v3214_v6 = vshll.u32 %v3174_v51, 8  ;;  %vm3198_vm5 = vcmp.lt.s32.totalorder %v3179_v30, 1 }
 0x34b   : > { %4240 = vsinq.f32 %v3046_v33  ;;  %v3911_v19 = vmin.u32 %v3128_v27, %v6648_v55  ;;  %vm3201_vm6 = vcmp.lt.s32.totalorder %v3179_v30, 4  ;;  %v3206_v39 = vsel %vm3198_vm5, %v3185_v44, %v3188_v2 }
 0x34c   : > { %v3203_v22 = vsel %vm3201_vm6, %v3191_v49, 2102212464  ;;  %v3207_v57 = vsel %vm3201_vm6, %v3194_v47, 920167782  ;;  %v3273_v26 = vand.u32 2139095040, %v6476_v52  ;;  %vm3199_vm7 = vcmp.lt.s32.totalorder %v3179_v30, 2 }
 0x34d   : > { %v3130_v17 = vclz %v3911_v19  ;;  %vm3200_vm8 = vcmp.lt.s32.totalorder %v3179_v30, 3  ;;  %v3202_v53 = vsel %vm3198_vm5, %v3182_v45, %v3185_v44  ;;  %v3210_v9 = vsel %vm3198_vm5, %v3188_v2, %v3191_v49 }
 0x34e   : > { %v3204_v8 = vsel %vm3200_vm8, %v3188_v2, %v3203_v22  ;;  %v3208_v42 = vsel %vm3200_vm8, %v3191_v49, %v3207_v57  ;;  %v3211_v21 = vsel %vm3201_vm6, %v3197_v29, 1326507024  ;;  %v3148_v11 = vsub.s32 4, %v6635_v62 }
 0x34f   : > { %v3912_v14 = vadd.s32 4294967294, %v3130_v17  ;;  %v3209_v4 = vsel %vm3199_vm7, %v3206_v39, %v3208_v42  ;;  %v3212_v50 = vsel %vm3200_vm8, %v3194_v47, %v3211_v21  ;;  %v3205_v56 = vsel %vm3199_vm7, %v3202_v53, %v3204_v8 }
 0x350   : > { %v3213_v61 = vsel %vm3199_vm7, %v3210_v9, %v3212_v50  ;;  %v6664_v12 = vmul.u32.u64.low %v3214_v6, %v3209_v4  ;;  %v6665_v31 = vmul.u32.u64.high %v3214_v6, %v3209_v4, %v6664_v12  ;;  %v3274_v3 = vshrl.u32 %v3273_v26, 23 }
 0x351   : > { %vm3913_vm10 = vcmp.lt.s32.totalorder %v3912_v14, 0  ;;  %v6668_v13 = vmul.u32.u64.low %v3214_v6, %v3213_v61  ;;  %v6669_v36 = vmul.u32.u64.high %v3214_v6, %v3213_v61, %v6668_v13  ;;  %v3052_v35 = vand.u32 3, %v3051_v1 }
 0x352   : > { %vm6673_vm9 = vcmp.le.f32.partialorder %v3062_v37, 0.7853982  ;;  %vm3064_vm11 = vcmp.lt.s32.totalorder %v6275_v25, 0  ;;  %v3133_v54 = vsel %vm3913_vm10, 0, %v3912_v14  ;;  %v3118_v18 = vadd.s32 %v6602_v7, %v6608_v40 }
 0x353   : > { %v3134_v30 = vsub.s32 32, %v3133_v54  ;;  %v3138_v44 = vsub.s32 4294967266, %v3133_v54  ;;  %v3918_v46 = vadd.s32 4294967169, %v3274_v3  ;;  %v3149_v2 = vsel %vm3064_vm11, %v3148_v11, %v6635_v62 }
 0x354   : > { %v3221_v10 = vmul.u32 %v3214_v6, %v3205_v56  ;;  %v3224_v28 = vadd.s32 1, %v6665_v31  ;;  %v3270_v37 = vand.u32 2147483647, %v6476_v52  ;;  %v3135_v63 = vshll.u32 %v6648_v55, %v3133_v54 }
 0x355   : > { %v3136_v49 = vshrl.u32 %v3118_v18, %v3134_v30  ;;  %v3139_v60 = vadd.s32 127, %v3138_v44  ;;  %vm3223_vm12 = vc.u32 %v6669_v36, %v6664_v12  ;;  %vm3053_vm13 = vcmp.lt.s32.totalorder %v3052_v35, 2 }
 0x356   : > { %v3225_v7 = vsel %vm3223_vm12, %v3224_v28, %v6665_v31  ;;  %v3280_v40 = vadd.s32 1, %v3918_v46  ;;  %v3377_v23 = vand.u32 2139095040, %v6490_v34  ;;  %v3151_v27 = vsel %vm6673_vm9, 0, %v3149_v2 }
 0x357   : > { %v4239_v33 = vpop.eup %4238  ;;  %v3137_v62 = vor.u32 %v3136_v49, %v3135_v63  ;;  %v3140_v1 = vshll.u32 %v3139_v60, 23  ;;  %v3226_v47 = vadd.s32 %v3225_v7, %v3221_v10  ;;  %vm3054_vm14 = vcmp.eq.s32.totalorder %v3052_v35, 0 }
 0x358   : > { %v4241_v45 = vpop.eup %4240  ;;  %vm3057_vm15 = vcmp.eq.s32.totalorder %v3052_v35, 2  ;;  %v3058_v55 = vxor.u32 2147483648, %v4239_v33  ;;  %vm3281_vm0 = vcmp.gt.s32.totalorder %v3280_v40, 0  ;;  %v3277_v22 = vand.u32 8388607, %v3270_v37 }
 0x359   : > { %v3055_v29 = vxor.u32 2147483648, %v4241_v45  ;;  %v3141_v6 = vor.u32 4788187, %v3140_v1  ;;  %v3227_v19 = vadd.s32 536870912, %v3226_v47  ;;  %v3155_v57 = vadd.s32 3, %v3151_v27 }
 0x35a   : > { %v3059_v39 = vsel %vm3057_vm15, %v3058_v55, %v4241_v45  ;;  %v3282_v26 = vsel %vm3281_vm0, %v3280_v40, 0  ;;  %v3378_v17 = vshrl.u32 %v3377_v23, 23  ;;  %v3144_v42 = vcvt.s32.f32 %v3137_v62 }
 0x35b   : > { %v3056_v53 = vsel %vm3054_vm14, %v4239_v33, %v3055_v29  ;;  %v3142_v8 = vand.u32 2147483647, %v3141_v6  ;;  %v6694_v9 = vshrl.u32 %v3227_v19, 30  ;;  %vm3050_vm1 = vweird.f32 %v6271_v15 }
 0x35c   : > { %v3060_v21 = vsel %vm3053_vm13, %v3056_v53, %v3059_v39  ;;  %v3284_v14 = vand.u32 31, %v3282_v26  ;;  %v6700_v11 = vadd.f32 %v6158_v20, %v5418_v59  ;;  %v6703_v61 = vand.u32 3, %v3155_v57 }
 0x35d   : > { %v3061_v4 = vsel %vm3050_vm1, nan, %v3060_v21  ;;  %v3145_v50 = vmul.f32 %v3144_v42, %v3142_v8  ;;  %v3229_v56 = vshll.u32 %v6694_v9, 30  ;;  %v3278_v31 = vor.u32 8388608, %v3277_v22 }
 0x35e   : > { %v3285_v13 = vsub.s32 32, %v3284_v14  ;;  %v3374_v3 = vand.u32 2147483647, %v6490_v34  ;;  %3695 = vst [vmem:[%s4804_s28 + $0xc8] sm:$0xff] %v3061_v4  ;;  %v6709_v35 = vshrl.u32 %v3282_v26, 5  ;;  %v3922_v18 = vadd.s32 4294967169, %v3378_v17 }
 0x35f   : > { %v3146_v54 = vxor.u32 2147483648, %v3145_v50  ;;  %v6707_v15 = vsub.s32 %v3226_v47, %v3229_v56  ;;  %v3287_v20 = vshll.u32 %v7092_v0, %v3284_v14  ;;  %v3290_v44 = vshll.u32 %v7122_v43, %v3284_v14 }
 0x360   : > { %v3288_v30 = vshrl.u32 %v7122_v43, %v3285_v13  ;;  %v3291_v46 = vshrl.u32 %v7099_v5, %v3285_v13  ;;  %v3293_v28 = vshll.u32 %v7099_v5, %v3284_v14  ;;  %v3294_v63 = vshrl.u32 %v7088_v58, %v3285_v13 }
 0x361   : > { %v3147_v2 = vsel %vm3064_vm11, %v3146_v54, %v3145_v50  ;;  %v3232_v10 = vsub.s32 0, %v6707_v15  ;;  %v3296_v7 = vshll.u32 %v7088_v58, %v3284_v14  ;;  %v3297_v40 = vshrl.u32 %v7076_v41, %v3285_v13 }
 0x362   : > { %v3150_v49 = vsel %vm6673_vm9, %v6275_v25, %v3147_v2  ;;  %v3289_v60 = vor.u32 %v3288_v30, %v3287_v20  ;;  %v3292_v33 = vor.u32 %v3291_v46, %v3290_v44  ;;  %v3295_v62 = vor.u32 %v3294_v63, %v3293_v28 }
 0x363   : > { %4242 = vcosq.f32 %v3150_v49  ;;  %v3915_v23 = vmin.u32 %v3232_v10, %v6707_v15  ;;  %v3298_v1 = vor.u32 %v3297_v40, %v3296_v7  ;;  %v3299_v27 = vshll.u32 %v7076_v41, %v3284_v14 }
 0x364   : > { %4244 = vsinq.f32 %v3150_v49  ;;  %v3300_v47 = vshrl.u32 %v7077_v48, %v3285_v13  ;;  %v3222_v51 = vadd.s32 %v6664_v12, %v6669_v36  ;;  %v6730_v55 = vshll.u32 %v3278_v31, 8 }
 0x365   : > { %v3234_v45 = vclz %v3915_v23  ;;  %v6734_v29 = vand.u32 8388607, %v3374_v3  ;;  %vm3168_vm2 = vcmp.lt.s32.totalorder %v6402_v38, 0  ;;  %v3286_v6 = vshrl.u32 %v7092_v0, %v3285_v13 }
 0x366   : > { %v3301_v19 = vor.u32 %v3300_v47, %v3299_v27  ;;  %vm3302_vm3 = vcmp.lt.s32.totalorder %v6709_v35, 1  ;;  %v3384_v22 = vadd.s32 1, %v3922_v18  ;;  %vm3304_vm4 = vcmp.lt.s32.totalorder %v6709_v35, 3 }
 0x367   : > { %v3916_v39 = vadd.s32 4294967294, %v3234_v45  ;;  %vm3305_vm5 = vcmp.lt.s32.totalorder %v6709_v35, 4  ;;  %v3310_v12 = vsel %vm3302_vm3, %v3289_v60, %v3292_v33  ;;  %v3314_v26 = vsel %vm3302_vm3, %v3292_v33, %v3295_v62 }
 0x368   : > { %v3307_v36 = vsel %vm3305_vm5, %v3295_v62, 2102212464  ;;  %v3311_v57 = vsel %vm3305_vm5, %v3298_v1, 920167782  ;;  %v3315_v17 = vsel %vm3305_vm5, %v3301_v19, 1326507024  ;;  %v3306_v31 = vsel %vm3302_vm3, %v3286_v6, %v3289_v60 }
 0x369   : > { %vm6747_vm6 = vcmp.le.f32.partialorder %v3166_v16, 0.7853982  ;;  %vm3917_vm7 = vcmp.lt.s32.totalorder %v3916_v39, 0  ;;  %vm3303_vm8 = vcmp.lt.s32.totalorder %v6709_v35, 2  ;;  %v3312_v8 = vsel %vm3304_vm4, %v3295_v62, %v3311_v57 }
 0x36a   : > { %v3316_v42 = vsel %vm3304_vm4, %v3298_v1, %v3315_v17  ;;  %v3237_v21 = vsel %vm3917_vm7, 0, %v3916_v39  ;;  %v3252_v14 = vsub.s32 4, %v6694_v9  ;;  %v3313_v4 = vsel %vm3303_vm8, %v3310_v12, %v3312_v8 }
 0x36b   : > { %v3317_v16 = vsel %vm3303_vm8, %v3314_v26, %v3316_v42  ;;  %v3238_v50 = vsub.s32 32, %v3237_v21  ;;  %v3242_v56 = vsub.s32 4294967266, %v3237_v21  ;;  %v3308_v13 = vsel %vm3304_vm4, %v3292_v33, %v3307_v36 }
 0x36c   : > { %v6766_v54 = vmul.u32.u64.low %v6730_v55, %v3317_v16  ;;  %v6767_v18 = vmul.u32.u64.high %v6730_v55, %v3317_v16, %v6766_v54  ;;  %v6770_v20 = vmul.u32.u64.low %v6730_v55, %v3313_v4  ;;  %v6771_v30 = vmul.u32.u64.high %v6730_v55, %v3313_v4, %v6770_v20 }
 0x36d   : > { %vm3154_vm10 = vweird.f32 %v6275_v25  ;;  %v3239_v44 = vshll.u32 %v6707_v15, %v3237_v21  ;;  %v3240_v46 = vshrl.u32 %v3222_v51, %v3238_v50  ;;  %v3243_v2 = vadd.s32 127, %v3242_v56 }
 0x36e   : > { %vm3385_vm9 = vcmp.gt.s32.totalorder %v3384_v22, 0  ;;  %vm3157_vm11 = vcmp.lt.s32.totalorder %v6703_v61, 2  ;;  %vm3158_vm12 = vcmp.eq.s32.totalorder %v6703_v61, 0  ;;  %v3309_v10 = vsel %vm3303_vm8, %v3306_v31, %v3308_v13 }
 0x36f   : > { %v3386_v28 = vsel %vm3385_vm9, %v3384_v22, 0  ;;  %v3241_v63 = vor.u32 %v3240_v46, %v3239_v44  ;;  %v3244_v49 = vshll.u32 %v3243_v2, 23  ;;  %v3253_v60 = vsel %vm3168_vm2, %v3252_v14, %v6694_v9 }
 0x370   : > { %v3388_v7 = vand.u32 31, %v3386_v28  ;;  %v4243_v40 = vpop.eup %4242  ;;  %vm3161_vm13 = vcmp.eq.s32.totalorder %v6703_v61, 2  ;;  %vm3327_vm14 = vc.u32 %v6767_v18, %v6770_v20  ;;  %v3328_v15 = vadd.s32 1, %v6771_v30 }
 0x371   : > { %v3382_v23 = vor.u32 8388608, %v6734_v29  ;;  %v4245_v35 = vpop.eup %4244  ;;  %v3162_v33 = vxor.u32 2147483648, %v4243_v40  ;;  %v3245_v62 = vor.u32 4788187, %v3244_v49  ;;  %v3325_v1 = vmul.u32 %v6730_v55, %v3309_v10 }
 0x372   : > { %v3389_v27 = vsub.s32 32, %v3388_v7  ;;  %v3159_v47 = vxor.u32 2147483648, %v4245_v35  ;;  %v3255_v9 = vsel %vm6747_vm6, 0, %v3253_v60  ;;  %v3329_v51 = vsel %vm3327_vm14, %v3328_v15, %v6771_v30 }
 0x373   : > { %v3481_v45 = vand.u32 2139095040, %v6700_v11  ;;  %v3163_v6 = vsel %vm3161_vm13, %v3162_v33, %v4245_v35  ;;  %v3246_v19 = vand.u32 2147483647, %v3245_v62  ;;  %v3248_v22 = vcvt.s32.f32 %v3241_v63 }
 0x374   : > { %v3330_v39 = vadd.s32 %v3329_v51, %v3325_v1  ;;  %v3160_v29 = vsel %vm3158_vm12, %v4243_v40, %v3159_v47  ;;  %v3387_v12 = vshrl.u32 %v3386_v28, 5  ;;  %v3392_v55 = vshrl.u32 %v7122_v43, %v3389_v27 }
 0x375   : > { %v3395_v36 = vshrl.u32 %v7099_v5, %v3389_v27  ;;  %v3164_v57 = vsel %vm3157_vm11, %v3160_v29, %v3163_v6  ;;  %v3249_v26 = vmul.f32 %v3248_v22, %v3246_v19  ;;  %v3398_v8 = vshrl.u32 %v7088_v58, %v3389_v27 }
 0x376   : > { %v3331_v17 = vadd.s32 536870912, %v3330_v39  ;;  %v3165_v42 = vsel %vm3154_vm10, nan, %v3164_v57  ;;  %v3391_v21 = vshll.u32 %v7092_v0, %v3388_v7  ;;  %v3394_v14 = vshll.u32 %v7122_v43, %v3388_v7 }
 0x377   : > { %v3397_v4 = vshll.u32 %v7099_v5, %v3388_v7  ;;  %v3250_v16 = vxor.u32 2147483648, %v3249_v26  ;;  %v3400_v56 = vshll.u32 %v7088_v58, %v3388_v7  ;;  %v3401_v61 = vshrl.u32 %v7076_v41, %v3389_v27  ;;  %3696 = vst [vmem:[%s4804_s28 + $0xd0] sm:$0xff] %v3165_v42 }
 0x378   : > { %v6805_v50 = vshrl.u32 %v3331_v17, 30  ;;  %v3393_v31 = vor.u32 %v3392_v55, %v3391_v21  ;;  %v3396_v13 = vor.u32 %v3395_v36, %v3394_v14  ;;  %v3403_v54 = vshll.u32 %v7076_v41, %v3388_v7 }
 0x379   : > { %v3404_v25 = vshrl.u32 %v7077_v48, %v3389_v27  ;;  %v3251_v30 = vsel %vm3168_vm2, %v3250_v16, %v3249_v26  ;;  %v3399_v46 = vor.u32 %v3398_v8, %v3397_v4  ;;  %v3402_v2 = vor.u32 %v3401_v61, %v3400_v56 }
 0x37a   : > { %v3333_v44 = vshll.u32 %v6805_v50, 30  ;;  %v3254_v10 = vsel %vm6747_vm6, %v6402_v38, %v3251_v30  ;;  %v3259_v28 = vadd.s32 3, %v3255_v9  ;;  %v3422_v49 = vshll.u32 %v3382_v23, 8 }
 0x37b   : > { %v3405_v63 = vor.u32 %v3404_v25, %v3403_v54  ;;  %4246 = vcosq.f32 %v3254_v10  ;;  %vm3406_vm15 = vcmp.lt.s32.totalorder %v3387_v12, 1  ;;  %v3482_v7 = vshrl.u32 %v3481_v45, 23 }
 0x37c   : > { %v6818_v60 = vsub.s32 %v3330_v39, %v3333_v44  ;;  %4248 = vsinq.f32 %v3254_v10  ;;  %v3390_v40 = vshrl.u32 %v7092_v0, %v3389_v27  ;;  %vm3409_vm0 = vcmp.lt.s32.totalorder %v3387_v12, 4 }
 0x37d   : > { %v3414_v15 = vsel %vm3406_vm15, %v3393_v31, %v3396_v13  ;;  %vm3408_vm1 = vcmp.lt.s32.totalorder %v3387_v12, 3  ;;  %v3411_v33 = vsel %vm3409_vm0, %v3399_v46, 2102212464  ;;  %v3415_v62 = vsel %vm3409_vm0, %v3402_v2, 920167782 }
 0x37e   : > { %v3336_v35 = vsub.s32 0, %v6818_v60  ;;  %vm3407_vm2 = vcmp.lt.s32.totalorder %v3387_v12, 2  ;;  %v3416_v53 = vsel %vm3408_vm1, %v3399_v46, %v3415_v62  ;;  %v3418_v1 = vsel %vm3406_vm15, %v3396_v13, %v3399_v46 }
 0x37f   : > { %v3419_v47 = vsel %vm3409_vm0, %v3405_v63, 1326507024  ;;  %v3410_v9 = vsel %vm3406_vm15, %v3390_v40, %v3393_v31  ;;  %v3417_v51 = vsel %vm3407_vm2, %v3414_v15, %v3416_v53  ;;  %v3412_v6 = vsel %vm3408_vm1, %v3396_v13, %v3411_v33 }
 0x380   : > { %v3919_v23 = vmin.u32 %v3336_v35, %v6818_v60  ;;  %v3420_v45 = vsel %vm3408_vm1, %v3402_v2, %v3419_v47  ;;  %v6825_v19 = vmul.u32.u64.low %v3422_v49, %v3417_v51  ;;  %v6826_v22 = vmul.u32.u64.high %v3422_v49, %v3417_v51, %v6825_v19 }
 0x381   : > { %v3421_v27 = vsel %vm3407_vm2, %v3418_v1, %v3420_v45  ;;  %v2005_v39 = vmul.f32 %v5731_v32, %v4483_v24  ;;  %v3260_v29 = vand.u32 3, %v3259_v28  ;;  %v3926_v26 = vadd.s32 4294967169, %v3482_v7 }
 0x382   : > { %v3338_v55 = vclz %v3919_v23  ;;  %v6831_v36 = vmul.u32.u64.low %v3422_v49, %v3421_v27  ;;  %v6832_v57 = vmul.u32.u64.high %v3422_v49, %v3421_v27, %v6831_v36  ;;  %v3413_v42 = vsel %vm3407_vm2, %v3410_v9, %v3412_v6 }
 0x383   : > { %v6835_v17 = vadd.f32 %v2005_v39, %v5418_v59  ;;  %v3356_v21 = vsub.s32 4, %v6805_v50  ;;  %v3432_v14 = vadd.s32 1, %v6826_v22  ;;  %v3478_v4 = vand.u32 2147483647, %v6700_v11 }
 0x384   : > { %v3920_v8 = vadd.s32 4294967294, %v3338_v55  ;;  %v3488_v16 = vadd.s32 1, %v3926_v26  ;;  %vm3265_vm3 = vcmp.eq.s32.totalorder %v3260_v29, 2  ;;  %vm6843_vm4 = vcmp.le.f32.partialorder %v3270_v37, 0.7853982 }
 0x385   : > { %vm3272_vm5 = vcmp.lt.s32.totalorder %v6476_v52, 0  ;;  %v3429_v32 = vmul.u32 %v3422_v49, %v3413_v42  ;;  %vm3431_vm7 = vc.u32 %v6832_v57, %v6825_v19  ;;  %v3326_v12 = vadd.s32 %v6770_v20, %v6767_v18 }
 0x386   : > { %vm3921_vm6 = vcmp.lt.s32.totalorder %v3920_v8, 0  ;;  %vm3489_vm8 = vcmp.gt.s32.totalorder %v3488_v16, 0  ;;  %v3433_v31 = vsel %vm3431_vm7, %v3432_v14, %v6826_v22  ;;  %v3357_v13 = vsel %vm3272_vm5, %v3356_v21, %v6805_v50 }
 0x387   : > { %v3341_v59 = vsel %vm3921_vm6, 0, %v3920_v8  ;;  %v3434_v54 = vadd.s32 %v3433_v31, %v3429_v32  ;;  %v3485_v25 = vand.u32 8388607, %v3478_v4  ;;  %v3490_v30 = vsel %vm3489_vm8, %v3488_v16, 0 }
 0x388   : > { %v3342_v56 = vsub.s32 32, %v3341_v59  ;;  %v3346_v61 = vsub.s32 4294967266, %v3341_v59  ;;  %v4247_v37 = vpop.eup %4246  ;;  %v3343_v2 = vshll.u32 %v6818_v60, %v3341_v59  ;;  %v3492_v63 = vand.u32 31, %v3490_v30 }
 0x389   : > { %v4249_v44 = vpop.eup %4248  ;;  %v3266_v46 = vxor.u32 2147483648, %v4247_v37  ;;  %v3435_v28 = vadd.s32 536870912, %v3434_v54  ;;  %v3585_v49 = vand.u32 2139095040, %v6835_v17  ;;  %vm3262_vm10 = vcmp.eq.s32.totalorder %v3260_v29, 0 }
 0x38a   : > { %v3344_v10 = vshrl.u32 %v3326_v12, %v3342_v56  ;;  %v3347_v18 = vadd.s32 127, %v3346_v61  ;;  %v3263_v20 = vxor.u32 2147483648, %v4249_v44  ;;  %vm3261_vm9 = vcmp.lt.s32.totalorder %v3260_v29, 2 }
 0x38b   : > { %v3267_v7 = vsel %vm3265_vm3, %v3266_v46, %v4249_v44  ;;  %v6861_v35 = vshrl.u32 %v3435_v28, 30  ;;  %v3493_v33 = vsub.s32 32, %v3492_v63  ;;  %vm3258_vm11 = vweird.f32 %v6402_v38 }
 0x38c   : > { %v3345_v50 = vor.u32 %v3344_v10, %v3343_v2  ;;  %v3348_v40 = vshll.u32 %v3347_v18, 23  ;;  %v3264_v15 = vsel %vm3262_vm10, %v4247_v37, %v3263_v20  ;;  %v3359_v53 = vsel %vm6843_vm4, 0, %v3357_v13 }
 0x38d   : > { %v3268_v60 = vsel %vm3261_vm9, %v3264_v15, %v3267_v7  ;;  %v3437_v47 = vshll.u32 %v6861_v35, 30  ;;  %v3486_v23 = vor.u32 8388608, %v3485_v25  ;;  %v3586_v9 = vshrl.u32 %v3585_v49, 23 }
 0x38e   : > { %v3349_v62 = vor.u32 4788187, %v3348_v40  ;;  %v3269_v1 = vsel %vm3258_vm11, nan, %v3268_v60  ;;  %v3352_v45 = vcvt.s32.f32 %v3345_v50  ;;  %v3496_v6 = vshrl.u32 %v7122_v43, %v3493_v33 }
 0x38f   : > { %v3499_v27 = vshrl.u32 %v7099_v5, %v3493_v33  ;;  %3697 = vst [vmem:[%s4804_s28 + $0xd8] sm:$0xff] %v3269_v1  ;;  %v6870_v22 = vsub.s32 %v3434_v54, %v3437_v47  ;;  %v3495_v38 = vshll.u32 %v7092_v0, %v3492_v63  ;;  %v3498_v39 = vshll.u32 %v7122_v43, %v3492_v63 }
 0x390   : > { %v3350_v51 = vand.u32 2147483647, %v3349_v62  ;;  %v3502_v29 = vshrl.u32 %v7088_v58, %v3493_v33  ;;  %v3491_v36 = vshrl.u32 %v3490_v30, 5  ;;  %v3501_v26 = vshll.u32 %v7099_v5, %v3492_v63 }
 0x391   : > { %v3504_v8 = vshll.u32 %v7088_v58, %v3492_v63  ;;  %v3440_v42 = vsub.s32 0, %v6870_v22  ;;  %v3497_v21 = vor.u32 %v3496_v6, %v3495_v38  ;;  %v3500_v14 = vor.u32 %v3499_v27, %v3498_v39 }
 0x392   : > { %v3353_v55 = vmul.f32 %v3352_v45, %v3350_v51  ;;  %v3505_v16 = vshrl.u32 %v7076_v41, %v3493_v33  ;;  %v3503_v32 = vor.u32 %v3502_v29, %v3501_v26  ;;  %v3507_v12 = vshll.u32 %v7076_v41, %v3492_v63 }
 0x393   : > { %v3508_v56 = vshrl.u32 %v7077_v48, %v3493_v33  ;;  %v3363_v61 = vadd.s32 3, %v3359_v53  ;;  %v3923_v31 = vmin.u32 %v3440_v42, %v6870_v22  ;;  %v3526_v13 = vshll.u32 %v3486_v23, 8 }
 0x394   : > { %v3354_v59 = vxor.u32 2147483648, %v3353_v55  ;;  %v3506_v37 = vor.u32 %v3505_v16, %v3504_v8  ;;  %vm3510_vm12 = vcmp.lt.s32.totalorder %v3491_v36, 1  ;;  %v3930_v30 = vadd.s32 4294967169, %v3586_v9 }
 0x395   : > { %v3509_v25 = vor.u32 %v3508_v56, %v3507_v12  ;;  %v3442_v46 = vclz %v3923_v31  ;;  %v3494_v2 = vshrl.u32 %v7092_v0, %v3493_v33  ;;  %vm3513_vm13 = vcmp.lt.s32.totalorder %v3491_v36, 4 }
 0x396   : > { %v3355_v54 = vsel %vm3272_vm5, %v3354_v59, %v3353_v55  ;;  %vm3511_vm14 = vcmp.lt.s32.totalorder %v3491_v36, 2  ;;  %v3515_v10 = vsel %vm3513_vm13, %v3503_v32, 2102212464  ;;  %v3518_v18 = vsel %vm3510_vm12, %v3497_v21, %v3500_v14 }
 0x397   : > { %v3358_v44 = vsel %vm6843_vm4, %v6476_v52, %v3355_v54  ;;  %v3924_v20 = vadd.s32 4294967294, %v3442_v46  ;;  %vm3512_vm15 = vcmp.lt.s32.totalorder %v3491_v36, 3  ;;  %v3519_v28 = vsel %vm3513_vm13, %v3506_v37, 920167782 }
 0x398   : > { %4250 = vcosq.f32 %v3358_v44  ;;  %v3514_v63 = vsel %vm3510_vm12, %v3494_v2, %v3497_v21  ;;  %v3520_v49 = vsel %vm3512_vm15, %v3503_v32, %v3519_v28  ;;  %v3522_v7 = vsel %vm3510_vm12, %v3500_v14, %v3503_v32 }
 0x399   : > { %4252 = vsinq.f32 %v3358_v44  ;;  %v3523_v24 = vsel %vm3513_vm13, %v3509_v25, 1326507024  ;;  %vm3925_vm0 = vcmp.lt.s32.totalorder %v3924_v20, 0  ;;  %v3516_v50 = vsel %vm3512_vm15, %v3500_v14, %v3515_v10 }
 0x39a   : > { %v3521_v40 = vsel %vm3511_vm14, %v3518_v18, %v3520_v49  ;;  %v3524_v15 = vsel %vm3512_vm15, %v3506_v37, %v3523_v24  ;;  %v3445_v33 = vsel %vm3925_vm0, 0, %v3924_v20  ;;  %v3430_v1 = vadd.s32 %v6825_v19, %v6832_v57 }
 0x39b   : > { %v3525_v60 = vsel %vm3511_vm14, %v3522_v7, %v3524_v15  ;;  %v6893_v62 = vmul.u32.u64.low %v3526_v13, %v3521_v40  ;;  %v6894_v53 = vmul.u32.u64.high %v3526_v13, %v3521_v40, %v6893_v62  ;;  %v3446_v47 = vsub.s32 32, %v3445_v33 }
 0x39c   : > { %v3450_v23 = vsub.s32 4294967266, %v3445_v33  ;;  %v3592_v9 = vadd.s32 1, %v3930_v30  ;;  %v3364_v51 = vand.u32 3, %v3363_v61  ;;  %v3517_v45 = vsel %vm3511_vm14, %v3514_v63, %v3516_v50 }
 0x39d   : > { %v6900_v6 = vmul.u32.u64.low %v3526_v13, %v3525_v60  ;;  %v6901_v27 = vmul.u32.u64.high %v3526_v13, %v3525_v60, %v6900_v6  ;;  %v3447_v38 = vshll.u32 %v6870_v22, %v3445_v33  ;;  %v3448_v39 = vshrl.u32 %v3430_v1, %v3446_v47 }
 0x39e   : > { %v3451_v29 = vadd.s32 127, %v3450_v23  ;;  %vm3593_vm1 = vcmp.gt.s32.totalorder %v3592_v9, 0  ;;  %v3460_v55 = vsub.s32 4, %v6861_v35  ;;  %v3536_v26 = vadd.s32 1, %v6894_v53 }
 0x39f   : > { %v3582_v19 = vand.u32 2147483647, %v6835_v17  ;;  %v3594_v57 = vsel %vm3593_vm1, %v3592_v9, 0  ;;  %v3449_v8 = vor.u32 %v3448_v39, %v3447_v38  ;;  %vm3362_vm2 = vweird.f32 %v6476_v52 }
 0x3a0   : > { %v3452_v42 = vshll.u32 %v3451_v29, 23  ;;  %v3596_v21 = vand.u32 31, %v3594_v57  ;;  %vm3365_vm3 = vcmp.lt.s32.totalorder %v3364_v51, 2  ;;  %vm3376_vm4 = vcmp.lt.s32.totalorder %v6490_v34, 0 }
 0x3a1   : > { %v3533_v36 = vmul.u32 %v3526_v13, %v3517_v45  ;;  %vm3535_vm5 = vc.u32 %v6901_v27, %v6893_v62  ;;  %vm3366_vm6 = vcmp.eq.s32.totalorder %v3364_v51, 0  ;;  %vm6913_vm7 = vcmp.le.f32.partialorder %v3374_v3, 0.7853982 }
 0x3a2   : > { %v3453_v14 = vor.u32 4788187, %v3452_v42  ;;  %v3537_v16 = vsel %vm3535_vm5, %v3536_v26, %v6894_v53  ;;  %v3597_v59 = vsub.s32 32, %v3596_v21  ;;  %vm3369_vm8 = vcmp.eq.s32.totalorder %v3364_v51, 2 }
 0x3a3   : > { %v3461_v32 = vsel %vm3376_vm4, %v3460_v55, %v6861_v35  ;;  %v3538_v12 = vadd.s32 %v3537_v16, %v3533_v36  ;;  %v3589_v56 = vand.u32 8388607, %v3582_v19  ;;  %v3456_v37 = vcvt.s32.f32 %v3449_v8 }
 0x3a4   : > { %v3454_v31 = vand.u32 2147483647, %v3453_v14  ;;  %v6923_v3 = vshrl.u32 %v3594_v57, 5  ;;  %v3599_v13 = vshll.u32 %v7092_v0, %v3596_v21  ;;  %v3600_v44 = vshrl.u32 %v7122_v43, %v3597_v59 }
 0x3a5   : > { %v4251_v61 = vpop.eup %4250  ;;  %v3539_v30 = vadd.s32 536870912, %v3538_v12  ;;  %v3603_v46 = vshrl.u32 %v7099_v5, %v3597_v59  ;;  %v3602_v10 = vshll.u32 %v7122_v43, %v3596_v21  ;;  %v3605_v18 = vshll.u32 %v7099_v5, %v3596_v21 }
 0x3a6   : > { %v4253_v54 = vpop.eup %4252  ;;  %v3370_v25 = vxor.u32 2147483648, %v4251_v61  ;;  %v3457_v35 = vmul.f32 %v3456_v37, %v3454_v31  ;;  %v3606_v63 = vshrl.u32 %v7088_v58, %v3597_v59  ;;  %v3609_v49 = vshrl.u32 %v7076_v41, %v3597_v59 }
 0x3a7   : > { %v3367_v2 = vxor.u32 2147483648, %v4253_v54  ;;  %v6931_v28 = vshrl.u32 %v3539_v30, 30  ;;  %v3608_v50 = vshll.u32 %v7088_v58, %v3596_v21  ;;  %v3612_v40 = vshrl.u32 %v7077_v48, %v3597_v59 }
 0x3a8   : > { %v3371_v20 = vsel %vm3369_vm8, %v3370_v25, %v4253_v54  ;;  %v3458_v24 = vxor.u32 2147483648, %v3457_v35  ;;  %v3601_v15 = vor.u32 %v3600_v44, %v3599_v13  ;;  %v3604_v33 = vor.u32 %v3603_v46, %v3602_v10 }
 0x3a9   : > { %v3368_v7 = vsel %vm3366_vm6, %v4251_v61, %v3367_v2  ;;  %v3541_v5 = vshll.u32 %v6931_v28, 30  ;;  %v3610_v1 = vor.u32 %v3609_v49, %v3608_v50  ;;  %v3611_v47 = vshll.u32 %v7076_v41, %v3596_v21 }
 0x3aa   : > { %v3372_v43 = vsel %vm3365_vm3, %v3368_v7, %v3371_v20  ;;  %v3459_v53 = vsel %vm3376_vm4, %v3458_v24, %v3457_v35  ;;  %v3607_v23 = vor.u32 %v3606_v63, %v3605_v18  ;;  %v3463_v9 = vsel %vm6913_vm7, 0, %v3461_v32 }
 0x3ab   : > { %v3373_v60 = vsel %vm3362_vm2, nan, %v3372_v43  ;;  %v3462_v58 = vsel %vm6913_vm7, %v6490_v34, %v3459_v53  ;;  %v3542_v48 = vsub.s32 %v3538_v12, %v3541_v5  ;;  %v3590_v51 = vor.u32 8388608, %v3589_v56 }
 0x3ac   : > { %3698 = vst [vmem:[%s4804_s28 + $0xe0] sm:$0xff] %v3373_v60  ;;  %4254 = vcosq.f32 %v3462_v58  ;;  %v3613_v52 = vor.u32 %v3612_v40, %v3611_v47  ;;  %vm3614_vm10 = vcmp.lt.s32.totalorder %v6923_v3, 1  ;;  %vm3617_vm9 = vcmp.lt.s32.totalorder %v6923_v3, 4 }
 0x3ad   : > { %4256 = vsinq.f32 %v3462_v58  ;;  %v3544_v45 = vsub.s32 0, %v3542_v48  ;;  %v3598_v41 = vshrl.u32 %v7092_v0, %v3597_v59  ;;  %vm3616_vm11 = vcmp.lt.s32.totalorder %v6923_v3, 3 }
 0x3ae   : > { %v3622_v6 = vsel %vm3614_vm10, %v3601_v15, %v3604_v33  ;;  %v3623_v38 = vsel %vm3617_vm9, %v3610_v1, 920167782  ;;  %vm3615_vm12 = vcmp.lt.s32.totalorder %v6923_v3, 2  ;;  %v3619_v29 = vsel %vm3617_vm9, %v3607_v23, 2102212464 }
 0x3af   : > { %v3927_v39 = vmin.u32 %v3544_v45, %v3542_v48  ;;  %v3624_v55 = vsel %vm3616_vm11, %v3607_v23, %v3623_v38  ;;  %v3626_v57 = vsel %vm3614_vm10, %v3604_v33, %v3607_v23  ;;  %v3627_v8 = vsel %vm3617_vm9, %v3613_v52, 1326507024 }
 0x3b0   : > { %v3625_v26 = vsel %vm3615_vm12, %v3622_v6, %v3624_v55  ;;  %v3630_v42 = vshll.u32 %v3590_v51, 8  ;;  %v3618_v36 = vsel %vm3614_vm10, %v3598_v41, %v3601_v15  ;;  %v3620_v22 = vsel %vm3616_vm11, %v3604_v33, %v3619_v29 }
 0x3b1   : > { %v3546_v21 = vclz %v3927_v39  ;;  %v3628_v14 = vsel %vm3616_vm11, %v3610_v1, %v3627_v8  ;;  %v3467_v59 = vadd.s32 3, %v3463_v9  ;;  %v3621_v31 = vsel %vm3615_vm12, %v3618_v36, %v3620_v22 }
 0x3b2   : > { %v6958_v0 = vmul.u32.u64.low %v3630_v42, %v3625_v26  ;;  %v6959_v16 = vmul.u32.u64.high %v3630_v42, %v3625_v26, %v6958_v0  ;;  %v3629_v12 = vsel %vm3615_vm12, %v3626_v57, %v3628_v14  ;;  %v3534_v25 = vadd.s32 %v6893_v62, %v6901_v27 }
 0x3b3   : > { %v3928_v32 = vadd.s32 4294967294, %v3546_v21  ;;  %v6963_v56 = vmul.u32.u64.low %v3630_v42, %v3629_v12  ;;  %v6964_v61 = vmul.u32.u64.high %v3630_v42, %v3629_v12, %v6963_v56  ;;  %v3468_v54 = vand.u32 3, %v3467_v59 }
 0x3b4   : > { %v3640_v13 = vadd.s32 1, %v6959_v16  ;;  %v3637_v46 = vmul.u32 %v3630_v42, %v3621_v31  ;;  %vm3466_vm2 = vweird.f32 %v6490_v34  ;;  %vm3480_vm3 = vcmp.lt.s32.totalorder %v6700_v11, 0 }
 0x3b5   : > { %vm3929_vm13 = vcmp.lt.s32.totalorder %v3928_v32, 0  ;;  %vm3639_vm14 = vc.u32 %v6964_v61, %v6958_v0  ;;  %vm3473_vm15 = vcmp.eq.s32.totalorder %v3468_v54, 2  ;;  %vm3470_vm0 = vcmp.eq.s32.totalorder %v3468_v54, 0 }
 0x3b6   : > { %v3549_v37 = vsel %vm3929_vm13, 0, %v3928_v32  ;;  %v3641_v20 = vsel %vm3639_vm14, %v3640_v13, %v6959_v16  ;;  %vm3469_vm1 = vcmp.lt.s32.totalorder %v3468_v54, 2  ;;  %v3564_v23 = vsub.s32 4, %v6931_v28 }
 0x3b7   : > { %v3550_v30 = vsub.s32 32, %v3549_v37  ;;  %v3554_v44 = vsub.s32 4294967266, %v3549_v37  ;;  %v3551_v35 = vshll.u32 %v3542_v48, %v3549_v37  ;;  %v3642_v49 = vadd.s32 %v3641_v20, %v3637_v46 }
 0x3b8   : > { %vm3479_vm4 = vcmp.le.f32.partialorder %v3478_v4, 0.7853982  ;;  %v3565_v45 = vsel %vm3480_vm3, %v3564_v23, %v6931_v28  ;;  %v3638_v55 = vadd.s32 %v6958_v0, %v6964_v61  ;;  %vm3570_vm10 = vweird.f32 %v6700_v11 }
 0x3b9   : > { %v4255_v2 = vpop.eup %4254  ;;  %v3552_v10 = vshrl.u32 %v3534_v25, %v3550_v30  ;;  %v3555_v18 = vadd.s32 127, %v3554_v44  ;;  %v3643_v27 = vadd.s32 536870912, %v3642_v49  ;;  %v3567_v38 = vsel %vm3479_vm4, 0, %v3565_v45 }
 0x3ba   : > { %v4257_v3 = vpop.eup %4256  ;;  %v3474_v63 = vxor.u32 2147483648, %v4255_v2  ;;  %v3571_v29 = vadd.s32 3, %v3567_v38  ;;  %vm3584_vm9 = vcmp.lt.s32.totalorder %v6835_v17, 0  ;;  %vm3583_vm11 = vcmp.le.f32.partialorder %v3582_v19, 0.7853982 }
 0x3bb   : > { %v3471_v7 = vxor.u32 2147483648, %v4257_v3  ;;  %v3553_v24 = vor.u32 %v3552_v10, %v3551_v35  ;;  %v3556_v50 = vshll.u32 %v3555_v18, 23  ;;  %v3644_v15 = vshrl.u32 %v3643_v27, 30 }
 0x3bc   : > { %v3475_v62 = vsel %vm3473_vm15, %v3474_v63, %v4257_v3  ;;  %v3572_v21 = vand.u32 3, %v3571_v29  ;;  %vm3674_vm15 = vweird.f32 %v6835_v17 }
 0x3bd   : > { %v3472_v40 = vsel %vm3470_vm0, %v4255_v2, %v3471_v7  ;;  %v3557_v43 = vor.u32 4788187, %v3556_v50  ;;  %v3560_v53 = vcvt.s32.f32 %v3553_v24  ;;  %v3645_v1 = vshll.u32 %v3644_v15, 30 }
 0x3be   : > { %v3476_v5 = vsel %vm3469_vm1, %v3472_v40, %v3475_v62  ;;  %vm3577_vm6 = vcmp.eq.s32.totalorder %v3572_v21, 2  ;;  %vm3574_vm7 = vcmp.eq.s32.totalorder %v3572_v21, 0  ;;  %vm3573_vm8 = vcmp.lt.s32.totalorder %v3572_v21, 2 }
 0x3bf   : > { %v3477_v33 = vsel %vm3466_vm2, nan, %v3476_v5  ;;  %v3558_v60 = vand.u32 2147483647, %v3557_v43  ;;  %v3646_v58 = vsub.s32 %v3642_v49, %v3645_v1  ;;  %v3668_v25 = vsub.s32 4, %v3644_v15 }
 0x3c0   : > { %3699 = vst [vmem:[%s4804_s28 + $0xe8] sm:$0xff] %v3477_v33 }
 0x3c1   : > { %v3561_v47 = vmul.f32 %v3560_v53, %v3558_v60  ;;  %v3648_v9 = vsub.s32 0, %v3646_v58  ;;  %v3669_v46 = vsel %vm3584_vm9, %v3668_v25, %v3644_v15 }
 0x3c2   : > { %v3671_v2 = vsel %vm3583_vm11, 0, %v3669_v46 }
 0x3c3   : > { %v3562_v48 = vxor.u32 2147483648, %v3561_v47  ;;  %v3931_v52 = vmin.u32 %v3648_v9, %v3646_v58 }
 0x3c5   : > { %v3563_v51 = vsel %vm3480_vm3, %v3562_v48, %v3561_v47  ;;  %v3650_v41 = vclz %v3931_v52 }
 0x3c6   : > { %v3566_v34 = vsel %vm3479_vm4, %v6700_v11, %v3563_v51  ;;  %v3675_v11 = vadd.s32 3, %v3671_v2 }
 0x3c7   : > { %4258 = vcosq.f32 %v3566_v34  ;;  %v3932_v6 = vadd.s32 4294967294, %v3650_v41 }
 0x3c8   : > { %4260 = vsinq.f32 %v3566_v34  ;;  %v3676_v35 = vand.u32 3, %v3675_v11 }
 0x3c9   : > { %vm3933_vm5 = vcmp.lt.s32.totalorder %v3932_v6, 0 }
 0x3ca   : > { %v3653_v39 = vsel %vm3933_vm5, 0, %v3932_v6  ;;  %vm3681_vm12 = vcmp.eq.s32.totalorder %v3676_v35, 2  ;;  %vm3678_vm13 = vcmp.eq.s32.totalorder %v3676_v35, 0  ;;  %vm3677_vm14 = vcmp.lt.s32.totalorder %v3676_v35, 2 }
 0x3cb   : > { %v3654_v26 = vsub.s32 32, %v3653_v39  ;;  %v3658_v57 = vsub.s32 4294967266, %v3653_v39  ;;  %v3655_v8 = vshll.u32 %v3646_v58, %v3653_v39 }
 0x3cd   : > { %v3656_v4 = vshrl.u32 %v3638_v55, %v3654_v26  ;;  %v3659_v42 = vadd.s32 127, %v3658_v57 }
 0x3cf   : > { %v3657_v36 = vor.u32 %v3656_v4, %v3655_v8  ;;  %v3660_v22 = vshll.u32 %v3659_v42, 23 }
 0x3d1   : > { %v3661_v16 = vor.u32 4788187, %v3660_v22  ;;  %v3664_v56 = vcvt.s32.f32 %v3657_v36 }
 0x3d3   : > { %v3662_v12 = vand.u32 2147483647, %v3661_v16 }
 0x3d4   : > { %v4259_v14 = vpop.eup %4258 }
 0x3d5   : > { %v4261_v28 = vpop.eup %4260  ;;  %v3578_v59 = vxor.u32 2147483648, %v4259_v14  ;;  %v3665_v61 = vmul.f32 %v3664_v56, %v3662_v12 }
 0x3d6   : > { %v3575_v32 = vxor.u32 2147483648, %v4261_v28 }
 0x3d7   : > { %v3579_v31 = vsel %vm3577_vm6, %v3578_v59, %v4261_v28  ;;  %v3666_v54 = vxor.u32 2147483648, %v3665_v61 }
 0x3d8   : > { %v3576_v0 = vsel %vm3574_vm7, %v4259_v14, %v3575_v32 }
 0x3d9   : > { %v3580_v37 = vsel %vm3573_vm8, %v3576_v0, %v3579_v31  ;;  %v3667_v30 = vsel %vm3584_vm9, %v3666_v54, %v3665_v61 }
 0x3da   : > { %v3581_v13 = vsel %vm3570_vm10, nan, %v3580_v37  ;;  %v3670_v44 = vsel %vm3583_vm11, %v6835_v17, %v3667_v30 }
 0x3db   : > { %3700 = vst [vmem:[%s4804_s28 + $0xf0] sm:$0xff] %v3581_v13  ;;  %4262 = vcosq.f32 %v3670_v44 }
 0x3dc   : > { %4264 = vsinq.f32 %v3670_v44 }
 0x3e8   : > { %v4263_v10 = vpop.eup %4262 }
 0x3e9   : > { %v4265_v18 = vpop.eup %4264  ;;  %v3682_v20 = vxor.u32 2147483648, %v4263_v10 }
 0x3ea   : > { %v3679_v3 = vxor.u32 2147483648, %v4265_v18 }
 0x3eb   : > { %v3683_v19 = vsel %vm3681_vm12, %v3682_v20, %v4265_v18 }
 0x3ec   : > { %v3680_v63 = vsel %vm3678_vm13, %v4263_v10, %v3679_v3 }
 0x3ed   : > { %v3684_v49 = vsel %vm3677_vm14, %v3680_v63, %v3683_v19 }
 0x3ee   : > { %v3685_v7 = vsel %vm3674_vm15, nan, %v3684_v49 }
 0x3ef   : > { %3701 = vst [vmem:[%s4804_s28 + $0xf8] sm:$0xff] %v3685_v7 }
 0x3f0   : > { %4279 = shalt.err (!%p4276_p5)
}
 0x3f1   : > { %s4280_s16 = scalar_lea.hbm %s6993_s5, 4096  ;;  %s4284_s23 = scalar_lea.hbm %s7048_s2, 8192 }
 0x3f2   : > { %p4281_p6 = scmp.ne.s32.totalorder %s6993_s5, %s4280_s16  ;;  %p4285_p10 = scmp.lt.s32.totalorder %s6993_s5, %s7048_s2 }
 0x3f3   : > { %p4286_p11 = scmp.lt.s32.totalorder %s4284_s23, %s4280_s16 }
 0x3f4   : > { %p4282_p7 = pnand %p4281_p6, %p4410_p4 }
 0x3f5   : > { %p4287_p12 = por %p4286_p11, %p4285_p10 }
 0x3f6   : > { %p4283_p9 = pneg %p4282_p7 }
 0x3f8   : > { %p4288_p13 = pnand %p4287_p12, %p4283_p9 }
 0x3fa   : > { %4291 = shalt.err (!%p4288_p13)
}
 0x3fb   : > { %s4353_s26 = smov 256   ;;  %s4354_s27 = smov 16  }
 0x3fc   : > { %4069 = dma.vmem_to_hbm [thread:$0]  (%p4410_p4), %s6995_s30, 4096, %s6993_s5, %s7001_s12, %s4353_s26, %s4353_s26, %s4354_s27  }
 0x3fd PF: > { %p4075_p0 = scmp.ge.s32.totalorder %s4342_s14, 2  ;;  %s3733_s28 = sand.u32 1, %s4322_s9  }
 0x3fe   : > { %s3734_s29 = scalar_lea.sflag [#allocation3], %s3733_s28 }
 0x3ff   : > { %p4072_p1 = pnand %p4075_p0, %p4417_p8 }
 0x401   : > { %p4073_p2 = pneg %p4072_p1 }
 0x403   : > { %4317 = dma.done.wait (%p4073_p2), %s3734_s29, 4096  }
 0x404   : > { %4319 = vsyncadd (%p4073_p2), %s3734_s29, 4294963200  ;;  %s15_s14 = sadd.s32 1, %s4342_s14   ;;  %s7149_s9 = smov %s4326_s10 }
 0x405   : > { %p12_p3 = scmp.ge.s32.totalorder %s15_s14, 4   ;;  %s7150_s10 = smov %s4330_s11 }
 0x406   : > { %s7151_s11 = smov %s4423_s22  ;;  %s7152_s12 = smov %s4338_s13 }
 0x407   : > { %s7153_s13 = smov %s7155_s17  ;;  %14 = sbr.rel (!%p12_p3) target bundleno = 4 (0x4), region = 64 }
 0x40c   :  { %3739 = vsyncpa [#allocation3], 1 }
 0x40d   :  { %3741 = vsyncpa [#allocation3 + $0x1], 1 }

</bundles_post_ra>
